<compile_context>
chip_gen: v6e
topology: v6e:2x2x1
jax: 0.10.0
libtpu: 0.0.40
codegen_flags: <defaults>
</compile_context>

<pallas_src>
import functools

import jax
import jax.numpy as jnp
from jax.experimental import pallas as pl
from jax.experimental.pallas import tpu as pltpu

COMPUTE_DTYPE = jnp.bfloat16   # MXU operand / intermediate activation dtype
LANE = 128


def _round_up(x, m):
    return ((x + m - 1) // m) * m


def _pick_tm(m):
    """Row tile: multiple of 8, capped at 1024, and >=2 grid steps when
    possible so v7x megacore can shard M and the pipeline has work to overlap.
    (VMEM check for the 1024 cap is in the header comment.)"""
    m8 = _round_up(max(m, 1), 8)
    if m8 <= 8:
        return 8
    return max(8, min(1024, _round_up(m8 // 2, 8)))


def _weight_spec(shape):
    # Grid-invariant weight/bias block: one pipeline buffer is enough.
    return pl.BlockSpec(shape, lambda i: (0, 0), pipeline_mode=pl.Buffered(1))


# ----------------------------------------------------------------------------
# Pallas kernels
# ----------------------------------------------------------------------------
def _matmul_bias_kernel(x_ref, w_ref, b_ref, o_ref, *, relu):
    acc = jnp.dot(x_ref[...], w_ref[...], preferred_element_type=jnp.float32)
    acc = acc + b_ref[...]                       # (TM, Np) + (1, Np), f32
    if relu:
        acc = jnp.maximum(acc, 0.0)
    o_ref[...] = acc.astype(o_ref.dtype)


def _bottleneck_kernel(h_ref, w1_ref, b1_ref, w2_ref, b2_ref, lat_ref, dec_ref):
    # latent = h @ W1 + b1   (no activation), stored as f32.
    lat = jnp.dot(h_ref[...], w1_ref[...], preferred_element_type=jnp.float32)
    lat_ref[...] = lat + b1_ref[...]
    # Reload from lat_ref (shortens the f32 live range across the wide 2nd
    # matmul's epilogue -> no vreg spills).  Padded latent lanes are zero and
    # hit zero rows of W2.
    lat_b = lat_ref[...].astype(w2_ref.dtype)
    dec = jnp.dot(lat_b, w2_ref[...], preferred_element_type=jnp.float32)
    dec_ref[...] = jnp.maximum(dec + b2_ref[...], 0.0).astype(dec_ref.dtype)


# ----------------------------------------------------------------------------
# pallas_call wrappers
# ----------------------------------------------------------------------------
def linear_pallas(x, w, b, n_out, *, relu, out_dtype):
    """y = relu?(x @ w + b).

    x:(M,K); w: bf16 (K,Np) from prepare_params (Np == n_out, or n_out padded
    to a multiple of 128 for lane-dense stores); b: f32 (1,Np); n_out: true N.
    Returns (M, n_out) in out_dtype; pad rows/lanes are sliced off here and the
    slice is fused by XLA into the consumer."""
    M, K = x.shape
    Np = w.shape[1]
    TM = _pick_tm(M)
    M_pad = _round_up(M, TM)

    xb = x if x.dtype == COMPUTE_DTYPE else x.astype(COMPUTE_DTYPE)
    if M_pad != M:
        xb = jnp.pad(xb, ((0, M_pad - M), (0, 0)))

    out = pl.pallas_call(
        functools.partial(_matmul_bias_kernel, relu=relu),
        out_shape=jax.ShapeDtypeStruct((M_pad, Np), out_dtype),
        grid=(M_pad // TM,),
        in_specs=[
            pl.BlockSpec((TM, K), lambda i: (i, 0)),
            _weight_spec((K, Np)),
            _weight_spec((1, Np)),
        ],
        out_specs=pl.BlockSpec((TM, Np), lambda i: (i, 0)),
        compiler_params=pltpu.CompilerParams(
            dimension_semantics=("parallel",)),
    )(xb, w, b)

    if M_pad != M:
        out = out[:M]
    if Np != n_out:
        out = out[:, :n_out]
    return out


def bottleneck_pallas(h_flat, w1, b1, w2, b2, nb):
    """Fused encoder Linear + decoder Linear + ReLU in one pallas_call.

    h_flat:(B, 2048) -> (latent (B, nb) f32, dec (B, 2048) bf16, ReLU'd).
    w1: (2048, 128) (nb lane-padded), w2: (128, 2048) (rows padded to match)."""
    M, K1 = h_flat.shape
    Nb_pad = w1.shape[1]
    N2 = w2.shape[1]
    TM = min(256, _round_up(M, 8))
    M_pad = _round_up(M, TM)

    hb = h_flat if h_flat.dtype == COMPUTE_DTYPE else h_flat.astype(COMPUTE_DTYPE)
    if M_pad != M:
        hb = jnp.pad(hb, ((0, M_pad - M), (0, 0)))

    lat, dec = pl.pallas_call(
        _bottleneck_kernel,
        out_shape=(jax.ShapeDtypeStruct((M_pad, Nb_pad), jnp.float32),
                   jax.ShapeDtypeStruct((M_pad, N2), COMPUTE_DTYPE)),
        grid=(M_pad // TM,),
        in_specs=[
            pl.BlockSpec((TM, K1), lambda i: (i, 0)),
            _weight_spec((K1, Nb_pad)),
            _weight_spec((1, Nb_pad)),
            _weight_spec((Nb_pad, N2)),
            _weight_spec((1, N2)),
        ],
        out_specs=(pl.BlockSpec((TM, Nb_pad), lambda i: (i, 0)),
                   pl.BlockSpec((TM, N2), lambda i: (i, 0))),
        compiler_params=pltpu.CompilerParams(
            dimension_semantics=("parallel",)),
    )(hb, w1, b1, w2, b2)
    # Padded rows/lanes are garbage (bias+ReLU of zeros); always sliced off
    # before any consumer sees them.
    return lat[:M, :nb], dec[:M]


# ----------------------------------------------------------------------------
# Conv layers (NHWC) lowered onto the Pallas GEMM
# ----------------------------------------------------------------------------
def _im2col_nhwc(x, k, stride, pad):
    """x:(B,H,W,C) NHWC (bf16) -> ((B*Ho*Wo, k*k*C), Ho, Wo).
    Column index = (kh*k + kw)*C + c.  XLA-side glue; see TODO(synk) above."""
    B, H, W, C = x.shape
    if pad:
        x = jnp.pad(x, ((0, 0), (pad, pad), (pad, pad), (0, 0)))
    Ho = (H + 2 * pad - k) // stride + 1
    Wo = (W + 2 * pad - k) // stride + 1
    cols = []
    for di in range(k):
        for dj in range(k):
            cols.append(x[:, di:di + stride * (Ho - 1) + 1:stride,
                           dj:dj + stride * (Wo - 1) + 1:stride, :])
    col = jnp.concatenate(cols, axis=-1)            # (B, Ho, Wo, k*k*C)
    return col.reshape(B * Ho * Wo, k * k * C), Ho, Wo


def conv2d_nhwc(x, w, b, cout, *, k, stride, pad, relu):
    """x:(B,H,W,Cin) NHWC bf16; w/b from prepare_params; output NHWC bf16."""
    B = x.shape[0]
    col, Ho, Wo = _im2col_nhwc(x, k, stride, pad)
    y = linear_pallas(col, w, b, cout, relu=relu, out_dtype=COMPUTE_DTYPE)
    return y.reshape(B, Ho, Wo, cout)


# Sub-pixel phase decomposition of ConvTranspose2d(k=4, stride=2, padding=1):
# output pixel (2m+r, 2n+c) only touches 2x2 of the 4x4 taps; all four phases
# fit inside one stride-1 3x3 window of the 1-padded input.
# _PHASE_TAPS[r][di] = kh used at window-row-offset di for phase r (others 0).
_PHASE_TAPS = ({0: 3, 1: 1}, {1: 2, 2: 0})


def _phase_weight(w_t):
    """(Cin, Cout, 4, 4) ConvTranspose2d weight -> (9*Cin, 4*Cout) matrix of a
    stride-1 3x3 conv whose 4*Cout outputs are the 4 sub-pixel phases."""
    Cin, Cout = w_t.shape[0], w_t.shape[1]
    W = jnp.zeros((3, 3, Cin, 4, Cout), w_t.dtype)
    for r in range(2):
        for c in range(2):
            ph = r * 2 + c
            for di, kh in _PHASE_TAPS[r].items():
                for dj, kw in _PHASE_TAPS[c].items():
                    W = W.at[di, dj, :, ph, :].set(w_t[:, :, kh, kw])
    return W.reshape(9 * Cin, 4 * Cout)


def conv_transpose2d_nhwc(x, w, b, cout, *, relu, out_dtype=COMPUTE_DTYPE):
    """ConvTranspose2d(Cin,cout,4,stride=2,padding=1) on NHWC input via phase
    decomposition + pixel shuffle (no zero-upsampled tensor)."""
    B, H, W, _ = x.shape
    col, _, _ = _im2col_nhwc(x, 3, 1, 1)                 # (B*H*W, 9*Cin)
    y = linear_pallas(col, w, b, 4 * cout, relu=relu, out_dtype=out_dtype)
    y = y.reshape(B, H, W, 2, 2, cout)                   # (..., r, c, Cout)
    y = y.transpose(0, 1, 3, 2, 4, 5).reshape(B, 2 * H, 2 * W, cout)
    return y


# ----------------------------------------------------------------------------
# Parameters: PyTorch-layout init + one-time kernel packing
# ----------------------------------------------------------------------------
def init_params(key, bottleneck_dim=64):
    def nrm(k, shape, scale=0.05):
        return scale * jax.random.normal(k, shape, dtype=jnp.float32)

    ks = jax.random.split(key, 16)
    return {
        # encoder convs: PyTorch Conv2d layout (Cout, Cin, 4, 4)
        "e1_w": nrm(ks[0], (32, 3, 4, 4)),   "e1_b": nrm(ks[1], (32,)),
        "e2_w": nrm(ks[2], (64, 32, 4, 4)),  "e2_b": nrm(ks[3], (64,)),
        "e3_w": nrm(ks[4], (128, 64, 4, 4)), "e3_b": nrm(ks[5], (128,)),
        # Linear(128*4*4 -> bottleneck), rows in PyTorch NCHW-Flatten order
        "e4_w": nrm(ks[6], (128 * 4 * 4, bottleneck_dim)),
        "e4_b": nrm(ks[7], (bottleneck_dim,)),
        # Linear(bottleneck -> 128*4*4)
        "d0_w": nrm(ks[8], (bottleneck_dim, 128 * 4 * 4)),
        "d0_b": nrm(ks[9], (128 * 4 * 4,)),
        # decoder conv-transposes: PyTorch ConvTranspose2d layout (Cin, Cout, 4, 4)
        "d1_w": nrm(ks[10], (128, 64, 4, 4)), "d1_b": nrm(ks[11], (64,)),
        "d2_w": nrm(ks[12], (64, 32, 4, 4)),  "d2_b": nrm(ks[13], (32,)),
        "d3_w": nrm(ks[14], (32, 3, 4, 4)),   "d3_b": nrm(ks[15], (3,)),
    }


def _pack_linear(w, b, *, pad_lanes=True):
    """Kernel-ready packing of one GEMM: bf16 weights, f32 (1,Np) bias, with N
    optionally zero-padded to a multiple of 128 (lane-dense output stores)."""
    K, N = w.shape
    Np = _round_up(N, LANE) if pad_lanes else N
    wb = w.astype(COMPUTE_DTYPE)
    bf = b.astype(jnp.float32)
    if Np != N:
        wb = jnp.pad(wb, ((0, 0), (0, Np - N)))
        bf = jnp.pad(bf, ((0, Np - N),))
    return wb, bf.reshape(1, Np)


def prepare_params(p):
    """One-time packing of the PyTorch-layout parameters into kernel-ready
    form (layout transpose, phase decomposition, bf16 cast, lane padding,
    bias tiling).  Call once, outside the jitted forward, so none of this
    re-executes per step.  Returns arrays only (static dims stay Python-side)."""
    prep = {}
    # Encoder Conv2d(k=4): (Cout,Cin,4,4) -> (16*Cin, Cout), rows in im2col order.
    for name in ("e1", "e2", "e3"):
        w = p[name + "_w"]
        cout, cin, k, _ = w.shape
        w2 = w.transpose(2, 3, 1, 0).reshape(k * k * cin, cout)
        prep[name + "_w"], prep[name + "_b"] = _pack_linear(w2, p[name + "_b"])
    # Bottleneck linears: enc Linear's N (=nb) lane-padded; dec Linear's K rows
    # padded to match so the fused kernel can chain lat -> dec directly.
    prep["e4_w"], prep["e4_b"] = _pack_linear(p["e4_w"], p["e4_b"])
    d0w, d0b = _pack_linear(p["d0_w"], p["d0_b"])
    kpad = prep["e4_w"].shape[1]
    if d0w.shape[0] != kpad:
        d0w = jnp.pad(d0w, ((0, kpad - d0w.shape[0]), (0, 0)))
    prep["d0_w"], prep["d0_b"] = d0w, d0b
    # Decoder ConvTranspose2d(4,2,1): (Cin,Cout,4,4) -> (9*Cin, 4*Cout) phase
    # weight + 4x tiled bias.  d3's N=12 is kept exact (no pad-to-128) to avoid
    # ~10.7x output write amplification on the largest-M decoder layer.
    for name, pad_lanes in (("d1", True), ("d2", True), ("d3", False)):
        w2 = _phase_weight(p[name + "_w"])
        b4 = jnp.tile(p[name + "_b"], 4)
        prep[name + "_w"], prep[name + "_b"] = _pack_linear(w2, b4,
                                                            pad_lanes=pad_lanes)
    return prep


# ----------------------------------------------------------------------------
# Forward
# ----------------------------------------------------------------------------
def conv_autoencoder_forward(prep, x, *, bottleneck_dim=64):
    """x: (B, 3, 32, 32) NCHW f32 -> (recon (B,3,32,32) f32, latent (B,nb) f32).
    `prep` comes from prepare_params(); bottleneck_dim must match init."""
    B = x.shape[0]
    # NCHW -> NHWC and f32 -> bf16 exactly once at the boundary.
    h = x.transpose(0, 2, 3, 1).astype(COMPUTE_DTYPE)
    # ---- encoder ----
    h = conv2d_nhwc(h, prep["e1_w"], prep["e1_b"], 32,
                    k=4, stride=2, pad=1, relu=True)                  # (B,16,16,32)
    h = conv2d_nhwc(h, prep["e2_w"], prep["e2_b"], 64,
                    k=4, stride=2, pad=1, relu=True)                  # (B,8,8,64)
    h = conv2d_nhwc(h, prep["e3_w"], prep["e3_b"], 128,
                    k=4, stride=2, pad=1, relu=True)                  # (B,4,4,128)

    # Flatten in PyTorch (C,H,W) order (tiny tensor; negligible transpose).
    h_flat = h.transpose(0, 3, 1, 2).reshape(B, 128 * 4 * 4)

    # Fused enc-Linear + dec-Linear + ReLU.
    latent, d = bottleneck_pallas(h_flat, prep["e4_w"], prep["e4_b"],
                                  prep["d0_w"], prep["d0_b"],
                                  bottleneck_dim)                     # (B,nb), (B,2048)
    d = d.reshape(B, 128, 4, 4).transpose(0, 2, 3, 1)                 # Unflatten -> NHWC

    # ---- decoder ----
    d = conv_transpose2d_nhwc(d, prep["d1_w"], prep["d1_b"], 64, relu=True)   # (B,8,8,64)
    d = conv_transpose2d_nhwc(d, prep["d2_w"], prep["d2_b"], 32, relu=True)   # (B,16,16,32)
    d = conv_transpose2d_nhwc(d, prep["d3_w"], prep["d3_b"], 3, relu=False,
                              out_dtype=jnp.float32)                          # (B,32,32,3) f32
    recon = d.transpose(0, 3, 1, 2)                                   # -> NCHW f32
    return recon, latent


if __name__ == "__main__":
    key = jax.random.PRNGKey(0)
    k_param, k_x = jax.random.split(key)
    params = init_params(k_param, bottleneck_dim=64)
    prep = prepare_params(params)     # one-time weight packing (not per-forward)

    # Three stride-2 convs feeding Linear(128*4*4) imply a 3x32x32 input.
    x = jax.random.normal(k_x, (2, 3, 32, 32), dtype=jnp.float32)

    fwd = jax.jit(conv_autoencoder_forward)
    recon, latent = fwd(prep, x)
    jax.block_until_ready((recon, latent))

    assert recon.shape == (2, 3, 32, 32), recon.shape
    assert latent.shape == (2, 64), latent.shape
    assert recon.dtype == jnp.float32 and latent.dtype == jnp.float32
    assert bool(jnp.all(jnp.isfinite(recon))) and bool(jnp.all(jnp.isfinite(latent)))
    print("KERNEL_OK")
</pallas_src>

<mosaic_0001>
module attributes {stable_mosaic.version = 11 : i64} {
  func.func @_matmul_bias_kernel(%arg0: i32, %arg1: memref<256x48xbf16, #tpu.memory_space<vmem>>, %arg2: memref<48x128xbf16, #tpu.memory_space<vmem>>, %arg3: memref<1x128xf32, #tpu.memory_space<vmem>>, %arg4: memref<256x128xbf16, #tpu.memory_space<vmem>>) attributes {dimension_semantics = [#tpu.dimension_semantics<parallel>], iteration_bounds = array<i64: 2>, scalar_prefetch = 0 : i64, scratch_operands = 0 : i64, tpu.core_type = #tpu.core_type<tc>, window_params = [{transform_indices = @transform_0, window_bounds = array<i64: 256, 48>}, {pipeline_mode = #tpu.pipeline_mode<synchronous>, transform_indices = @transform_1, window_bounds = array<i64: 48, 128>}, {pipeline_mode = #tpu.pipeline_mode<synchronous>, transform_indices = @transform_2, window_bounds = array<i64: 1, 128>}, {transform_indices = @transform_3, window_bounds = array<i64: 256, 128>}]} {
    %c0 = arith.constant 0 : index
    %c0_0 = arith.constant 0 : index
    %0 = vector.load %arg1[%c0, %c0_0] : memref<256x48xbf16, #tpu.memory_space<vmem>>, vector<256x48xbf16>
    %c0_1 = arith.constant 0 : index
    %c0_2 = arith.constant 0 : index
    %1 = vector.load %arg2[%c0_1, %c0_2] : memref<48x128xbf16, #tpu.memory_space<vmem>>, vector<48x128xbf16>
    %cst = arith.constant dense<0.000000e+00> : vector<256x128xf32>
    %2 = tpu.matmul %0, %1, %cst {dimension_numbers = #tpu.dot_dimension_numbers<[1], [0], [0], [1], [0, 0, 1, 1], [], []>} : vector<256x48xbf16>, vector<48x128xbf16>, vector<256x128xf32> -> vector<256x128xf32>
    %c0_3 = arith.constant 0 : index
    %c0_4 = arith.constant 0 : index
    %3 = vector.load %arg3[%c0_3, %c0_4] : memref<1x128xf32, #tpu.memory_space<vmem>>, vector<1x128xf32>
    %4 = vector.broadcast %3 : vector<1x128xf32> to vector<256x128xf32>
    %5 = arith.addf %2, %4 : vector<256x128xf32>
    %cst_5 = arith.constant 0.000000e+00 : f32
    %6 = vector.broadcast %cst_5 : f32 to vector<256x128xf32>
    %7 = arith.maximumf %5, %6 : vector<256x128xf32>
    %8 = arith.truncf %7 : vector<256x128xf32> to vector<256x128xbf16>
    %c0_6 = arith.constant 0 : index
    %c0_7 = arith.constant 0 : index
    %9 = vector.load %arg4[%c0_6, %c0_7] : memref<256x128xbf16, #tpu.memory_space<vmem>>, vector<256x128xbf16>
    tpu.vector_store %arg4[%c0_6, %c0_7], %8 {strides = array<i32>} : memref<256x128xbf16, #tpu.memory_space<vmem>>, vector<256x128xbf16>,
    return
  }
  func.func @transform_0(%arg0: i32) -> (i32, i32) {
    %c0_i32 = arith.constant 0 : i32
    %c0_i32_0 = arith.constant 0 : i32
    return %arg0, %c0_i32 : i32, i32
  }
  func.func @transform_1(%arg0: i32) -> (i32, i32) {
    %c0_i32 = arith.constant 0 : i32
    %c0_i32_0 = arith.constant 0 : i32
    %c0_i32_1 = arith.constant 0 : i32
    return %c0_i32, %c0_i32_0 : i32, i32
  }
  func.func @transform_2(%arg0: i32) -> (i32, i32) {
    %c0_i32 = arith.constant 0 : i32
    %c0_i32_0 = arith.constant 0 : i32
    %c0_i32_1 = arith.constant 0 : i32
    return %c0_i32, %c0_i32_0 : i32, i32
  }
  func.func @transform_3(%arg0: i32) -> (i32, i32) {
    %c0_i32 = arith.constant 0 : i32
    %c0_i32_0 = arith.constant 0 : i32
    return %arg0, %c0_i32 : i32, i32
  }
}

module attributes {stable_mosaic.version = 11 : i64} {
  func.func @_matmul_bias_kernel(%arg0: i32, %arg1: memref<64x512xbf16, #tpu.memory_space<vmem>>, %arg2: memref<512x128xbf16, #tpu.memory_space<vmem>>, %arg3: memref<1x128xf32, #tpu.memory_space<vmem>>, %arg4: memref<64x128xbf16, #tpu.memory_space<vmem>>) attributes {dimension_semantics = [#tpu.dimension_semantics<parallel>], iteration_bounds = array<i64: 2>, scalar_prefetch = 0 : i64, scratch_operands = 0 : i64, tpu.core_type = #tpu.core_type<tc>, window_params = [{transform_indices = @transform_0, window_bounds = array<i64: 64, 512>}, {pipeline_mode = #tpu.pipeline_mode<synchronous>, transform_indices = @transform_1, window_bounds = array<i64: 512, 128>}, {pipeline_mode = #tpu.pipeline_mode<synchronous>, transform_indices = @transform_2, window_bounds = array<i64: 1, 128>}, {transform_indices = @transform_3, window_bounds = array<i64: 64, 128>}]} {
    %c0 = arith.constant 0 : index
    %c0_0 = arith.constant 0 : index
    %0 = vector.load %arg1[%c0, %c0_0] : memref<64x512xbf16, #tpu.memory_space<vmem>>, vector<64x512xbf16>
    %c0_1 = arith.constant 0 : index
    %c0_2 = arith.constant 0 : index
    %1 = vector.load %arg2[%c0_1, %c0_2] : memref<512x128xbf16, #tpu.memory_space<vmem>>, vector<512x128xbf16>
    %cst = arith.constant dense<0.000000e+00> : vector<64x128xf32>
    %2 = tpu.matmul %0, %1, %cst {dimension_numbers = #tpu.dot_dimension_numbers<[1], [0], [0], [1], [0, 0, 1, 1], [], []>} : vector<64x512xbf16>, vector<512x128xbf16>, vector<64x128xf32> -> vector<64x128xf32>
    %c0_3 = arith.constant 0 : index
    %c0_4 = arith.constant 0 : index
    %3 = vector.load %arg3[%c0_3, %c0_4] : memref<1x128xf32, #tpu.memory_space<vmem>>, vector<1x128xf32>
    %4 = vector.broadcast %3 : vector<1x128xf32> to vector<64x128xf32>
    %5 = arith.addf %2, %4 : vector<64x128xf32>
    %cst_5 = arith.constant 0.000000e+00 : f32
    %6 = vector.broadcast %cst_5 : f32 to vector<64x128xf32>
    %7 = arith.maximumf %5, %6 : vector<64x128xf32>
    %8 = arith.truncf %7 : vector<64x128xf32> to vector<64x128xbf16>
    %c0_6 = arith.constant 0 : index
    %c0_7 = arith.constant 0 : index
    %9 = vector.load %arg4[%c0_6, %c0_7] : memref<64x128xbf16, #tpu.memory_space<vmem>>, vector<64x128xbf16>
    tpu.vector_store %arg4[%c0_6, %c0_7], %8 {strides = array<i32>} : memref<64x128xbf16, #tpu.memory_space<vmem>>, vector<64x128xbf16>,
    return
  }
  func.func @transform_0(%arg0: i32) -> (i32, i32) {
    %c0_i32 = arith.constant 0 : i32
    %c0_i32_0 = arith.constant 0 : i32
    return %arg0, %c0_i32 : i32, i32
  }
  func.func @transform_1(%arg0: i32) -> (i32, i32) {
    %c0_i32 = arith.constant 0 : i32
    %c0_i32_0 = arith.constant 0 : i32
    %c0_i32_1 = arith.constant 0 : i32
    return %c0_i32, %c0_i32_0 : i32, i32
  }
  func.func @transform_2(%arg0: i32) -> (i32, i32) {
    %c0_i32 = arith.constant 0 : i32
    %c0_i32_0 = arith.constant 0 : i32
    %c0_i32_1 = arith.constant 0 : i32
    return %c0_i32, %c0_i32_0 : i32, i32
  }
  func.func @transform_3(%arg0: i32) -> (i32, i32) {
    %c0_i32 = arith.constant 0 : i32
    %c0_i32_0 = arith.constant 0 : i32
    return %arg0, %c0_i32 : i32, i32
  }
}

module attributes {stable_mosaic.version = 11 : i64} {
  func.func @_matmul_bias_kernel(%arg0: i32, %arg1: memref<16x1024xbf16, #tpu.memory_space<vmem>>, %arg2: memref<1024x128xbf16, #tpu.memory_space<vmem>>, %arg3: memref<1x128xf32, #tpu.memory_space<vmem>>, %arg4: memref<16x128xbf16, #tpu.memory_space<vmem>>) attributes {dimension_semantics = [#tpu.dimension_semantics<parallel>], iteration_bounds = array<i64: 2>, scalar_prefetch = 0 : i64, scratch_operands = 0 : i64, tpu.core_type = #tpu.core_type<tc>, window_params = [{transform_indices = @transform_0, window_bounds = array<i64: 16, 1024>}, {pipeline_mode = #tpu.pipeline_mode<synchronous>, transform_indices = @transform_1, window_bounds = array<i64: 1024, 128>}, {pipeline_mode = #tpu.pipeline_mode<synchronous>, transform_indices = @transform_2, window_bounds = array<i64: 1, 128>}, {transform_indices = @transform_3, window_bounds = array<i64: 16, 128>}]} {
    %c0 = arith.constant 0 : index
    %c0_0 = arith.constant 0 : index
    %0 = vector.load %arg1[%c0, %c0_0] : memref<16x1024xbf16, #tpu.memory_space<vmem>>, vector<16x1024xbf16>
    %c0_1 = arith.constant 0 : index
    %c0_2 = arith.constant 0 : index
    %1 = vector.load %arg2[%c0_1, %c0_2] : memref<1024x128xbf16, #tpu.memory_space<vmem>>, vector<1024x128xbf16>
    %cst = arith.constant dense<0.000000e+00> : vector<16x128xf32>
    %2 = tpu.matmul %0, %1, %cst {dimension_numbers = #tpu.dot_dimension_numbers<[1], [0], [0], [1], [0, 0, 1, 1], [], []>} : vector<16x1024xbf16>, vector<1024x128xbf16>, vector<16x128xf32> -> vector<16x128xf32>
    %c0_3 = arith.constant 0 : index
    %c0_4 = arith.constant 0 : index
    %3 = vector.load %arg3[%c0_3, %c0_4] : memref<1x128xf32, #tpu.memory_space<vmem>>, vector<1x128xf32>
    %4 = vector.broadcast %3 : vector<1x128xf32> to vector<16x128xf32>
    %5 = arith.addf %2, %4 : vector<16x128xf32>
    %cst_5 = arith.constant 0.000000e+00 : f32
    %6 = vector.broadcast %cst_5 : f32 to vector<16x128xf32>
    %7 = arith.maximumf %5, %6 : vector<16x128xf32>
    %8 = arith.truncf %7 : vector<16x128xf32> to vector<16x128xbf16>
    %c0_6 = arith.constant 0 : index
    %c0_7 = arith.constant 0 : index
    %9 = vector.load %arg4[%c0_6, %c0_7] : memref<16x128xbf16, #tpu.memory_space<vmem>>, vector<16x128xbf16>
    tpu.vector_store %arg4[%c0_6, %c0_7], %8 {strides = array<i32>} : memref<16x128xbf16, #tpu.memory_space<vmem>>, vector<16x128xbf16>,
    return
  }
  func.func @transform_0(%arg0: i32) -> (i32, i32) {
    %c0_i32 = arith.constant 0 : i32
    %c0_i32_0 = arith.constant 0 : i32
    return %arg0, %c0_i32 : i32, i32
  }
  func.func @transform_1(%arg0: i32) -> (i32, i32) {
    %c0_i32 = arith.constant 0 : i32
    %c0_i32_0 = arith.constant 0 : i32
    %c0_i32_1 = arith.constant 0 : i32
    return %c0_i32, %c0_i32_0 : i32, i32
  }
  func.func @transform_2(%arg0: i32) -> (i32, i32) {
    %c0_i32 = arith.constant 0 : i32
    %c0_i32_0 = arith.constant 0 : i32
    %c0_i32_1 = arith.constant 0 : i32
    return %c0_i32, %c0_i32_0 : i32, i32
  }
  func.func @transform_3(%arg0: i32) -> (i32, i32) {
    %c0_i32 = arith.constant 0 : i32
    %c0_i32_0 = arith.constant 0 : i32
    return %arg0, %c0_i32 : i32, i32
  }
}

module attributes {stable_mosaic.version = 11 : i64} {
  func.func @_bottleneck_kernel(%arg0: i32, %arg1: memref<8x2048xbf16, #tpu.memory_space<vmem>>, %arg2: memref<2048x128xbf16, #tpu.memory_space<vmem>>, %arg3: memref<1x128xf32, #tpu.memory_space<vmem>>, %arg4: memref<128x2048xbf16, #tpu.memory_space<vmem>>, %arg5: memref<1x2048xf32, #tpu.memory_space<vmem>>, %arg6: memref<8x128xf32, #tpu.memory_space<vmem>>, %arg7: memref<8x2048xbf16, #tpu.memory_space<vmem>>) attributes {dimension_semantics = [#tpu.dimension_semantics<parallel>], iteration_bounds = array<i64: 1>, scalar_prefetch = 0 : i64, scratch_operands = 0 : i64, tpu.core_type = #tpu.core_type<tc>, window_params = [{transform_indices = @transform_0, window_bounds = array<i64: 8, 2048>}, {pipeline_mode = #tpu.pipeline_mode<synchronous>, transform_indices = @transform_1, window_bounds = array<i64: 2048, 128>}, {pipeline_mode = #tpu.pipeline_mode<synchronous>, transform_indices = @transform_2, window_bounds = array<i64: 1, 128>}, {pipeline_mode = #tpu.pipeline_mode<synchronous>, transform_indices = @transform_3, window_bounds = array<i64: 128, 2048>}, {pipeline_mode = #tpu.pipeline_mode<synchronous>, transform_indices = @transform_4, window_bounds = array<i64: 1, 2048>}, {transform_indices = @transform_5, window_bounds = array<i64: 8, 128>}, {transform_indices = @transform_6, window_bounds = array<i64: 8, 2048>}]} {
    %c0 = arith.constant 0 : index
    %c0_0 = arith.constant 0 : index
    %0 = vector.load %arg1[%c0, %c0_0] : memref<8x2048xbf16, #tpu.memory_space<vmem>>, vector<8x2048xbf16>
    %c0_1 = arith.constant 0 : index
    %c0_2 = arith.constant 0 : index
    %1 = vector.load %arg2[%c0_1, %c0_2] : memref<2048x128xbf16, #tpu.memory_space<vmem>>, vector<2048x128xbf16>
    %cst = arith.constant dense<0.000000e+00> : vector<8x128xf32>
    %2 = tpu.matmul %0, %1, %cst {dimension_numbers = #tpu.dot_dimension_numbers<[1], [0], [0], [1], [0, 0, 1, 1], [], []>} : vector<8x2048xbf16>, vector<2048x128xbf16>, vector<8x128xf32> -> vector<8x128xf32>
    %c0_3 = arith.constant 0 : index
    %c0_4 = arith.constant 0 : index
    %3 = vector.load %arg3[%c0_3, %c0_4] : memref<1x128xf32, #tpu.memory_space<vmem>>, vector<1x128xf32>
    %4 = vector.broadcast %3 : vector<1x128xf32> to vector<8x128xf32>
    %5 = arith.addf %2, %4 : vector<8x128xf32>
    %c0_5 = arith.constant 0 : index
    %c0_6 = arith.constant 0 : index
    %6 = vector.load %arg6[%c0_5, %c0_6] : memref<8x128xf32, #tpu.memory_space<vmem>>, vector<8x128xf32>
    tpu.vector_store %arg6[%c0_5, %c0_6], %5 {strides = array<i32>} : memref<8x128xf32, #tpu.memory_space<vmem>>, vector<8x128xf32>,
    %c0_7 = arith.constant 0 : index
    %c0_8 = arith.constant 0 : index
    %7 = vector.load %arg6[%c0_7, %c0_8] : memref<8x128xf32, #tpu.memory_space<vmem>>, vector<8x128xf32>
    %8 = arith.truncf %7 : vector<8x128xf32> to vector<8x128xbf16>
    %c0_9 = arith.constant 0 : index
    %c0_10 = arith.constant 0 : index
    %9 = vector.load %arg4[%c0_9, %c0_10] : memref<128x2048xbf16, #tpu.memory_space<vmem>>, vector<128x2048xbf16>
    %cst_11 = arith.constant dense<0.000000e+00> : vector<8x2048xf32>
    %10 = tpu.matmul %8, %9, %cst_11 {dimension_numbers = #tpu.dot_dimension_numbers<[1], [0], [0], [1], [0, 0, 1, 1], [], []>} : vector<8x128xbf16>, vector<128x2048xbf16>, vector<8x2048xf32> -> vector<8x2048xf32>
    %c0_12 = arith.constant 0 : index
    %c0_13 = arith.constant 0 : index
    %11 = vector.load %arg5[%c0_12, %c0_13] : memref<1x2048xf32, #tpu.memory_space<vmem>>, vector<1x2048xf32>
    %12 = vector.broadcast %11 : vector<1x2048xf32> to vector<8x2048xf32>
    %13 = arith.addf %10, %12 : vector<8x2048xf32>
    %cst_14 = arith.constant 0.000000e+00 : f32
    %14 = vector.broadcast %cst_14 : f32 to vector<8x2048xf32>
    %15 = arith.maximumf %13, %14 : vector<8x2048xf32>
    %16 = arith.truncf %15 : vector<8x2048xf32> to vector<8x2048xbf16>
    %c0_15 = arith.constant 0 : index
    %c0_16 = arith.constant 0 : index
    %17 = vector.load %arg7[%c0_15, %c0_16] : memref<8x2048xbf16, #tpu.memory_space<vmem>>, vector<8x2048xbf16>
    tpu.vector_store %arg7[%c0_15, %c0_16], %16 {strides = array<i32>} : memref<8x2048xbf16, #tpu.memory_space<vmem>>, vector<8x2048xbf16>,
    return
  }
  func.func @transform_0(%arg0: i32) -> (i32, i32) {
    %c0_i32 = arith.constant 0 : i32
    %c0_i32_0 = arith.constant 0 : i32
    return %arg0, %c0_i32 : i32, i32
  }
  func.func @transform_1(%arg0: i32) -> (i32, i32) {
    %c0_i32 = arith.constant 0 : i32
    %c0_i32_0 = arith.constant 0 : i32
    %c0_i32_1 = arith.constant 0 : i32
    return %c0_i32, %c0_i32_0 : i32, i32
  }
  func.func @transform_2(%arg0: i32) -> (i32, i32) {
    %c0_i32 = arith.constant 0 : i32
    %c0_i32_0 = arith.constant 0 : i32
    %c0_i32_1 = arith.constant 0 : i32
    return %c0_i32, %c0_i32_0 : i32, i32
  }
  func.func @transform_3(%arg0: i32) -> (i32, i32) {
    %c0_i32 = arith.constant 0 : i32
    %c0_i32_0 = arith.constant 0 : i32
    %c0_i32_1 = arith.constant 0 : i32
    return %c0_i32, %c0_i32_0 : i32, i32
  }
  func.func @transform_4(%arg0: i32) -> (i32, i32) {
    %c0_i32 = arith.constant 0 : i32
    %c0_i32_0 = arith.constant 0 : i32
    %c0_i32_1 = arith.constant 0 : i32
    return %c0_i32, %c0_i32_0 : i32, i32
  }
  func.func @transform_5(%arg0: i32) -> (i32, i32) {
    %c0_i32 = arith.constant 0 : i32
    %c0_i32_0 = arith.constant 0 : i32
    return %arg0, %c0_i32 : i32, i32
  }
  func.func @transform_6(%arg0: i32) -> (i32, i32) {
    %c0_i32 = arith.constant 0 : i32
    %c0_i32_0 = arith.constant 0 : i32
    return %arg0, %c0_i32 : i32, i32
  }
}

module attributes {stable_mosaic.version = 11 : i64} {
  func.func @_matmul_bias_kernel(%arg0: i32, %arg1: memref<16x1152xbf16, #tpu.memory_space<vmem>>, %arg2: memref<1152x256xbf16, #tpu.memory_space<vmem>>, %arg3: memref<1x256xf32, #tpu.memory_space<vmem>>, %arg4: memref<16x256xbf16, #tpu.memory_space<vmem>>) attributes {dimension_semantics = [#tpu.dimension_semantics<parallel>], iteration_bounds = array<i64: 2>, scalar_prefetch = 0 : i64, scratch_operands = 0 : i64, tpu.core_type = #tpu.core_type<tc>, window_params = [{transform_indices = @transform_0, window_bounds = array<i64: 16, 1152>}, {pipeline_mode = #tpu.pipeline_mode<synchronous>, transform_indices = @transform_1, window_bounds = array<i64: 1152, 256>}, {pipeline_mode = #tpu.pipeline_mode<synchronous>, transform_indices = @transform_2, window_bounds = array<i64: 1, 256>}, {transform_indices = @transform_3, window_bounds = array<i64: 16, 256>}]} {
    %c0 = arith.constant 0 : index
    %c0_0 = arith.constant 0 : index
    %0 = vector.load %arg1[%c0, %c0_0] : memref<16x1152xbf16, #tpu.memory_space<vmem>>, vector<16x1152xbf16>
    %c0_1 = arith.constant 0 : index
    %c0_2 = arith.constant 0 : index
    %1 = vector.load %arg2[%c0_1, %c0_2] : memref<1152x256xbf16, #tpu.memory_space<vmem>>, vector<1152x256xbf16>
    %cst = arith.constant dense<0.000000e+00> : vector<16x256xf32>
    %2 = tpu.matmul %0, %1, %cst {dimension_numbers = #tpu.dot_dimension_numbers<[1], [0], [0], [1], [0, 0, 1, 1], [], []>} : vector<16x1152xbf16>, vector<1152x256xbf16>, vector<16x256xf32> -> vector<16x256xf32>
    %c0_3 = arith.constant 0 : index
    %c0_4 = arith.constant 0 : index
    %3 = vector.load %arg3[%c0_3, %c0_4] : memref<1x256xf32, #tpu.memory_space<vmem>>, vector<1x256xf32>
    %4 = vector.broadcast %3 : vector<1x256xf32> to vector<16x256xf32>
    %5 = arith.addf %2, %4 : vector<16x256xf32>
    %cst_5 = arith.constant 0.000000e+00 : f32
    %6 = vector.broadcast %cst_5 : f32 to vector<16x256xf32>
    %7 = arith.maximumf %5, %6 : vector<16x256xf32>
    %8 = arith.truncf %7 : vector<16x256xf32> to vector<16x256xbf16>
    %c0_6 = arith.constant 0 : index
    %c0_7 = arith.constant 0 : index
    %9 = vector.load %arg4[%c0_6, %c0_7] : memref<16x256xbf16, #tpu.memory_space<vmem>>, vector<16x256xbf16>
    tpu.vector_store %arg4[%c0_6, %c0_7], %8 {strides = array<i32>} : memref<16x256xbf16, #tpu.memory_space<vmem>>, vector<16x256xbf16>,
    return
  }
  func.func @transform_0(%arg0: i32) -> (i32, i32) {
    %c0_i32 = arith.constant 0 : i32
    %c0_i32_0 = arith.constant 0 : i32
    return %arg0, %c0_i32 : i32, i32
  }
  func.func @transform_1(%arg0: i32) -> (i32, i32) {
    %c0_i32 = arith.constant 0 : i32
    %c0_i32_0 = arith.constant 0 : i32
    %c0_i32_1 = arith.constant 0 : i32
    return %c0_i32, %c0_i32_0 : i32, i32
  }
  func.func @transform_2(%arg0: i32) -> (i32, i32) {
    %c0_i32 = arith.constant 0 : i32
    %c0_i32_0 = arith.constant 0 : i32
    %c0_i32_1 = arith.constant 0 : i32
    return %c0_i32, %c0_i32_0 : i32, i32
  }
  func.func @transform_3(%arg0: i32) -> (i32, i32) {
    %c0_i32 = arith.constant 0 : i32
    %c0_i32_0 = arith.constant 0 : i32
    return %arg0, %c0_i32 : i32, i32
  }
}

module attributes {stable_mosaic.version = 11 : i64} {
  func.func @_matmul_bias_kernel(%arg0: i32, %arg1: memref<64x576xbf16, #tpu.memory_space<vmem>>, %arg2: memref<576x128xbf16, #tpu.memory_space<vmem>>, %arg3: memref<1x128xf32, #tpu.memory_space<vmem>>, %arg4: memref<64x128xbf16, #tpu.memory_space<vmem>>) attributes {dimension_semantics = [#tpu.dimension_semantics<parallel>], iteration_bounds = array<i64: 2>, scalar_prefetch = 0 : i64, scratch_operands = 0 : i64, tpu.core_type = #tpu.core_type<tc>, window_params = [{transform_indices = @transform_0, window_bounds = array<i64: 64, 576>}, {pipeline_mode = #tpu.pipeline_mode<synchronous>, transform_indices = @transform_1, window_bounds = array<i64: 576, 128>}, {pipeline_mode = #tpu.pipeline_mode<synchronous>, transform_indices = @transform_2, window_bounds = array<i64: 1, 128>}, {transform_indices = @transform_3, window_bounds = array<i64: 64, 128>}]} {
    %c0 = arith.constant 0 : index
    %c0_0 = arith.constant 0 : index
    %0 = vector.load %arg1[%c0, %c0_0] : memref<64x576xbf16, #tpu.memory_space<vmem>>, vector<64x576xbf16>
    %c0_1 = arith.constant 0 : index
    %c0_2 = arith.constant 0 : index
    %1 = vector.load %arg2[%c0_1, %c0_2] : memref<576x128xbf16, #tpu.memory_space<vmem>>, vector<576x128xbf16>
    %cst = arith.constant dense<0.000000e+00> : vector<64x128xf32>
    %2 = tpu.matmul %0, %1, %cst {dimension_numbers = #tpu.dot_dimension_numbers<[1], [0], [0], [1], [0, 0, 1, 1], [], []>} : vector<64x576xbf16>, vector<576x128xbf16>, vector<64x128xf32> -> vector<64x128xf32>
    %c0_3 = arith.constant 0 : index
    %c0_4 = arith.constant 0 : index
    %3 = vector.load %arg3[%c0_3, %c0_4] : memref<1x128xf32, #tpu.memory_space<vmem>>, vector<1x128xf32>
    %4 = vector.broadcast %3 : vector<1x128xf32> to vector<64x128xf32>
    %5 = arith.addf %2, %4 : vector<64x128xf32>
    %cst_5 = arith.constant 0.000000e+00 : f32
    %6 = vector.broadcast %cst_5 : f32 to vector<64x128xf32>
    %7 = arith.maximumf %5, %6 : vector<64x128xf32>
    %8 = arith.truncf %7 : vector<64x128xf32> to vector<64x128xbf16>
    %c0_6 = arith.constant 0 : index
    %c0_7 = arith.constant 0 : index
    %9 = vector.load %arg4[%c0_6, %c0_7] : memref<64x128xbf16, #tpu.memory_space<vmem>>, vector<64x128xbf16>
    tpu.vector_store %arg4[%c0_6, %c0_7], %8 {strides = array<i32>} : memref<64x128xbf16, #tpu.memory_space<vmem>>, vector<64x128xbf16>,
    return
  }
  func.func @transform_0(%arg0: i32) -> (i32, i32) {
    %c0_i32 = arith.constant 0 : i32
    %c0_i32_0 = arith.constant 0 : i32
    return %arg0, %c0_i32 : i32, i32
  }
  func.func @transform_1(%arg0: i32) -> (i32, i32) {
    %c0_i32 = arith.constant 0 : i32
    %c0_i32_0 = arith.constant 0 : i32
    %c0_i32_1 = arith.constant 0 : i32
    return %c0_i32, %c0_i32_0 : i32, i32
  }
  func.func @transform_2(%arg0: i32) -> (i32, i32) {
    %c0_i32 = arith.constant 0 : i32
    %c0_i32_0 = arith.constant 0 : i32
    %c0_i32_1 = arith.constant 0 : i32
    return %c0_i32, %c0_i32_0 : i32, i32
  }
  func.func @transform_3(%arg0: i32) -> (i32, i32) {
    %c0_i32 = arith.constant 0 : i32
    %c0_i32_0 = arith.constant 0 : i32
    return %arg0, %c0_i32 : i32, i32
  }
}

module attributes {stable_mosaic.version = 11 : i64} {
  func.func @_matmul_bias_kernel(%arg0: i32, %arg1: memref<256x288xbf16, #tpu.memory_space<vmem>>, %arg2: memref<288x12xbf16, #tpu.memory_space<vmem>>, %arg3: memref<1x12xf32, #tpu.memory_space<vmem>>, %arg4: memref<256x12xf32, #tpu.memory_space<vmem>>) attributes {dimension_semantics = [#tpu.dimension_semantics<parallel>], iteration_bounds = array<i64: 2>, scalar_prefetch = 0 : i64, scratch_operands = 0 : i64, tpu.core_type = #tpu.core_type<tc>, window_params = [{transform_indices = @transform_0, window_bounds = array<i64: 256, 288>}, {pipeline_mode = #tpu.pipeline_mode<synchronous>, transform_indices = @transform_1, window_bounds = array<i64: 288, 12>}, {pipeline_mode = #tpu.pipeline_mode<synchronous>, transform_indices = @transform_2, window_bounds = array<i64: 1, 12>}, {transform_indices = @transform_3, window_bounds = array<i64: 256, 12>}]} {
    %c0 = arith.constant 0 : index
    %c0_0 = arith.constant 0 : index
    %0 = vector.load %arg1[%c0, %c0_0] : memref<256x288xbf16, #tpu.memory_space<vmem>>, vector<256x288xbf16>
    %c0_1 = arith.constant 0 : index
    %c0_2 = arith.constant 0 : index
    %1 = vector.load %arg2[%c0_1, %c0_2] : memref<288x12xbf16, #tpu.memory_space<vmem>>, vector<288x12xbf16>
    %cst = arith.constant dense<0.000000e+00> : vector<256x12xf32>
    %2 = tpu.matmul %0, %1, %cst {dimension_numbers = #tpu.dot_dimension_numbers<[1], [0], [0], [1], [0, 0, 1, 1], [], []>} : vector<256x288xbf16>, vector<288x12xbf16>, vector<256x12xf32> -> vector<256x12xf32>
    %c0_3 = arith.constant 0 : index
    %c0_4 = arith.constant 0 : index
    %3 = vector.load %arg3[%c0_3, %c0_4] : memref<1x12xf32, #tpu.memory_space<vmem>>, vector<1x12xf32>
    %4 = vector.broadcast %3 : vector<1x12xf32> to vector<256x12xf32>
    %5 = arith.addf %2, %4 : vector<256x12xf32>
    %c0_5 = arith.constant 0 : index
    %c0_6 = arith.constant 0 : index
    %6 = vector.load %arg4[%c0_5, %c0_6] : memref<256x12xf32, #tpu.memory_space<vmem>>, vector<256x12xf32>
    tpu.vector_store %arg4[%c0_5, %c0_6], %5 {strides = array<i32>} : memref<256x12xf32, #tpu.memory_space<vmem>>, vector<256x12xf32>,
    return
  }
  func.func @transform_0(%arg0: i32) -> (i32, i32) {
    %c0_i32 = arith.constant 0 : i32
    %c0_i32_0 = arith.constant 0 : i32
    return %arg0, %c0_i32 : i32, i32
  }
  func.func @transform_1(%arg0: i32) -> (i32, i32) {
    %c0_i32 = arith.constant 0 : i32
    %c0_i32_0 = arith.constant 0 : i32
    %c0_i32_1 = arith.constant 0 : i32
    return %c0_i32, %c0_i32_0 : i32, i32
  }
  func.func @transform_2(%arg0: i32) -> (i32, i32) {
    %c0_i32 = arith.constant 0 : i32
    %c0_i32_0 = arith.constant 0 : i32
    %c0_i32_1 = arith.constant 0 : i32
    return %c0_i32, %c0_i32_0 : i32, i32
  }
  func.func @transform_3(%arg0: i32) -> (i32, i32) {
    %c0_i32 = arith.constant 0 : i32
    %c0_i32_0 = arith.constant 0 : i32
    return %arg0, %c0_i32 : i32, i32
  }
}

</mosaic_0001>

<bundles_post_ra>
// kernel: conv_autoencoder_forward.7
= control target key start
LH: loop header
LB: loop body
LE: loop exit
PB: predicated region body
PF: predicated region fallthrough
CT: control target
= control target key end

     0   :  { %s1100_s12 = smov 0   ;;  %s1222_s0 = inlined_call_operand.vmem [shape: bf16[512,48], index: 0, kind: input, shape index: {}]   ;;  %s1223_s1 = inlined_call_operand.vmem [shape: bf16[48,128], index: 1, kind: input, shape index: {}]   ;;  %s1224_s2 = inlined_call_operand.vmem [shape: f32[1,128], index: 2, kind: input, shape index: {}]   ;;  %s1225_s3 = inlined_call_operand.vmem [shape: bf16[512,128], index: 3, kind: output, shape index: {}]  }
   0x1 LB: > { %s776_s13 = sadd.s32 4294967295, %s1078_s12   ;;  %p780_p0 = scmp.ge.s32.totalorder %s1078_s12, 1  ;;  %s1078_s12 = sphi %s1100_s12, %s13_s12  }
   0x2   : > { %p138_p1 = scmp.lt.s32.totalorder %s1078_s12, 3 }
   0x4   : > { %p139_p2 = pnand %p780_p0, %p138_p1 }
   0x5   : > { %s781_s16 = sshll.u32 (!%p139_p2), %s776_s13, 5 }
   0x6   : > { %142 = sbr.rel (%p139_p2) target bundleno = 254 (0xfe), region = 32  ;;  %p163_p3 = scmp.lt.s32.totalorder (!%p139_p2), %s781_s16, 63 }
   0xb   : > { %v1053_v0 = vld [vmem:[%s1223_s1 + $0x10] sm:$0xff]   ;;  %v1054_v1 = vld [vmem:[%s1223_s1 + $0x8] sm:$0xff]   ;;  %s1227_s16 = smov (!%p163_p3, %s781_s16), 63  ;;  %v1055_v2 = vld [vmem:[%s1223_s1] sm:$0xff]   ;;  %vm318_vm0 = vcmask 392192  }
   0xc   : > { %1001 = vmatprep.subr.bf16.mxu0 %v1053_v0  ;;  %1039 = vmatprep.subr.bf16.mxu1 %v1053_v0  ;;  %s782_s21 = sshll.u32 %s1227_s16, 2  ;;  %v1162_v19 = vld [vmem:[%s1224_s2] ss:$0 sm:$0xff] }
   0xd   : > { %1002 = vmatpush3.bf16.msra.mxu0 %v1053_v0  ;;  %1042 = vmatpush3.bf16.msra.mxu1 %v1053_v0  ;;  %s1125_s24 = scalar_lea.vmem %s1222_s0, %s782_s21  ;;  %s1177_s29 = scalar_lea.vmem %s1225_s3, %s782_s21 }
   0xe   : > { %1003 = vmatprep.subr.bf16.mxu0 %v1054_v1  ;;  %1040 = vmatprep.subr.bf16.mxu1 %v1054_v1  ;;  %v1056_v3 = vld [vmem:[%s1125_s24] sm:$0xff]   ;;  %v1058_v5 = vld [vmem:[%s1125_s24 + $0x8] sm:$0xff]   ;;  %v1060_v7 = vld [vmem:[%s1125_s24 + $0x10] sm:$0xff]  }
   0xf   : > { %v1057_v4 = vld [vmem:[%s1125_s24 + $0x40] sm:$0xff]   ;;  %1007 = vmatprep.mubr.msk.bf16.mxu0 %vm318_vm0, %v1056_v3  ;;  %v1059_v6 = vld [vmem:[%s1125_s24 + $0x48] sm:$0xff]   ;;  %v1061_v8 = vld [vmem:[%s1125_s24 + $0x50] sm:$0xff]  }
  0x10   : > { %1023 = vmatprep.mubr.msk.bf16.mxu1 %vm318_vm0, %v1057_v4  ;;  %v1062_v9 = vld [vmem:[%s1125_s24 + $0x18] sm:$0xff]   ;;  %v1064_v11 = vld [vmem:[%s1125_s24 + $0x20] sm:$0xff]   ;;  %v1066_v13 = vld [vmem:[%s1125_s24 + $0x28] sm:$0xff]  }
  0x11   : > { %1004 = vmatpush3.bf16.msra.mxu0 %v1054_v1  ;;  %1043 = vmatpush3.bf16.msra.mxu1 %v1054_v1  ;;  %v1063_v10 = vld [vmem:[%s1125_s24 + $0x58] sm:$0xff]   ;;  %v1065_v12 = vld [vmem:[%s1125_s24 + $0x60] sm:$0xff]   ;;  %v1067_v14 = vld [vmem:[%s1125_s24 + $0x68] sm:$0xff]  }
  0x12   : > { %1005 = vmatprep.subr.bf16.mxu0 %v1055_v2  ;;  %1041 = vmatprep.subr.bf16.mxu1 %v1055_v2  ;;  %v1068_v15 = vld [vmem:[%s1125_s24 + $0x30] sm:$0xff]   ;;  %v1070_v17 = vld [vmem:[%s1125_s24 + $0x38] sm:$0xff]  }
  0x13   : > { %v1069_v16 = vld [vmem:[%s1125_s24 + $0x70] sm:$0xff]   ;;  %v1071_v18 = vld [vmem:[%s1125_s24 + $0x78] sm:$0xff]  }
  0x15   : > { %1006 = vmatpush3.bf16.msra.mxu0 %v1055_v2  ;;  %1044 = vmatpush3.bf16.msra.mxu1 %v1055_v2 }
  0x18   : > { %1008 = vmatmul.mubr.msk.bf16.vlgmr.msra.gmra.mxu0 %vm318_vm0, %v1058_v5  ;;  %1024 = vmatmul.mubr.msk.bf16.vlgmr.msra.gmra.mxu1 %vm318_vm0, %v1059_v6 }
  0x19   : > { %1011 = vmatprep.mubr.msk.bf16.mxu0 %vm318_vm0, %v1060_v7  ;;  %1027 = vmatprep.mubr.msk.bf16.mxu1 %vm318_vm0, %v1061_v8 }
  0x20   : > { %1012 = vmatmul.mubr.msk.bf16.gmra.mxu0 %vm318_vm0, %v1062_v9  ;;  %1028 = vmatmul.mubr.msk.bf16.gmra.mxu1 %vm318_vm0, %v1063_v10 }
  0x21   : > { %1015 = vmatprep.mubr.msk.bf16.mxu0 %vm318_vm0, %v1064_v11  ;;  %1031 = vmatprep.mubr.msk.bf16.mxu1 %vm318_vm0, %v1065_v12 }
  0x28   : > { %1016 = vmatmul.mubr.msk.bf16.gmra.mxu0 %vm318_vm0, %v1066_v13  ;;  %1032 = vmatmul.mubr.msk.bf16.gmra.mxu1 %vm318_vm0, %v1067_v14 }
  0x29   : > { %1019 = vmatprep.mubr.msk.bf16.mxu0 %vm318_vm0, %v1068_v15  ;;  %1035 = vmatprep.mubr.msk.bf16.mxu1 %vm318_vm0, %v1069_v16 }
  0x30   : > { %1020 = vmatmul.mubr.msk.bf16.gmra.mxu0 %vm318_vm0, %v1070_v17  ;;  %1036 = vmatmul.mubr.msk.bf16.gmra.mxu1 %vm318_vm0, %v1071_v18 }
  0xd8   : > { %v1009_v20 = vpop.f32.mrf.mxu0  ;;  %v1025_v21 = vpop.f32.mrf.mxu1 }
  0xd9   : > { %v410_v22 = vadd.f32 %v1009_v20, %v1162_v19  ;;  %v474_v23 = vadd.f32 %v1025_v21, %v1162_v19 }
  0xda   : > { %v401_v24 = vpop.f32.mrf.mxu0  ;;  %v465_v25 = vpop.f32.mrf.mxu1 }
  0xdb   : > { %v402_v26 = vadd.f32 %v1162_v19, %v401_v24  ;;  %v466_v27 = vadd.f32 %v1162_v19, %v465_v25  ;;  %v530_v32 = vmax.f32 %v410_v22, 0.0  ;;  %v546_v33 = vmax.f32 %v474_v23, 0.0 }
  0xdc   : > { %v1010_v28 = vpop.f32.mrf.mxu0  ;;  %v1026_v29 = vpop.f32.mrf.mxu1 }
  0xdd   : > { %v413_v30 = vadd.f32 %v1010_v28, %v1162_v19  ;;  %v477_v31 = vadd.f32 %v1026_v29, %v1162_v19  ;;  %v528_v40 = vmax.f32 %v402_v26, 0.0  ;;  %v544_v41 = vmax.f32 %v466_v27, 0.0 }
  0xde   : > { %v404_v34 = vpop.f32.mrf.mxu0  ;;  %v468_v35 = vpop.f32.mrf.mxu1 }
  0xdf   : > { %v531_v36 = vmax.f32 %v413_v30, 0.0  ;;  %v547_v37 = vmax.f32 %v477_v31, 0.0  ;;  %v405_v38 = vadd.f32 %v1162_v19, %v404_v34  ;;  %v469_v39 = vadd.f32 %v1162_v19, %v468_v35 }
  0xe0   : > { %v1013_v42 = vpop.f32.mrf.mxu0  ;;  %v1029_v43 = vpop.f32.mrf.mxu1 }
  0xe1   : > { %v895_v44 = vpack.c.bf16 %v531_v36, %v530_v32  ;;  %v935_v45 = vpack.c.bf16 %v547_v37, %v546_v33  ;;  %v529_v46 = vmax.f32 %v405_v38, 0.0  ;;  %v545_v47 = vmax.f32 %v469_v39, 0.0 }
  0xe2   : > { %v426_v48 = vadd.f32 %v1013_v42, %v1162_v19  ;;  %v490_v49 = vadd.f32 %v1029_v43, %v1162_v19  ;;  %v417_v50 = vpop.f32.mrf.mxu0  ;;  %v481_v51 = vpop.f32.mrf.mxu1 }
  0xe3   : > { %967 = vst [vmem:[%s1177_s29 + $0x8] sm:$0xff] %v895_v44   ;;  %975 = vst [vmem:[%s1177_s29 + $0x48] sm:$0xff] %v935_v45   ;;  %v890_v52 = vpack.c.bf16 %v529_v46, %v528_v40  ;;  %v930_v53 = vpack.c.bf16 %v545_v47, %v544_v41  ;;  %v418_v54 = vadd.f32 %v1162_v19, %v417_v50 }
  0xe4   : > { %v482_v55 = vadd.f32 %v1162_v19, %v481_v51  ;;  %v1014_v56 = vpop.f32.mrf.mxu0  ;;  %v1030_v57 = vpop.f32.mrf.mxu1  ;;  %v534_v60 = vmax.f32 %v426_v48, 0.0  ;;  %v550_v61 = vmax.f32 %v490_v49, 0.0 }
  0xe5   : > { %891 = vst [vmem:[%s1177_s29] sm:$0xff] %v890_v52   ;;  %974 = vst [vmem:[%s1177_s29 + $0x40] sm:$0xff] %v930_v53   ;;  %v429_v58 = vadd.f32 %v1014_v56, %v1162_v19  ;;  %v493_v59 = vadd.f32 %v1030_v57, %v1162_v19  ;;  %v532_v4 = vmax.f32 %v418_v54, 0.0 }
  0xe6   : > { %v420_v62 = vpop.f32.mrf.mxu0  ;;  %v484_v63 = vpop.f32.mrf.mxu1  ;;  %v548_v5 = vmax.f32 %v482_v55, 0.0 }
  0xe7   : > { %v535_v0 = vmax.f32 %v429_v58, 0.0  ;;  %v551_v1 = vmax.f32 %v493_v59, 0.0  ;;  %v421_v2 = vadd.f32 %v1162_v19, %v420_v62  ;;  %v485_v3 = vadd.f32 %v1162_v19, %v484_v63 }
  0xe8   : > { %v1017_v6 = vpop.f32.mrf.mxu0  ;;  %v1033_v7 = vpop.f32.mrf.mxu1 }
  0xe9   : > { %v905_v8 = vpack.c.bf16 %v535_v0, %v534_v60  ;;  %v945_v9 = vpack.c.bf16 %v551_v1, %v550_v61  ;;  %v533_v10 = vmax.f32 %v421_v2, 0.0  ;;  %v549_v11 = vmax.f32 %v485_v3, 0.0 }
  0xea   : > { %v442_v12 = vadd.f32 %v1017_v6, %v1162_v19  ;;  %v506_v13 = vadd.f32 %v1033_v7, %v1162_v19  ;;  %v433_v14 = vpop.f32.mrf.mxu0  ;;  %v497_v15 = vpop.f32.mrf.mxu1 }
  0xeb   : > { %969 = vst [vmem:[%s1177_s29 + $0x18] sm:$0xff] %v905_v8   ;;  %977 = vst [vmem:[%s1177_s29 + $0x58] sm:$0xff] %v945_v9   ;;  %v900_v16 = vpack.c.bf16 %v533_v10, %v532_v4  ;;  %v940_v17 = vpack.c.bf16 %v549_v11, %v548_v5  ;;  %v434_v18 = vadd.f32 %v1162_v19, %v433_v14 }
  0xec   : > { %v498_v20 = vadd.f32 %v1162_v19, %v497_v15  ;;  %v1018_v21 = vpop.f32.mrf.mxu0  ;;  %v1034_v22 = vpop.f32.mrf.mxu1  ;;  %v538_v25 = vmax.f32 %v442_v12, 0.0  ;;  %v554_v26 = vmax.f32 %v506_v13, 0.0 }
  0xed   : > { %968 = vst [vmem:[%s1177_s29 + $0x10] sm:$0xff] %v900_v16   ;;  %976 = vst [vmem:[%s1177_s29 + $0x50] sm:$0xff] %v940_v17   ;;  %v445_v23 = vadd.f32 %v1018_v21, %v1162_v19  ;;  %v509_v24 = vadd.f32 %v1034_v22, %v1162_v19  ;;  %v536_v33 = vmax.f32 %v434_v18, 0.0 }
  0xee   : > { %v436_v27 = vpop.f32.mrf.mxu0  ;;  %v500_v28 = vpop.f32.mrf.mxu1  ;;  %v552_v34 = vmax.f32 %v498_v20, 0.0 }
  0xef   : > { %v539_v29 = vmax.f32 %v445_v23, 0.0  ;;  %v555_v30 = vmax.f32 %v509_v24, 0.0  ;;  %v437_v31 = vadd.f32 %v1162_v19, %v436_v27  ;;  %v501_v32 = vadd.f32 %v1162_v19, %v500_v28 }
  0xf0   : > { %v1021_v35 = vpop.f32.mrf.mxu0  ;;  %v1037_v36 = vpop.f32.mrf.mxu1 }
  0xf1   : > { %v915_v37 = vpack.c.bf16 %v539_v29, %v538_v25  ;;  %v955_v38 = vpack.c.bf16 %v555_v30, %v554_v26  ;;  %v537_v39 = vmax.f32 %v437_v31, 0.0  ;;  %v553_v40 = vmax.f32 %v501_v32, 0.0 }
  0xf2   : > { %v458_v41 = vadd.f32 %v1021_v35, %v1162_v19  ;;  %v522_v42 = vadd.f32 %v1037_v36, %v1162_v19  ;;  %v449_v43 = vpop.f32.mrf.mxu0  ;;  %v513_v44 = vpop.f32.mrf.mxu1 }
  0xf3   : > { %971 = vst [vmem:[%s1177_s29 + $0x28] sm:$0xff] %v915_v37   ;;  %979 = vst [vmem:[%s1177_s29 + $0x68] sm:$0xff] %v955_v38   ;;  %v910_v45 = vpack.c.bf16 %v537_v39, %v536_v33  ;;  %v950_v46 = vpack.c.bf16 %v553_v40, %v552_v34  ;;  %v450_v47 = vadd.f32 %v1162_v19, %v449_v43 }
  0xf4   : > { %v514_v48 = vadd.f32 %v1162_v19, %v513_v44  ;;  %v1022_v49 = vpop.f32.mrf.mxu0  ;;  %v1038_v50 = vpop.f32.mrf.mxu1  ;;  %v542_v53 = vmax.f32 %v458_v41, 0.0  ;;  %v558_v54 = vmax.f32 %v522_v42, 0.0 }
  0xf5   : > { %970 = vst [vmem:[%s1177_s29 + $0x20] sm:$0xff] %v910_v45   ;;  %978 = vst [vmem:[%s1177_s29 + $0x60] sm:$0xff] %v950_v46   ;;  %v461_v51 = vadd.f32 %v1022_v49, %v1162_v19  ;;  %v525_v52 = vadd.f32 %v1038_v50, %v1162_v19  ;;  %v540_v61 = vmax.f32 %v450_v47, 0.0 }
  0xf6   : > { %v452_v55 = vpop.f32.mrf.mxu0  ;;  %v516_v56 = vpop.f32.mrf.mxu1  ;;  %v556_v62 = vmax.f32 %v514_v48, 0.0 }
  0xf7   : > { %v543_v57 = vmax.f32 %v461_v51, 0.0  ;;  %v559_v58 = vmax.f32 %v525_v52, 0.0  ;;  %v453_v59 = vadd.f32 %v1162_v19, %v452_v55  ;;  %v517_v60 = vadd.f32 %v1162_v19, %v516_v56 }
  0xf9   : > { %v925_v63 = vpack.c.bf16 %v543_v57, %v542_v53  ;;  %v965_v0 = vpack.c.bf16 %v559_v58, %v558_v54  ;;  %v541_v1 = vmax.f32 %v453_v59, 0.0  ;;  %v557_v2 = vmax.f32 %v517_v60, 0.0 }
  0xfb   : > { %973 = vst [vmem:[%s1177_s29 + $0x38] sm:$0xff] %v925_v63   ;;  %981 = vst [vmem:[%s1177_s29 + $0x78] sm:$0xff] %v965_v0   ;;  %v920_v3 = vpack.c.bf16 %v541_v1, %v540_v61  ;;  %v960_v4 = vpack.c.bf16 %v557_v2, %v556_v62 }
  0xfd   : > { %972 = vst [vmem:[%s1177_s29 + $0x30] sm:$0xff] %v920_v3   ;;  %980 = vst [vmem:[%s1177_s29 + $0x70] sm:$0xff] %v960_v4  }
  0xfe PF: > { %s13_s12 = sadd.s32 1, %s1078_s12  }
  0xff   : > { %p10_p4 = scmp.ge.s32.totalorder %s13_s12, 4  }
 0x101   :  { %12 = sbr.rel (!%p10_p4) target bundleno = 1 (0x1), region = 62 }

// kernel: conv_autoencoder_forward.8
= control target key start
LH: loop header
LB: loop body
LE: loop exit
PB: predicated region body
PF: predicated region fallthrough
CT: control target
= control target key end

     0   :  { %s1044_s12 = smov 0   ;;  %s1200_s0 = inlined_call_operand.vmem [shape: bf16[128,512], index: 0, kind: input, shape index: {}]   ;;  %s1201_s1 = inlined_call_operand.vmem [shape: bf16[512,128], index: 1, kind: input, shape index: {}]   ;;  %s1202_s2 = inlined_call_operand.vmem [shape: f32[1,128], index: 2, kind: input, shape index: {}]   ;;  %s1203_s3 = inlined_call_operand.vmem [shape: bf16[128,128], index: 3, kind: output, shape index: {}]  }
   0x1 LB: > { %s771_s13 = sadd.s32 4294967295, %s1022_s12   ;;  %p775_p0 = scmp.ge.s32.totalorder %s1022_s12, 1  ;;  %s1022_s12 = sphi %s1044_s12, %s13_s12  }
   0x2   : > { %p139_p1 = scmp.lt.s32.totalorder %s1022_s12, 3 }
   0x4   : > { %p140_p2 = pnand %p775_p0, %p139_p1 }
   0x5   : > { %s776_s21 = sshll.u32 (!%p140_p2), %s771_s13, 3 }
   0x6   : > { %143 = sbr.rel (%p140_p2) target bundleno = 279 (0x117), region = 32  ;;  %p165_p3 = scmp.lt.s32.totalorder (!%p140_p2), %s776_s21, 15 }
   0xb   : > { %v960_v0 = vld [vmem:[%s1201_s1 + $0x78] sm:$0xff]   ;;  %v964_v4 = vld [vmem:[%s1201_s1 + $0x70] sm:$0xff]   ;;  %v968_v8 = vld [vmem:[%s1201_s1 + $0x68] sm:$0xff]   ;;  %s1205_s21 = smov (!%p165_p3, %s776_s21), 15 }
   0xc   : > { %v961_v1 = vld [vmem:[%s1201_s1 + $0xf8] sm:$0xff]   ;;  %872 = vmatprep.subr.bf16.mxu0 %v960_v0  ;;  %v965_v5 = vld [vmem:[%s1201_s1 + $0xf0] sm:$0xff]   ;;  %v969_v9 = vld [vmem:[%s1201_s1 + $0xe8] sm:$0xff]   ;;  %s840_s18 = sshll.u32 %s1205_s21, 4  ;;  %s780_s7 = sshll.u32 %s1205_s21, 2 }
   0xd   : > { %v962_v2 = vld [vmem:[%s1201_s1 + $0x38] sm:$0xff]   ;;  %912 = vmatprep.subr.bf16.mxu1 %v961_v1  ;;  %v966_v6 = vld [vmem:[%s1201_s1 + $0x30] sm:$0xff]   ;;  %v970_v10 = vld [vmem:[%s1201_s1 + $0x28] sm:$0xff]   ;;  %s1150_s28 = scalar_lea.vmem %s1200_s0, %s840_s18  ;;  %s1186_s10 = scalar_lea.vmem %s1203_s3, %s780_s7 }
   0xe   : > { %v963_v3 = vld [vmem:[%s1201_s1 + $0xb8] sm:$0xff]   ;;  %873 = vmatpush3.bf16.msra.mxu0 %v962_v2  ;;  %v967_v7 = vld [vmem:[%s1201_s1 + $0xb0] sm:$0xff]   ;;  %v971_v11 = vld [vmem:[%s1201_s1 + $0xa8] sm:$0xff]  }
   0xf   : > { %913 = vmatpush3.bf16.msra.mxu1 %v963_v3  ;;  %874 = vmatprep.subr.bf16.mxu0 %v964_v4  ;;  %v972_v12 = vld [vmem:[%s1201_s1 + $0x60] sm:$0xff]   ;;  %v976_v16 = vld [vmem:[%s1201_s1 + $0x58] sm:$0xff]   ;;  %v980_v20 = vld [vmem:[%s1201_s1 + $0x50] sm:$0xff]  }
  0x10   : > { %914 = vmatprep.subr.bf16.mxu1 %v965_v5  ;;  %v973_v13 = vld [vmem:[%s1201_s1 + $0xe0] sm:$0xff]   ;;  %v977_v17 = vld [vmem:[%s1201_s1 + $0xd8] sm:$0xff]   ;;  %v981_v21 = vld [vmem:[%s1201_s1 + $0xd0] sm:$0xff]  }
  0x11   : > { %v974_v14 = vld [vmem:[%s1201_s1 + $0x20] sm:$0xff]   ;;  %v978_v18 = vld [vmem:[%s1201_s1 + $0x18] sm:$0xff]   ;;  %v982_v22 = vld [vmem:[%s1201_s1 + $0x10] sm:$0xff]  }
  0x12   : > { %875 = vmatpush3.bf16.msra.mxu0 %v966_v6  ;;  %v975_v15 = vld [vmem:[%s1201_s1 + $0xa0] sm:$0xff]   ;;  %v979_v19 = vld [vmem:[%s1201_s1 + $0x98] sm:$0xff]   ;;  %v983_v23 = vld [vmem:[%s1201_s1 + $0x90] sm:$0xff]  }
  0x13   : > { %915 = vmatpush3.bf16.msra.mxu1 %v967_v7  ;;  %876 = vmatprep.subr.bf16.mxu0 %v968_v8  ;;  %v984_v24 = vld [vmem:[%s1201_s1 + $0x48] sm:$0xff]   ;;  %v988_v28 = vld [vmem:[%s1201_s1 + $0x40] sm:$0xff]  }
  0x14   : > { %916 = vmatprep.subr.bf16.mxu1 %v969_v9  ;;  %v985_v25 = vld [vmem:[%s1201_s1 + $0xc8] sm:$0xff]   ;;  %v989_v29 = vld [vmem:[%s1201_s1 + $0xc0] sm:$0xff]  }
  0x15   : > { %v986_v26 = vld [vmem:[%s1201_s1 + $0x8] sm:$0xff]   ;;  %v990_v30 = vld [vmem:[%s1201_s1] sm:$0xff]  }
  0x16   : > { %877 = vmatpush3.bf16.msra.mxu0 %v970_v10  ;;  %v987_v27 = vld [vmem:[%s1201_s1 + $0x88] sm:$0xff]   ;;  %v991_v31 = vld [vmem:[%s1201_s1 + $0x80] sm:$0xff]  }
  0x17   : > { %917 = vmatpush3.bf16.msra.mxu1 %v971_v11  ;;  %878 = vmatprep.subr.bf16.mxu0 %v972_v12  ;;  %v992_v32 = vld [vmem:[%s1150_s28] ss:$16 sps:$4 sm:$0xff]   ;;  %v994_v33 = vld [vmem:[%s1150_s28 + $0x4] ss:$16 sps:$4 sm:$0xff]   ;;  %v995_v34 = vld [vmem:[%s1150_s28 + $0x8] ss:$16 sps:$4 sm:$0xff]  }
  0x18   : > { %918 = vmatprep.subr.bf16.mxu1 %v973_v13  ;;  %v997_v35 = vld [vmem:[%s1150_s28 + $0xc] ss:$16 sps:$4 sm:$0xff]   ;;  %569 = vmatprep.mubr.bf16.mxu0 %v994_v33  ;;  %v998_v36 = vld [vmem:[%s1150_s28 + $0x24] ss:$16 sps:$4 sm:$0xff]   ;;  %v1002_v38 = vld [vmem:[%s1150_s28 + $0x20] ss:$16 sps:$4 sm:$0xff]  }
  0x19   : > { %634 = vmatprep.mubr.bf16.mxu1 %v997_v35  ;;  %v1000_v37 = vld [vmem:[%s1150_s28 + $0x2c] ss:$16 sps:$4 sm:$0xff]   ;;  %v1003_v39 = vld [vmem:[%s1150_s28 + $0x28] ss:$16 sps:$4 sm:$0xff]   ;;  %v1004_v40 = vld [vmem:[%s1150_s28 + $0x44] ss:$16 sps:$4 sm:$0xff]  }
  0x1a   : > { %879 = vmatpush3.bf16.msra.mxu0 %v974_v14  ;;  %v1006_v41 = vld [vmem:[%s1150_s28 + $0x4c] ss:$16 sps:$4 sm:$0xff]   ;;  %v1008_v42 = vld [vmem:[%s1150_s28 + $0x40] ss:$16 sps:$4 sm:$0xff]   ;;  %v1009_v43 = vld [vmem:[%s1150_s28 + $0x48] ss:$16 sps:$4 sm:$0xff]  }
  0x1b   : > { %919 = vmatpush3.bf16.msra.mxu1 %v975_v15  ;;  %880 = vmatprep.subr.bf16.mxu0 %v976_v16  ;;  %v1010_v44 = vld [vmem:[%s1150_s28 + $0x64] ss:$16 sps:$4 sm:$0xff]   ;;  %v1012_v45 = vld [vmem:[%s1150_s28 + $0x6c] ss:$16 sps:$4 sm:$0xff]   ;;  %v1014_v46 = vld [vmem:[%s1150_s28 + $0x60] ss:$16 sps:$4 sm:$0xff]  }
  0x1c   : > { %920 = vmatprep.subr.bf16.mxu1 %v977_v17  ;;  %v1015_v47 = vld [vmem:[%s1150_s28 + $0x68] ss:$16 sps:$4 sm:$0xff]   ;;  %v1177_v50 = vld [vmem:[%s1202_s2] ss:$0 sm:$0xff] }
  0x1e   : > { %881 = vmatpush3.bf16.msra.mxu0 %v978_v18 }
  0x1f   : > { %921 = vmatpush3.bf16.msra.mxu1 %v979_v19  ;;  %882 = vmatprep.subr.bf16.mxu0 %v980_v20 }
  0x20   : > { %922 = vmatprep.subr.bf16.mxu1 %v981_v21 }
  0x22   : > { %883 = vmatpush3.bf16.msra.mxu0 %v982_v22 }
  0x23   : > { %923 = vmatpush3.bf16.msra.mxu1 %v983_v23  ;;  %884 = vmatprep.subr.bf16.mxu0 %v984_v24 }
  0x24   : > { %924 = vmatprep.subr.bf16.mxu1 %v985_v25 }
  0x26   : > { %885 = vmatpush3.bf16.msra.mxu0 %v986_v26 }
  0x27   : > { %925 = vmatpush3.bf16.msra.mxu1 %v987_v27  ;;  %886 = vmatprep.subr.bf16.mxu0 %v988_v28 }
  0x28   : > { %926 = vmatprep.subr.bf16.mxu1 %v989_v29 }
  0x2a   : > { %887 = vmatpush3.bf16.msra.mxu0 %v990_v30 }
  0x2b   : > { %927 = vmatpush3.bf16.msra.mxu1 %v991_v31 }
  0x2d   : > { %570 = vmatmul.mubr.bf16.vlgmr.msra.gmra.mxu0 %v992_v32 }
  0x2e   : > { %635 = vmatmul.mubr.bf16.vlgmr.msra.gmra.mxu1 %v995_v34  ;;  %577 = vmatprep.mubr.bf16.mxu0 %v998_v36 }
  0x2f   : > { %642 = vmatprep.mubr.bf16.mxu1 %v1000_v37 }
  0x35   : > { %578 = vmatmul.mubr.bf16.gmra.mxu0 %v1002_v38 }
  0x36   : > { %643 = vmatmul.mubr.bf16.gmra.mxu1 %v1003_v39  ;;  %585 = vmatprep.mubr.bf16.mxu0 %v1004_v40 }
  0x37   : > { %650 = vmatprep.mubr.bf16.mxu1 %v1006_v41 }
  0x3d   : > { %586 = vmatmul.mubr.bf16.gmra.mxu0 %v1008_v42 }
  0x3e   : > { %651 = vmatmul.mubr.bf16.gmra.mxu1 %v1009_v43  ;;  %593 = vmatprep.mubr.bf16.mxu0 %v1010_v44 }
  0x3f   : > { %658 = vmatprep.mubr.bf16.mxu1 %v1012_v45 }
  0x45   : > { %594 = vmatmul.mubr.bf16.gmra.mxu0 %v1014_v46 }
  0x46   : > { %659 = vmatmul.mubr.bf16.gmra.mxu1 %v1015_v47 }
  0xed   : > { %v888_v48 = vpop.f32.mrf.mxu0 }
  0xee   : > { %v928_v49 = vpop.f32.mrf.mxu1 }
  0xef   : > { %v889_v51 = vpop.f32.mrf.mxu0 }
  0xf0   : > { %v890_v52 = vadd.f32 %v889_v51, %v888_v48  ;;  %v929_v53 = vpop.f32.mrf.mxu1 }
  0xf1   : > { %v891_v54 = vpop.f32.mrf.mxu0  ;;  %v930_v58 = vadd.f32 %v929_v53, %v928_v49 }
  0xf2   : > { %v572_v55 = vadd.f32 %v890_v52, %v1177_v50  ;;  %v931_v56 = vpop.f32.mrf.mxu1 }
  0xf3   : > { %v892_v57 = vpop.f32.mrf.mxu0 }
  0xf4   : > { %v893_v59 = vadd.f32 %v892_v57, %v891_v54  ;;  %v932_v60 = vpop.f32.mrf.mxu1  ;;  %v637_v62 = vadd.f32 %v930_v58, %v572_v55 }
  0xf5   : > { %v894_v61 = vpop.f32.mrf.mxu0  ;;  %v933_v0 = vadd.f32 %v932_v60, %v931_v56 }
  0xf6   : > { %v575_v63 = vadd.f32 %v893_v59, %v1177_v50  ;;  %v934_v1 = vpop.f32.mrf.mxu1  ;;  %v667_v7 = vmax.f32 %v637_v62, 0.0 }
  0xf7   : > { %v895_v2 = vpop.f32.mrf.mxu0 }
  0xf8   : > { %v640_v3 = vadd.f32 %v933_v0, %v575_v63  ;;  %v896_v4 = vadd.f32 %v895_v2, %v894_v61  ;;  %v935_v5 = vpop.f32.mrf.mxu1 }
  0xf9   : > { %v897_v6 = vpop.f32.mrf.mxu0  ;;  %v936_v13 = vadd.f32 %v935_v5, %v934_v1 }
  0xfa   : > { %v668_v8 = vmax.f32 %v640_v3, 0.0  ;;  %v580_v9 = vadd.f32 %v896_v4, %v1177_v50  ;;  %v937_v10 = vpop.f32.mrf.mxu1 }
  0xfb   : > { %v898_v11 = vpop.f32.mrf.mxu0 }
  0xfc   : > { %v852_v12 = vpack.c.bf16 %v668_v8, %v667_v7  ;;  %v899_v14 = vadd.f32 %v898_v11, %v897_v6  ;;  %v938_v15 = vpop.f32.mrf.mxu1  ;;  %v645_v17 = vadd.f32 %v936_v13, %v580_v9 }
  0xfd   : > { %v900_v16 = vpop.f32.mrf.mxu0  ;;  %v939_v19 = vadd.f32 %v938_v15, %v937_v10 }
  0xfe   : > { %853 = vst [vmem:[%s1186_s10] sm:$0xff] %v852_v12   ;;  %v583_v18 = vadd.f32 %v899_v14, %v1177_v50  ;;  %v940_v20 = vpop.f32.mrf.mxu1  ;;  %v669_v26 = vmax.f32 %v645_v17, 0.0 }
  0xff   : > { %v901_v21 = vpop.f32.mrf.mxu0 }
 0x100   : > { %v648_v22 = vadd.f32 %v939_v19, %v583_v18  ;;  %v902_v23 = vadd.f32 %v901_v21, %v900_v16  ;;  %v941_v24 = vpop.f32.mrf.mxu1 }
 0x101   : > { %v903_v25 = vpop.f32.mrf.mxu0  ;;  %v942_v32 = vadd.f32 %v941_v24, %v940_v20 }
 0x102   : > { %v670_v27 = vmax.f32 %v648_v22, 0.0  ;;  %v588_v28 = vadd.f32 %v902_v23, %v1177_v50  ;;  %v943_v29 = vpop.f32.mrf.mxu1 }
 0x103   : > { %v904_v30 = vpop.f32.mrf.mxu0 }
 0x104   : > { %v857_v31 = vpack.c.bf16 %v670_v27, %v669_v26  ;;  %v905_v33 = vadd.f32 %v904_v30, %v903_v25  ;;  %v944_v34 = vpop.f32.mrf.mxu1  ;;  %v653_v36 = vadd.f32 %v942_v32, %v588_v28 }
 0x105   : > { %v906_v35 = vpop.f32.mrf.mxu0  ;;  %v945_v38 = vadd.f32 %v944_v34, %v943_v29 }
 0x106   : > { %869 = vst [vmem:[%s1186_s10 + $0x8] sm:$0xff] %v857_v31   ;;  %v591_v37 = vadd.f32 %v905_v33, %v1177_v50  ;;  %v946_v39 = vpop.f32.mrf.mxu1  ;;  %v671_v45 = vmax.f32 %v653_v36, 0.0 }
 0x107   : > { %v907_v40 = vpop.f32.mrf.mxu0 }
 0x108   : > { %v656_v41 = vadd.f32 %v945_v38, %v591_v37  ;;  %v908_v42 = vadd.f32 %v907_v40, %v906_v35  ;;  %v947_v43 = vpop.f32.mrf.mxu1 }
 0x109   : > { %v909_v44 = vpop.f32.mrf.mxu0  ;;  %v948_v52 = vadd.f32 %v947_v43, %v946_v39 }
 0x10a   : > { %v672_v46 = vmax.f32 %v656_v41, 0.0  ;;  %v596_v47 = vadd.f32 %v908_v42, %v1177_v50  ;;  %v949_v48 = vpop.f32.mrf.mxu1 }
 0x10b   : > { %v910_v49 = vpop.f32.mrf.mxu0 }
 0x10c   : > { %v862_v51 = vpack.c.bf16 %v672_v46, %v671_v45  ;;  %v911_v53 = vadd.f32 %v910_v49, %v909_v44  ;;  %v950_v54 = vpop.f32.mrf.mxu1  ;;  %v661_v55 = vadd.f32 %v948_v52, %v596_v47 }
 0x10d   : > { %v951_v57 = vadd.f32 %v950_v54, %v949_v48 }
 0x10e   : > { %870 = vst [vmem:[%s1186_s10 + $0x10] sm:$0xff] %v862_v51   ;;  %v599_v56 = vadd.f32 %v911_v53, %v1177_v50  ;;  %v673_v59 = vmax.f32 %v661_v55, 0.0 }
 0x110   : > { %v664_v58 = vadd.f32 %v951_v57, %v599_v56 }
 0x112   : > { %v674_v60 = vmax.f32 %v664_v58, 0.0 }
 0x114   : > { %v867_v61 = vpack.c.bf16 %v674_v60, %v673_v59 }
 0x116   : > { %871 = vst [vmem:[%s1186_s10 + $0x18] sm:$0xff] %v867_v61  }
 0x117 PF: > { %s13_s12 = sadd.s32 1, %s1022_s12  }
 0x118   : > { %p10_p4 = scmp.ge.s32.totalorder %s13_s12, 4  }
 0x11a   :  { %12 = sbr.rel (!%p10_p4) target bundleno = 1 (0x1), region = 62 }

// kernel: conv_autoencoder_forward.9
= control target key start
LH: loop header
LB: loop body
LE: loop exit
PB: predicated region body
PF: predicated region fallthrough
CT: control target
= control target key end

     0   :  { %s1260_s12 = smov 0   ;;  %s1488_s0 = inlined_call_operand.vmem [shape: bf16[32,1024], index: 0, kind: input, shape index: {}]   ;;  %s1489_s1 = inlined_call_operand.vmem [shape: bf16[1024,128], index: 1, kind: input, shape index: {}]   ;;  %s1490_s2 = inlined_call_operand.vmem [shape: f32[1,128], index: 2, kind: input, shape index: {}]   ;;  %s1491_s3 = inlined_call_operand.vmem [shape: bf16[32,128], index: 3, kind: output, shape index: {}]  }
   0x1 LB: > { %s977_s13 = sadd.s32 4294967295, %s1238_s12   ;;  %p981_p0 = scmp.ge.s32.totalorder %s1238_s12, 1  ;;  %s1238_s12 = sphi %s1260_s12, %s13_s12  }
   0x2   : > { %p139_p1 = scmp.lt.s32.totalorder %s1238_s12, 3 }
   0x4   : > { %p140_p2 = pnand %p981_p0, %p139_p1 }
   0x5   : > { %s982_s21 = sshll.u32 (!%p140_p2), %s977_s13, 1 }
   0x6   : > { %143 = sbr.rel (%p140_p2) target bundleno = 287 (0x11f), region = 32  ;;  %p165_p3 = scmp.lt.s32.totalorder (!%p140_p2), %s982_s21, 3 }
   0xb   : > { %v1168_v0 = vld [vmem:[%s1489_s1 + $0x78] sm:$0xff]   ;;  %v1172_v4 = vld [vmem:[%s1489_s1 + $0x70] sm:$0xff]   ;;  %v1176_v8 = vld [vmem:[%s1489_s1 + $0x68] sm:$0xff]   ;;  %s1493_s21 = smov (!%p165_p3, %s982_s21), 3 }
   0xc   : > { %v1169_v1 = vld [vmem:[%s1489_s1 + $0xf8] sm:$0xff]   ;;  %1072 = vmatprep.subr.bf16.mxu0 %v1168_v0  ;;  %v1173_v5 = vld [vmem:[%s1489_s1 + $0xf0] sm:$0xff]   ;;  %v1177_v9 = vld [vmem:[%s1489_s1 + $0xe8] sm:$0xff]   ;;  %s1064_s18 = sshll.u32 %s1493_s21, 5 }
   0xd   : > { %v1170_v2 = vld [vmem:[%s1489_s1 + $0x38] sm:$0xff]   ;;  %1094 = vmatprep.subr.bf16.mxu1 %v1169_v1  ;;  %v1174_v6 = vld [vmem:[%s1489_s1 + $0x30] sm:$0xff]   ;;  %v1178_v10 = vld [vmem:[%s1489_s1 + $0x28] sm:$0xff]   ;;  %s1366_s28 = scalar_lea.vmem %s1488_s0, %s1064_s18 }
   0xe   : > { %v1171_v3 = vld [vmem:[%s1489_s1 + $0xb8] sm:$0xff]   ;;  %1073 = vmatpush3.bf16.msra.mxu0 %v1170_v2  ;;  %v1175_v7 = vld [vmem:[%s1489_s1 + $0xb0] sm:$0xff]   ;;  %v1179_v11 = vld [vmem:[%s1489_s1 + $0xa8] sm:$0xff]  }
   0xf   : > { %1095 = vmatpush3.bf16.msra.mxu1 %v1171_v3  ;;  %1074 = vmatprep.subr.bf16.mxu0 %v1172_v4  ;;  %v1180_v12 = vld [vmem:[%s1489_s1 + $0x60] sm:$0xff]   ;;  %v1184_v16 = vld [vmem:[%s1489_s1 + $0x58] sm:$0xff]   ;;  %v1188_v20 = vld [vmem:[%s1489_s1 + $0x50] sm:$0xff]  }
  0x10   : > { %1096 = vmatprep.subr.bf16.mxu1 %v1173_v5  ;;  %v1181_v13 = vld [vmem:[%s1489_s1 + $0xe0] sm:$0xff]   ;;  %v1185_v17 = vld [vmem:[%s1489_s1 + $0xd8] sm:$0xff]   ;;  %v1189_v21 = vld [vmem:[%s1489_s1 + $0xd0] sm:$0xff]  }
  0x11   : > { %v1182_v14 = vld [vmem:[%s1489_s1 + $0x20] sm:$0xff]   ;;  %v1186_v18 = vld [vmem:[%s1489_s1 + $0x18] sm:$0xff]   ;;  %v1190_v22 = vld [vmem:[%s1489_s1 + $0x10] sm:$0xff]  }
  0x12   : > { %1075 = vmatpush3.bf16.msra.mxu0 %v1174_v6  ;;  %v1183_v15 = vld [vmem:[%s1489_s1 + $0xa0] sm:$0xff]   ;;  %v1187_v19 = vld [vmem:[%s1489_s1 + $0x98] sm:$0xff]   ;;  %v1191_v23 = vld [vmem:[%s1489_s1 + $0x90] sm:$0xff]  }
  0x13   : > { %1097 = vmatpush3.bf16.msra.mxu1 %v1175_v7  ;;  %1076 = vmatprep.subr.bf16.mxu0 %v1176_v8  ;;  %v1192_v24 = vld [vmem:[%s1489_s1 + $0x48] sm:$0xff]   ;;  %v1196_v28 = vld [vmem:[%s1489_s1 + $0x40] sm:$0xff]   ;;  %v1200_v40 = vld [vmem:[%s1489_s1 + $0x178] sm:$0xff]  }
  0x14   : > { %1098 = vmatprep.subr.bf16.mxu1 %v1177_v9  ;;  %v1193_v25 = vld [vmem:[%s1489_s1 + $0xc8] sm:$0xff]   ;;  %v1197_v29 = vld [vmem:[%s1489_s1 + $0xc0] sm:$0xff]   ;;  %v1201_v41 = vld [vmem:[%s1489_s1 + $0x1f8] sm:$0xff]  }
  0x15   : > { %v1194_v26 = vld [vmem:[%s1489_s1 + $0x8] sm:$0xff]   ;;  %v1198_v30 = vld [vmem:[%s1489_s1] sm:$0xff]   ;;  %v1202_v42 = vld [vmem:[%s1489_s1 + $0x138] sm:$0xff]  }
  0x16   : > { %1077 = vmatpush3.bf16.msra.mxu0 %v1178_v10  ;;  %v1195_v27 = vld [vmem:[%s1489_s1 + $0x88] sm:$0xff]   ;;  %v1199_v31 = vld [vmem:[%s1489_s1 + $0x80] sm:$0xff]   ;;  %v1203_v43 = vld [vmem:[%s1489_s1 + $0x1b8] sm:$0xff]  }
  0x17   : > { %1099 = vmatpush3.bf16.msra.mxu1 %v1179_v11  ;;  %1078 = vmatprep.subr.bf16.mxu0 %v1180_v12  ;;  %v178_v32 = vld [vmem:[%s1366_s28] sm:$0xff]  ;;  %v179_v34 = vld [vmem:[%s1366_s28 + $0x8] sm:$0xff]  ;;  %v1204_v44 = vld [vmem:[%s1489_s1 + $0x170] sm:$0xff]  }
  0x18   : > { %1100 = vmatprep.subr.bf16.mxu1 %v1181_v13  ;;  %v182_v33 = vld [vmem:[%s1366_s28 + $0x20] sm:$0xff]  ;;  %v183_v37 = vld [vmem:[%s1366_s28 + $0x28] sm:$0xff]  ;;  %v1205_v45 = vld [vmem:[%s1489_s1 + $0x1f0] sm:$0xff]  }
  0x19   : > { %v988_v35 = vcombine.low %v178_v32, %v182_v33  ;;  %v989_v36 = vcombine.high %v178_v32, %v182_v33  ;;  %v990_v38 = vcombine.low %v179_v34, %v183_v37  ;;  %v991_v39 = vcombine.high %v179_v34, %v183_v37  ;;  %v1206_v46 = vld [vmem:[%s1489_s1 + $0x130] sm:$0xff]   ;;  %v1208_v48 = vld [vmem:[%s1489_s1 + $0x168] sm:$0xff]   ;;  %v1212_v52 = vld [vmem:[%s1489_s1 + $0x160] sm:$0xff]  }
  0x1a   : > { %1079 = vmatpush3.bf16.msra.mxu0 %v1182_v14  ;;  %v1207_v47 = vld [vmem:[%s1489_s1 + $0x1b0] sm:$0xff]   ;;  %v1209_v49 = vld [vmem:[%s1489_s1 + $0x1e8] sm:$0xff]   ;;  %v1213_v53 = vld [vmem:[%s1489_s1 + $0x1e0] sm:$0xff]  }
  0x1b   : > { %1101 = vmatpush3.bf16.msra.mxu1 %v1183_v15  ;;  %1080 = vmatprep.subr.bf16.mxu0 %v1184_v16  ;;  %v1210_v50 = vld [vmem:[%s1489_s1 + $0x128] sm:$0xff]   ;;  %v1214_v54 = vld [vmem:[%s1489_s1 + $0x120] sm:$0xff]   ;;  %v1216_v56 = vld [vmem:[%s1489_s1 + $0x158] sm:$0xff]  }
  0x1c   : > { %1102 = vmatprep.subr.bf16.mxu1 %v1185_v17  ;;  %777 = vmatprep.mubr.bf16.mxu0 %v989_v36  ;;  %v1211_v51 = vld [vmem:[%s1489_s1 + $0x1a8] sm:$0xff]   ;;  %v1215_v55 = vld [vmem:[%s1489_s1 + $0x1a0] sm:$0xff]   ;;  %v1217_v57 = vld [vmem:[%s1489_s1 + $0x1d8] sm:$0xff]  }
  0x1d   : > { %818 = vmatprep.mubr.bf16.mxu1 %v991_v39  ;;  %v1218_v58 = vld [vmem:[%s1489_s1 + $0x118] sm:$0xff]   ;;  %v1220_v60 = vld [vmem:[%s1489_s1 + $0x150] sm:$0xff]   ;;  %v1224_v0 = vld [vmem:[%s1489_s1 + $0x148] sm:$0xff]  }
  0x1e   : > { %1081 = vmatpush3.bf16.msra.mxu0 %v1186_v18  ;;  %v1219_v59 = vld [vmem:[%s1489_s1 + $0x198] sm:$0xff]   ;;  %v1221_v61 = vld [vmem:[%s1489_s1 + $0x1d0] sm:$0xff]   ;;  %v1225_v1 = vld [vmem:[%s1489_s1 + $0x1c8] sm:$0xff]  }
  0x1f   : > { %1103 = vmatpush3.bf16.msra.mxu1 %v1187_v19  ;;  %1082 = vmatprep.subr.bf16.mxu0 %v1188_v20  ;;  %v1222_v62 = vld [vmem:[%s1489_s1 + $0x110] sm:$0xff]   ;;  %v1226_v2 = vld [vmem:[%s1489_s1 + $0x108] sm:$0xff]   ;;  %v1228_v4 = vld [vmem:[%s1489_s1 + $0x140] sm:$0xff]  }
  0x20   : > { %1104 = vmatprep.subr.bf16.mxu1 %v1189_v21  ;;  %v1223_v63 = vld [vmem:[%s1489_s1 + $0x190] sm:$0xff]   ;;  %v1227_v3 = vld [vmem:[%s1489_s1 + $0x188] sm:$0xff]   ;;  %v1229_v5 = vld [vmem:[%s1489_s1 + $0x1c0] sm:$0xff]  }
  0x21   : > { %v1230_v6 = vld [vmem:[%s1489_s1 + $0x100] sm:$0xff]   ;;  %v180_v8 = vld [vmem:[%s1366_s28 + $0x10] sm:$0xff]  ;;  %v181_v12 = vld [vmem:[%s1366_s28 + $0x18] sm:$0xff] }
  0x22   : > { %1083 = vmatpush3.bf16.msra.mxu0 %v1190_v22  ;;  %v1231_v7 = vld [vmem:[%s1489_s1 + $0x180] sm:$0xff]   ;;  %v184_v9 = vld [vmem:[%s1366_s28 + $0x30] sm:$0xff]  ;;  %v185_v13 = vld [vmem:[%s1366_s28 + $0x38] sm:$0xff]  ;;  %s986_s28 = sshll.u32 %s1493_s21, 2 }
  0x23   : > { %1105 = vmatpush3.bf16.msra.mxu1 %v1191_v23  ;;  %1084 = vmatprep.subr.bf16.mxu0 %v1192_v24  ;;  %v992_v10 = vcombine.low %v180_v8, %v184_v9  ;;  %v993_v11 = vcombine.high %v180_v8, %v184_v9  ;;  %v994_v14 = vcombine.low %v181_v12, %v185_v13  ;;  %v987_v23 = vld [vmem:[%s1490_s2] ss:$0 sm:$0xff]  ;;  %s175_s29 = scalar_lea.vmem %s1491_s3, %s986_s28 }
  0x24   : > { %1106 = vmatprep.subr.bf16.mxu1 %v1193_v25  ;;  %v995_v15 = vcombine.high %v181_v12, %v185_v13 }
  0x26   : > { %1085 = vmatpush3.bf16.msra.mxu0 %v1194_v26 }
  0x27   : > { %1107 = vmatpush3.bf16.msra.mxu1 %v1195_v27  ;;  %1086 = vmatprep.subr.bf16.mxu0 %v1196_v28 }
  0x28   : > { %1108 = vmatprep.subr.bf16.mxu1 %v1197_v29 }
  0x2a   : > { %1087 = vmatpush3.bf16.msra.mxu0 %v1198_v30 }
  0x2b   : > { %1109 = vmatpush3.bf16.msra.mxu1 %v1199_v31  ;;  %1116 = vmatprep.subr.bf16.mxu0 %v1200_v40 }
  0x2c   : > { %1138 = vmatprep.subr.bf16.mxu1 %v1201_v41 }
  0x2d   : > { %778 = vmatmul.mubr.bf16.vlgmr.msra.gmra.mxu0 %v988_v35 }
  0x2e   : > { %819 = vmatmul.mubr.bf16.vlgmr.msra.gmra.mxu1 %v990_v38  ;;  %1117 = vmatpush3.bf16.msra.mxu0 %v1202_v42 }
  0x2f   : > { %1139 = vmatpush3.bf16.msra.mxu1 %v1203_v43  ;;  %1118 = vmatprep.subr.bf16.mxu0 %v1204_v44 }
  0x30   : > { %1140 = vmatprep.subr.bf16.mxu1 %v1205_v45  ;;  %859 = vmatprep.mubr.bf16.mxu0 %v993_v11 }
  0x31   : > { %900 = vmatprep.mubr.bf16.mxu1 %v995_v15 }
  0x32   : > { %1119 = vmatpush3.bf16.msra.mxu0 %v1206_v46 }
  0x33   : > { %1141 = vmatpush3.bf16.msra.mxu1 %v1207_v47  ;;  %1120 = vmatprep.subr.bf16.mxu0 %v1208_v48 }
  0x34   : > { %1142 = vmatprep.subr.bf16.mxu1 %v1209_v49 }
  0x36   : > { %1121 = vmatpush3.bf16.msra.mxu0 %v1210_v50 }
  0x37   : > { %1143 = vmatpush3.bf16.msra.mxu1 %v1211_v51  ;;  %1122 = vmatprep.subr.bf16.mxu0 %v1212_v52 }
  0x38   : > { %1144 = vmatprep.subr.bf16.mxu1 %v1213_v53 }
  0x3a   : > { %1123 = vmatpush3.bf16.msra.mxu0 %v1214_v54 }
  0x3b   : > { %1145 = vmatpush3.bf16.msra.mxu1 %v1215_v55  ;;  %1124 = vmatprep.subr.bf16.mxu0 %v1216_v56 }
  0x3c   : > { %1146 = vmatprep.subr.bf16.mxu1 %v1217_v57 }
  0x3e   : > { %1125 = vmatpush3.bf16.msra.mxu0 %v1218_v58 }
  0x3f   : > { %1147 = vmatpush3.bf16.msra.mxu1 %v1219_v59  ;;  %1126 = vmatprep.subr.bf16.mxu0 %v1220_v60 }
  0x40   : > { %1148 = vmatprep.subr.bf16.mxu1 %v1221_v61 }
  0x42   : > { %1127 = vmatpush3.bf16.msra.mxu0 %v1222_v62 }
  0x43   : > { %1149 = vmatpush3.bf16.msra.mxu1 %v1223_v63  ;;  %1128 = vmatprep.subr.bf16.mxu0 %v1224_v0 }
  0x44   : > { %1150 = vmatprep.subr.bf16.mxu1 %v1225_v1 }
  0x46   : > { %1129 = vmatpush3.bf16.msra.mxu0 %v1226_v2 }
  0x47   : > { %1151 = vmatpush3.bf16.msra.mxu1 %v1227_v3  ;;  %1130 = vmatprep.subr.bf16.mxu0 %v1228_v4 }
  0x48   : > { %1152 = vmatprep.subr.bf16.mxu1 %v1229_v5 }
  0x4a   : > { %1131 = vmatpush3.bf16.msra.mxu0 %v1230_v6 }
  0x4b   : > { %1153 = vmatpush3.bf16.msra.mxu1 %v1231_v7 }
  0x4d   : > { %860 = vmatmul.mubr.bf16.vlgmr.msra.gmra.mxu0 %v992_v10 }
  0x4e   : > { %901 = vmatmul.mubr.bf16.vlgmr.msra.gmra.mxu1 %v994_v14 }
  0xed   : > { %v1088_v16 = vpop.f32.mrf.mxu0 }
  0xee   : > { %v1110_v17 = vpop.f32.mrf.mxu1 }
  0xef   : > { %v1089_v18 = vpop.f32.mrf.mxu0 }
  0xf0   : > { %v1111_v19 = vpop.f32.mrf.mxu1  ;;  %v1090_v21 = vadd.f32 %v1089_v18, %v1088_v16 }
  0xf1   : > { %v1091_v20 = vpop.f32.mrf.mxu0  ;;  %v1112_v26 = vadd.f32 %v1111_v19, %v1110_v17 }
  0xf2   : > { %v1113_v22 = vpop.f32.mrf.mxu1  ;;  %v780_v25 = vadd.f32 %v1090_v21, %v987_v23 }
  0xf3   : > { %v1092_v24 = vpop.f32.mrf.mxu0 }
  0xf4   : > { %v1093_v27 = vadd.f32 %v1092_v24, %v1091_v20  ;;  %v1114_v28 = vpop.f32.mrf.mxu1  ;;  %v821_v32 = vadd.f32 %v1112_v26, %v780_v25 }
  0xf5   : > { %v1115_v37 = vadd.f32 %v1114_v28, %v1113_v22 }
  0xf6   : > { %v783_v33 = vadd.f32 %v1093_v27, %v987_v23 }
  0xf8   : > { %v824_v41 = vadd.f32 %v1115_v37, %v783_v33 }
 0x10d   : > { %v1132_v29 = vpop.f32.mrf.mxu0 }
 0x10e   : > { %v1154_v30 = vpop.f32.mrf.mxu1 }
 0x10f   : > { %v1133_v31 = vpop.f32.mrf.mxu0 }
 0x110   : > { %v1134_v34 = vadd.f32 %v1133_v31, %v1132_v29  ;;  %v1155_v35 = vpop.f32.mrf.mxu1 }
 0x111   : > { %v1135_v36 = vpop.f32.mrf.mxu0  ;;  %v1156_v42 = vadd.f32 %v1155_v35, %v1154_v30 }
 0x112   : > { %v862_v38 = vadd.f32 %v1134_v34, %v821_v32  ;;  %v1157_v39 = vpop.f32.mrf.mxu1 }
 0x113   : > { %v1136_v40 = vpop.f32.mrf.mxu0 }
 0x114   : > { %v1137_v43 = vadd.f32 %v1136_v40, %v1135_v36  ;;  %v1158_v44 = vpop.f32.mrf.mxu1  ;;  %v903_v45 = vadd.f32 %v1156_v42, %v862_v38 }
 0x115   : > { %v1159_v47 = vadd.f32 %v1158_v44, %v1157_v39 }
 0x116   : > { %v865_v46 = vadd.f32 %v1137_v43, %v824_v41  ;;  %v909_v49 = vmax.f32 %v903_v45, 0.0 }
 0x118   : > { %v906_v48 = vadd.f32 %v1159_v47, %v865_v46 }
 0x11a   : > { %v910_v50 = vmax.f32 %v906_v48, 0.0 }
 0x11c   : > { %v1070_v51 = vpack.c.bf16 %v910_v50, %v909_v49 }
 0x11e   : > { %1071 = vst [vmem:[%s175_s29] sm:$0xff] %v1070_v51  }
 0x11f PF: > { %s13_s12 = sadd.s32 1, %s1238_s12  }
 0x120   : > { %p10_p4 = scmp.ge.s32.totalorder %s13_s12, 4  }
 0x122   :  { %12 = sbr.rel (!%p10_p4) target bundleno = 1 (0x1), region = 62 }

// kernel: conv_autoencoder_forward.10
= control target key start
LH: loop header
LB: loop body
LE: loop exit
PB: predicated region body
PF: predicated region fallthrough
CT: control target
= control target key end

     0   :  { %s4255_s1 = inlined_call_operand.vmem [shape: bf16[2048,128], index: 1, kind: input, shape index: {}]   ;;  %s4256_s0 = inlined_call_operand.vmem [shape: bf16[8,2048], index: 0, kind: input, shape index: {}]   ;;  %s4257_s3 = inlined_call_operand.vmem [shape: bf16[128,2048], index: 3, kind: input, shape index: {}]   ;;  %s4258_s2 = inlined_call_operand.vmem [shape: f32[1,128], index: 2, kind: input, shape index: {}]   ;;  %s4259_s5 = inlined_call_operand.vmem [shape: f32[8,128], index: 5, kind: output, shape index: {0}]   ;;  %s4260_s4 = inlined_call_operand.vmem [shape: f32[1,2048], index: 4, kind: input, shape index: {}]   ;;  %s4261_s6 = inlined_call_operand.vmem [shape: bf16[8,2048], index: 6, kind: output, shape index: {1}]  }
   0x1   :  { %v3183_v0 = vld [vmem:[%s4255_s1 + $0x78] sm:$0xff]   ;;  %v3187_v4 = vld [vmem:[%s4255_s1 + $0x70] sm:$0xff]   ;;  %v3191_v8 = vld [vmem:[%s4255_s1 + $0x68] sm:$0xff]  }
   0x2   :  { %v3184_v1 = vld [vmem:[%s4255_s1 + $0xf8] sm:$0xff]   ;;  %3006 = vmatprep.subr.bf16.mxu0 %v3183_v0  ;;  %v3188_v5 = vld [vmem:[%s4255_s1 + $0xf0] sm:$0xff]   ;;  %v3192_v9 = vld [vmem:[%s4255_s1 + $0xe8] sm:$0xff]  }
   0x3   :  { %v3185_v2 = vld [vmem:[%s4255_s1 + $0x38] sm:$0xff]   ;;  %3028 = vmatprep.subr.bf16.mxu1 %v3184_v1  ;;  %v3189_v6 = vld [vmem:[%s4255_s1 + $0x30] sm:$0xff]   ;;  %v3193_v10 = vld [vmem:[%s4255_s1 + $0x28] sm:$0xff]  }
   0x4   :  { %v3186_v3 = vld [vmem:[%s4255_s1 + $0xb8] sm:$0xff]   ;;  %3007 = vmatpush3.bf16.msra.mxu0 %v3185_v2  ;;  %v3190_v7 = vld [vmem:[%s4255_s1 + $0xb0] sm:$0xff]   ;;  %v3194_v11 = vld [vmem:[%s4255_s1 + $0xa8] sm:$0xff]  }
   0x5   :  { %3029 = vmatpush3.bf16.msra.mxu1 %v3186_v3  ;;  %3008 = vmatprep.subr.bf16.mxu0 %v3187_v4  ;;  %v3195_v12 = vld [vmem:[%s4255_s1 + $0x60] sm:$0xff]   ;;  %v3199_v16 = vld [vmem:[%s4255_s1 + $0x58] sm:$0xff]   ;;  %v3203_v20 = vld [vmem:[%s4255_s1 + $0x50] sm:$0xff]  }
   0x6   :  { %3030 = vmatprep.subr.bf16.mxu1 %v3188_v5  ;;  %v3196_v13 = vld [vmem:[%s4255_s1 + $0xe0] sm:$0xff]   ;;  %v3200_v17 = vld [vmem:[%s4255_s1 + $0xd8] sm:$0xff]   ;;  %v3204_v21 = vld [vmem:[%s4255_s1 + $0xd0] sm:$0xff]  }
   0x7   :  { %v3197_v14 = vld [vmem:[%s4255_s1 + $0x20] sm:$0xff]   ;;  %v3201_v18 = vld [vmem:[%s4255_s1 + $0x18] sm:$0xff]   ;;  %v3205_v22 = vld [vmem:[%s4255_s1 + $0x10] sm:$0xff]  }
   0x8   :  { %3009 = vmatpush3.bf16.msra.mxu0 %v3189_v6  ;;  %v3198_v15 = vld [vmem:[%s4255_s1 + $0xa0] sm:$0xff]   ;;  %v3202_v19 = vld [vmem:[%s4255_s1 + $0x98] sm:$0xff]   ;;  %v3206_v23 = vld [vmem:[%s4255_s1 + $0x90] sm:$0xff]  }
   0x9   :  { %3031 = vmatpush3.bf16.msra.mxu1 %v3190_v7  ;;  %3010 = vmatprep.subr.bf16.mxu0 %v3191_v8  ;;  %v3207_v24 = vld [vmem:[%s4255_s1 + $0x48] sm:$0xff]   ;;  %v3211_v28 = vld [vmem:[%s4255_s1 + $0x40] sm:$0xff]   ;;  %v3219_v38 = vld [vmem:[%s4255_s1 + $0x178] sm:$0xff]  }
   0xa   :  { %3032 = vmatprep.subr.bf16.mxu1 %v3192_v9  ;;  %v3208_v25 = vld [vmem:[%s4255_s1 + $0xc8] sm:$0xff]   ;;  %v3212_v29 = vld [vmem:[%s4255_s1 + $0xc0] sm:$0xff]   ;;  %v3220_v39 = vld [vmem:[%s4255_s1 + $0x1f8] sm:$0xff]  }
   0xb   :  { %v3209_v26 = vld [vmem:[%s4255_s1 + $0x8] sm:$0xff]   ;;  %v3213_v30 = vld [vmem:[%s4255_s1] sm:$0xff]   ;;  %v3221_v40 = vld [vmem:[%s4255_s1 + $0x138] sm:$0xff]  }
   0xc   :  { %3011 = vmatpush3.bf16.msra.mxu0 %v3193_v10  ;;  %v3210_v27 = vld [vmem:[%s4255_s1 + $0x88] sm:$0xff]   ;;  %v3214_v31 = vld [vmem:[%s4255_s1 + $0x80] sm:$0xff]   ;;  %v3222_v41 = vld [vmem:[%s4255_s1 + $0x1b8] sm:$0xff]  }
   0xd   :  { %3033 = vmatpush3.bf16.msra.mxu1 %v3194_v11  ;;  %3012 = vmatprep.subr.bf16.mxu0 %v3195_v12  ;;  %v23_v32 = vld [vmem:[%s4256_s0] sm:$0xff]  ;;  %v24_v33 = vld [vmem:[%s4256_s0 + $0x8] sm:$0xff]  ;;  %v3223_v42 = vld [vmem:[%s4255_s1 + $0x170] sm:$0xff]  }
   0xe   :  { %3034 = vmatprep.subr.bf16.mxu1 %v3196_v13  ;;  %v2718_v34 = vcombine.low %v23_v32, %v23_v32  ;;  %v2719_v35 = vcombine.high %v23_v32, %v23_v32  ;;  %v2720_v36 = vcombine.low %v24_v33, %v24_v33  ;;  %v2721_v37 = vcombine.high %v24_v33, %v24_v33  ;;  %v3224_v43 = vld [vmem:[%s4255_s1 + $0x1f0] sm:$0xff]   ;;  %v3227_v46 = vld [vmem:[%s4255_s1 + $0x168] sm:$0xff]   ;;  %v3231_v50 = vld [vmem:[%s4255_s1 + $0x160] sm:$0xff]  }
   0xf   :  { %v3225_v44 = vld [vmem:[%s4255_s1 + $0x130] sm:$0xff]   ;;  %v3228_v47 = vld [vmem:[%s4255_s1 + $0x1e8] sm:$0xff]   ;;  %v3232_v51 = vld [vmem:[%s4255_s1 + $0x1e0] sm:$0xff]  }
  0x10   :  { %3013 = vmatpush3.bf16.msra.mxu0 %v3197_v14  ;;  %1150 = vmatprep.mubr.bf16.mxu0 %v2719_v35  ;;  %v3226_v45 = vld [vmem:[%s4255_s1 + $0x1b0] sm:$0xff]   ;;  %v3229_v48 = vld [vmem:[%s4255_s1 + $0x128] sm:$0xff]   ;;  %v3233_v52 = vld [vmem:[%s4255_s1 + $0x120] sm:$0xff]  }
  0x11   :  { %3035 = vmatpush3.bf16.msra.mxu1 %v3198_v15  ;;  %3014 = vmatprep.subr.bf16.mxu0 %v3199_v16  ;;  %v3230_v49 = vld [vmem:[%s4255_s1 + $0x1a8] sm:$0xff]   ;;  %v3234_v53 = vld [vmem:[%s4255_s1 + $0x1a0] sm:$0xff]   ;;  %v3235_v54 = vld [vmem:[%s4255_s1 + $0x158] sm:$0xff]  }
  0x12   :  { %3036 = vmatprep.subr.bf16.mxu1 %v3200_v17  ;;  %1190 = vmatprep.mubr.bf16.mxu1 %v2721_v37  ;;  %v3236_v55 = vld [vmem:[%s4255_s1 + $0x1d8] sm:$0xff]   ;;  %v3239_v58 = vld [vmem:[%s4255_s1 + $0x150] sm:$0xff]   ;;  %v3243_v62 = vld [vmem:[%s4255_s1 + $0x148] sm:$0xff]  }
  0x13   :  { %v3237_v56 = vld [vmem:[%s4255_s1 + $0x118] sm:$0xff]   ;;  %v3240_v59 = vld [vmem:[%s4255_s1 + $0x1d0] sm:$0xff]   ;;  %v3244_v63 = vld [vmem:[%s4255_s1 + $0x1c8] sm:$0xff]  }
  0x14   :  { %3015 = vmatpush3.bf16.msra.mxu0 %v3201_v18  ;;  %v3238_v57 = vld [vmem:[%s4255_s1 + $0x198] sm:$0xff]   ;;  %v3241_v60 = vld [vmem:[%s4255_s1 + $0x110] sm:$0xff]   ;;  %v3245_v0 = vld [vmem:[%s4255_s1 + $0x108] sm:$0xff]  }
  0x15   :  { %3037 = vmatpush3.bf16.msra.mxu1 %v3202_v19  ;;  %3016 = vmatprep.subr.bf16.mxu0 %v3203_v20  ;;  %v3242_v61 = vld [vmem:[%s4255_s1 + $0x190] sm:$0xff]   ;;  %v3246_v1 = vld [vmem:[%s4255_s1 + $0x188] sm:$0xff]   ;;  %v3247_v2 = vld [vmem:[%s4255_s1 + $0x140] sm:$0xff]  }
  0x16   :  { %3038 = vmatprep.subr.bf16.mxu1 %v3204_v21  ;;  %v3248_v3 = vld [vmem:[%s4255_s1 + $0x1c0] sm:$0xff]   ;;  %v25_v6 = vld [vmem:[%s4256_s0 + $0x10] sm:$0xff]  ;;  %v26_v9 = vld [vmem:[%s4256_s0 + $0x18] sm:$0xff] }
  0x17   :  { %v3249_v4 = vld [vmem:[%s4255_s1 + $0x100] sm:$0xff]   ;;  %v2722_v7 = vcombine.low %v25_v6, %v25_v6  ;;  %v2723_v8 = vcombine.high %v25_v6, %v25_v6  ;;  %v2724_v10 = vcombine.low %v26_v9, %v26_v9  ;;  %v2725_v11 = vcombine.high %v26_v9, %v26_v9  ;;  %v3255_v12 = vld [vmem:[%s4255_s1 + $0x278] sm:$0xff]   ;;  %v3259_v16 = vld [vmem:[%s4255_s1 + $0x270] sm:$0xff]  }
  0x18   :  { %3017 = vmatpush3.bf16.msra.mxu0 %v3205_v22  ;;  %v3250_v5 = vld [vmem:[%s4255_s1 + $0x180] sm:$0xff]   ;;  %v3256_v13 = vld [vmem:[%s4255_s1 + $0x2f8] sm:$0xff]   ;;  %v3260_v17 = vld [vmem:[%s4255_s1 + $0x2f0] sm:$0xff]  }
  0x19   :  { %3039 = vmatpush3.bf16.msra.mxu1 %v3206_v23  ;;  %3018 = vmatprep.subr.bf16.mxu0 %v3207_v24  ;;  %v3257_v14 = vld [vmem:[%s4255_s1 + $0x238] sm:$0xff]   ;;  %v3261_v18 = vld [vmem:[%s4255_s1 + $0x230] sm:$0xff]   ;;  %v3263_v20 = vld [vmem:[%s4255_s1 + $0x268] sm:$0xff]  }
  0x1a   :  { %3040 = vmatprep.subr.bf16.mxu1 %v3208_v25  ;;  %v3258_v15 = vld [vmem:[%s4255_s1 + $0x2b8] sm:$0xff]   ;;  %v3262_v19 = vld [vmem:[%s4255_s1 + $0x2b0] sm:$0xff]   ;;  %v3264_v21 = vld [vmem:[%s4255_s1 + $0x2e8] sm:$0xff]  }
  0x1b   :  { %v3265_v22 = vld [vmem:[%s4255_s1 + $0x228] sm:$0xff]   ;;  %v3267_v24 = vld [vmem:[%s4255_s1 + $0x260] sm:$0xff]   ;;  %v3275_v32 = vld [vmem:[%s4255_s1 + $0x250] sm:$0xff]  }
  0x1c   :  { %3019 = vmatpush3.bf16.msra.mxu0 %v3209_v26  ;;  %v3266_v23 = vld [vmem:[%s4255_s1 + $0x2a8] sm:$0xff]   ;;  %v3268_v25 = vld [vmem:[%s4255_s1 + $0x2e0] sm:$0xff]   ;;  %v3276_v33 = vld [vmem:[%s4255_s1 + $0x2d0] sm:$0xff]  }
  0x1d   :  { %3041 = vmatpush3.bf16.msra.mxu1 %v3210_v27  ;;  %3020 = vmatprep.subr.bf16.mxu0 %v3211_v28  ;;  %v3269_v26 = vld [vmem:[%s4255_s1 + $0x220] sm:$0xff]   ;;  %v3271_v28 = vld [vmem:[%s4255_s1 + $0x258] sm:$0xff]   ;;  %v3278_v35 = vld [vmem:[%s4255_s1 + $0x290] sm:$0xff]  }
  0x1e   :  { %3042 = vmatprep.subr.bf16.mxu1 %v3212_v29  ;;  %v3270_v27 = vld [vmem:[%s4255_s1 + $0x2a0] sm:$0xff]   ;;  %v3272_v29 = vld [vmem:[%s4255_s1 + $0x2d8] sm:$0xff]   ;;  %v3280_v37 = vld [vmem:[%s4255_s1 + $0x2c8] sm:$0xff]  }
  0x1f   :  { %v3311_v6 = vld [vmem:[%s4255_s1 + $0x350] sm:$0xff]  }
  0x20   :  { %3021 = vmatpush3.bf16.msra.mxu0 %v3213_v30  ;;  %v3273_v30 = vld [vmem:[%s4255_s1 + $0x218] sm:$0xff]   ;;  %v3314_v9 = vld [vmem:[%s4255_s1 + $0x390] sm:$0xff]  }
  0x21   :  { %3043 = vmatpush3.bf16.msra.mxu1 %v3214_v31  ;;  %3050 = vmatprep.subr.bf16.mxu0 %v3219_v38  ;;  %v3274_v31 = vld [vmem:[%s4255_s1 + $0x298] sm:$0xff]   ;;  %v3281_v38 = vld [vmem:[%s4255_s1 + $0x208] sm:$0xff]  }
  0x22   :  { %3072 = vmatprep.subr.bf16.mxu1 %v3220_v39  ;;  %v3282_v39 = vld [vmem:[%s4255_s1 + $0x288] sm:$0xff]  }
  0x23   :  { %1151 = vmatmul.mubr.bf16.vlgmr.msra.gmra.mxu0 %v2718_v34  ;;  %v3277_v34 = vld [vmem:[%s4255_s1 + $0x210] sm:$0xff]  }
  0x24   :  { %1191 = vmatmul.mubr.bf16.vlgmr.msra.gmra.mxu1 %v2720_v36  ;;  %3051 = vmatpush3.bf16.msra.mxu0 %v3221_v40  ;;  %v3279_v36 = vld [vmem:[%s4255_s1 + $0x248] sm:$0xff]   ;;  %v3283_v40 = vld [vmem:[%s4255_s1 + $0x240] sm:$0xff]  }
  0x25   :  { %3073 = vmatpush3.bf16.msra.mxu1 %v3222_v41  ;;  %3052 = vmatprep.subr.bf16.mxu0 %v3223_v42  ;;  %v3284_v41 = vld [vmem:[%s4255_s1 + $0x2c0] sm:$0xff]  }
  0x26   :  { %3074 = vmatprep.subr.bf16.mxu1 %v3224_v43  ;;  %1230 = vmatprep.mubr.bf16.mxu0 %v2723_v8  ;;  %v3285_v42 = vld [vmem:[%s4255_s1 + $0x200] sm:$0xff]   ;;  %v3313_v8 = vld [vmem:[%s4255_s1 + $0x310] sm:$0xff]  }
  0x27   :  { %1270 = vmatprep.mubr.bf16.mxu1 %v2725_v11  ;;  %v3286_v43 = vld [vmem:[%s4255_s1 + $0x280] sm:$0xff]   ;;  %v3316_v11 = vld [vmem:[%s4255_s1 + $0x3c8] sm:$0xff]  }
  0x28   :  { %3053 = vmatpush3.bf16.msra.mxu0 %v3225_v44  ;;  %v27_v44 = vld [vmem:[%s4256_s0 + $0x20] sm:$0xff] }
  0x29   :  { %3075 = vmatpush3.bf16.msra.mxu1 %v3226_v45  ;;  %3054 = vmatprep.subr.bf16.mxu0 %v3227_v46  ;;  %v28_v45 = vld [vmem:[%s4256_s0 + $0x28] sm:$0xff]  ;;  %v2726_v46 = vcombine.low %v27_v44, %v27_v44 }
  0x2a   :  { %3076 = vmatprep.subr.bf16.mxu1 %v3228_v47  ;;  %v2727_v47 = vcombine.high %v27_v44, %v27_v44 }
  0x2c   :  { %3055 = vmatpush3.bf16.msra.mxu0 %v3229_v48  ;;  %v2728_v48 = vcombine.low %v28_v45, %v28_v45 }
  0x2d   :  { %3077 = vmatpush3.bf16.msra.mxu1 %v3230_v49  ;;  %3056 = vmatprep.subr.bf16.mxu0 %v3231_v50  ;;  %v2729_v49 = vcombine.high %v28_v45, %v28_v45  ;;  %v3291_v50 = vld [vmem:[%s4255_s1 + $0x378] sm:$0xff]  }
  0x2e   :  { %3078 = vmatprep.subr.bf16.mxu1 %v3232_v51  ;;  %v3292_v51 = vld [vmem:[%s4255_s1 + $0x3f8] sm:$0xff]  }
  0x30   :  { %3057 = vmatpush3.bf16.msra.mxu0 %v3233_v52  ;;  %v3293_v52 = vld [vmem:[%s4255_s1 + $0x338] sm:$0xff]  }
  0x31   :  { %3079 = vmatpush3.bf16.msra.mxu1 %v3234_v53  ;;  %3058 = vmatprep.subr.bf16.mxu0 %v3235_v54  ;;  %v3294_v53 = vld [vmem:[%s4255_s1 + $0x3b8] sm:$0xff]   ;;  %v3295_v54 = vld [vmem:[%s4255_s1 + $0x370] sm:$0xff]  }
  0x32   :  { %3080 = vmatprep.subr.bf16.mxu1 %v3236_v55  ;;  %v3296_v55 = vld [vmem:[%s4255_s1 + $0x3f0] sm:$0xff]  }
  0x34   :  { %3059 = vmatpush3.bf16.msra.mxu0 %v3237_v56  ;;  %v3297_v56 = vld [vmem:[%s4255_s1 + $0x330] sm:$0xff]  }
  0x35   :  { %3081 = vmatpush3.bf16.msra.mxu1 %v3238_v57  ;;  %3060 = vmatprep.subr.bf16.mxu0 %v3239_v58  ;;  %v3298_v57 = vld [vmem:[%s4255_s1 + $0x3b0] sm:$0xff]   ;;  %v3299_v58 = vld [vmem:[%s4255_s1 + $0x368] sm:$0xff]  }
  0x36   :  { %3082 = vmatprep.subr.bf16.mxu1 %v3240_v59  ;;  %v3300_v59 = vld [vmem:[%s4255_s1 + $0x3e8] sm:$0xff]  }
  0x38   :  { %3061 = vmatpush3.bf16.msra.mxu0 %v3241_v60  ;;  %v3301_v60 = vld [vmem:[%s4255_s1 + $0x328] sm:$0xff]  }
  0x39   :  { %3083 = vmatpush3.bf16.msra.mxu1 %v3242_v61  ;;  %3062 = vmatprep.subr.bf16.mxu0 %v3243_v62  ;;  %v3302_v61 = vld [vmem:[%s4255_s1 + $0x3a8] sm:$0xff]   ;;  %v3303_v62 = vld [vmem:[%s4255_s1 + $0x360] sm:$0xff]  }
  0x3a   :  { %3084 = vmatprep.subr.bf16.mxu1 %v3244_v63  ;;  %v3304_v63 = vld [vmem:[%s4255_s1 + $0x3e0] sm:$0xff]  }
  0x3c   :  { %3063 = vmatpush3.bf16.msra.mxu0 %v3245_v0  ;;  %v3305_v0 = vld [vmem:[%s4255_s1 + $0x320] sm:$0xff]  }
  0x3d   :  { %3085 = vmatpush3.bf16.msra.mxu1 %v3246_v1  ;;  %3064 = vmatprep.subr.bf16.mxu0 %v3247_v2  ;;  %v3306_v1 = vld [vmem:[%s4255_s1 + $0x3a0] sm:$0xff]   ;;  %v3307_v2 = vld [vmem:[%s4255_s1 + $0x358] sm:$0xff]  }
  0x3e   :  { %3086 = vmatprep.subr.bf16.mxu1 %v3248_v3  ;;  %v3308_v3 = vld [vmem:[%s4255_s1 + $0x3d8] sm:$0xff]  }
  0x40   :  { %3065 = vmatpush3.bf16.msra.mxu0 %v3249_v4  ;;  %v3309_v4 = vld [vmem:[%s4255_s1 + $0x318] sm:$0xff]  }
  0x41   :  { %3087 = vmatpush3.bf16.msra.mxu1 %v3250_v5  ;;  %3094 = vmatprep.subr.bf16.mxu0 %v3255_v12  ;;  %v3310_v5 = vld [vmem:[%s4255_s1 + $0x398] sm:$0xff]   ;;  %v3317_v12 = vld [vmem:[%s4255_s1 + $0x308] sm:$0xff]  }
  0x42   :  { %3116 = vmatprep.subr.bf16.mxu1 %v3256_v13  ;;  %v3318_v13 = vld [vmem:[%s4255_s1 + $0x388] sm:$0xff]  }
  0x43   :  { %1231 = vmatmul.mubr.bf16.vlgmr.msra.gmra.mxu0 %v2722_v7  ;;  %v3312_v7 = vld [vmem:[%s4255_s1 + $0x3d0] sm:$0xff]  }
  0x44   :  { %1271 = vmatmul.mubr.bf16.vlgmr.msra.gmra.mxu1 %v2724_v10  ;;  %3095 = vmatpush3.bf16.msra.mxu0 %v3257_v14  ;;  %v3315_v10 = vld [vmem:[%s4255_s1 + $0x348] sm:$0xff]   ;;  %v3319_v14 = vld [vmem:[%s4255_s1 + $0x340] sm:$0xff]  }
  0x45   :  { %3117 = vmatpush3.bf16.msra.mxu1 %v3258_v15  ;;  %3096 = vmatprep.subr.bf16.mxu0 %v3259_v16  ;;  %v3320_v15 = vld [vmem:[%s4255_s1 + $0x3c0] sm:$0xff]  }
  0x46   :  { %3118 = vmatprep.subr.bf16.mxu1 %v3260_v17  ;;  %1310 = vmatprep.mubr.bf16.mxu0 %v2727_v47  ;;  %v3321_v16 = vld [vmem:[%s4255_s1 + $0x300] sm:$0xff]  }
  0x47   :  { %1350 = vmatprep.mubr.bf16.mxu1 %v2729_v49  ;;  %v3322_v17 = vld [vmem:[%s4255_s1 + $0x380] sm:$0xff]   ;;  %v1514_v49 = vld [vmem:[%s4257_s3 + $0x248] sm:$0xff] }
  0x48   :  { %3097 = vmatpush3.bf16.msra.mxu0 %v3261_v18  ;;  %v29_v18 = vld [vmem:[%s4256_s0 + $0x30] sm:$0xff]  ;;  %v1513_v47 = vld [vmem:[%s4257_s3 + $0x240] sm:$0xff] }
  0x49   :  { %3119 = vmatpush3.bf16.msra.mxu1 %v3262_v19  ;;  %3098 = vmatprep.subr.bf16.mxu0 %v3263_v20  ;;  %v30_v19 = vld [vmem:[%s4256_s0 + $0x38] sm:$0xff]  ;;  %v2730_v20 = vcombine.low %v29_v18, %v29_v18 }
  0x4a   :  { %3120 = vmatprep.subr.bf16.mxu1 %v3264_v21  ;;  %v2731_v21 = vcombine.high %v29_v18, %v29_v18  ;;  %v1442_v18 = vld [vmem:[%s4257_s3 + $0x8] sm:$0xff] }
  0x4c   :  { %3099 = vmatpush3.bf16.msra.mxu0 %v3265_v22  ;;  %v2732_v22 = vcombine.low %v30_v19, %v30_v19 }
  0x4d   :  { %3121 = vmatpush3.bf16.msra.mxu1 %v3266_v23  ;;  %3100 = vmatprep.subr.bf16.mxu0 %v3267_v24  ;;  %v2733_v23 = vcombine.high %v30_v19, %v30_v19  ;;  %v1553_v24 = vld [vmem:[%s4257_s3 + $0x380] sm:$0xff] }
  0x4e   :  { %3122 = vmatprep.subr.bf16.mxu1 %v3268_v25  ;;  %v1561_v25 = vld [vmem:[%s4257_s3 + $0x3c0] sm:$0xff] }
  0x50   :  { %3101 = vmatpush3.bf16.msra.mxu0 %v3269_v26  ;;  %v1554_v26 = vld [vmem:[%s4257_s3 + $0x388] sm:$0xff] }
  0x51   :  { %3123 = vmatpush3.bf16.msra.mxu1 %v3270_v27  ;;  %3102 = vmatprep.subr.bf16.mxu0 %v3271_v28  ;;  %v2974_v27 = vcombine.low %v1553_v24, %v1561_v25  ;;  %v2975_v28 = vcombine.high %v1553_v24, %v1561_v25  ;;  %v3870_v24 = vld [vmem:[%s4257_s3 + $0x390] sm:$0xff] }
  0x52   :  { %3124 = vmatprep.subr.bf16.mxu1 %v3272_v29  ;;  %v1562_v29 = vld [vmem:[%s4257_s3 + $0x3c8] sm:$0xff]  ;;  %v3875_v25 = vld [vmem:[%s4257_s3 + $0x3d0] sm:$0xff] }
  0x54   :  { %3103 = vmatpush3.bf16.msra.mxu0 %v3273_v30  ;;  %v1537_v30 = vld [vmem:[%s4257_s3 + $0x300] sm:$0xff] }
  0x55   :  { %3125 = vmatpush3.bf16.msra.mxu1 %v3274_v31  ;;  %3104 = vmatprep.subr.bf16.mxu0 %v3275_v32  ;;  %v1545_v31 = vld [vmem:[%s4257_s3 + $0x340] sm:$0xff]  ;;  %v2976_v32 = vcombine.low %v1554_v26, %v1562_v29 }
  0x56   :  { %3126 = vmatprep.subr.bf16.mxu1 %v3276_v33  ;;  %v2977_v33 = vcombine.high %v1554_v26, %v1562_v29  ;;  %v3880_v26 = vld [vmem:[%s4257_s3 + $0x398] sm:$0xff] }
  0x57   :  { %v3889_v29 = vld [vmem:[%s4257_s3 + $0x3d8] sm:$0xff] }
  0x58   :  { %3105 = vmatpush3.bf16.msra.mxu0 %v3277_v34  ;;  %v2959_v34 = vcombine.high %v1537_v30, %v1545_v31 }
  0x59   :  { %3127 = vmatpush3.bf16.msra.mxu1 %v3278_v35  ;;  %3106 = vmatprep.subr.bf16.mxu0 %v3279_v36  ;;  %v1538_v35 = vld [vmem:[%s4257_s3 + $0x308] sm:$0xff] }
  0x5a   :  { %3128 = vmatprep.subr.bf16.mxu1 %v3280_v37  ;;  %v1546_v36 = vld [vmem:[%s4257_s3 + $0x348] sm:$0xff]  ;;  %v1521_v37 = vld [vmem:[%s4257_s3 + $0x280] sm:$0xff] }
  0x5c   :  { %3107 = vmatpush3.bf16.msra.mxu0 %v3281_v38  ;;  %v2961_v38 = vcombine.high %v1538_v35, %v1546_v36 }
  0x5d   :  { %3129 = vmatpush3.bf16.msra.mxu1 %v3282_v39  ;;  %3108 = vmatprep.subr.bf16.mxu0 %v3283_v40  ;;  %v1529_v39 = vld [vmem:[%s4257_s3 + $0x2c0] sm:$0xff]  ;;  %v1522_v40 = vld [vmem:[%s4257_s3 + $0x288] sm:$0xff] }
  0x5e   :  { %3130 = vmatprep.subr.bf16.mxu1 %v3284_v41  ;;  %v1530_v41 = vld [vmem:[%s4257_s3 + $0x2c8] sm:$0xff]  ;;  %v2943_v44 = vcombine.high %v1521_v37, %v1529_v39 }
  0x5f   :  { %v2945_v45 = vcombine.high %v1522_v40, %v1530_v41 }
  0x60   :  { %3109 = vmatpush3.bf16.msra.mxu0 %v3285_v42  ;;  %v2958_v42 = vcombine.low %v1537_v30, %v1545_v31  ;;  %v3327_v30 = vmov 0   ;;  %v2980_v31 = vcombine.low %v3880_v26, %v3889_v29 }
  0x61   :  { %3131 = vmatpush3.bf16.msra.mxu1 %v3286_v43  ;;  %3138 = vmatprep.subr.bf16.mxu0 %v3291_v50  ;;  %v2960_v43 = vcombine.low %v1538_v35, %v1546_v36  ;;  %v2942_v50 = vcombine.low %v1521_v37, %v1529_v39  ;;  %v2717_v35 = vld [vmem:[%s4258_s2] ss:$0 sm:$0xff] }
  0x62   :  { %3160 = vmatprep.subr.bf16.mxu1 %v3292_v51  ;;  %v2944_v51 = vcombine.low %v1522_v40, %v1530_v41 }
  0x63   :  { %1311 = vmatmul.mubr.bf16.vlgmr.msra.gmra.mxu0 %v2726_v46  ;;  %v1505_v46 = vld [vmem:[%s4257_s3 + $0x200] sm:$0xff] }
  0x64   :  { %1351 = vmatmul.mubr.bf16.vlgmr.msra.gmra.mxu1 %v2728_v48  ;;  %3139 = vmatpush3.bf16.msra.mxu0 %v3293_v52  ;;  %v1506_v48 = vld [vmem:[%s4257_s3 + $0x208] sm:$0xff]  ;;  %v2927_v52 = vcombine.high %v1505_v46, %v1513_v47 }
  0x65   :  { %3161 = vmatpush3.bf16.msra.mxu1 %v3294_v53  ;;  %3140 = vmatprep.subr.bf16.mxu0 %v3295_v54  ;;  %v2929_v53 = vcombine.high %v1506_v48, %v1514_v49  ;;  %v2926_v54 = vcombine.low %v1505_v46, %v1513_v47 }
  0x66   :  { %3162 = vmatprep.subr.bf16.mxu1 %v3296_v55  ;;  %1390 = vmatprep.mubr.bf16.mxu0 %v2731_v21  ;;  %v2928_v55 = vcombine.low %v1506_v48, %v1514_v49 }
  0x67   :  { %1430 = vmatprep.mubr.bf16.mxu1 %v2733_v23 }
  0x68   :  { %3141 = vmatpush3.bf16.msra.mxu0 %v3297_v56  ;;  %v1489_v56 = vld [vmem:[%s4257_s3 + $0x180] sm:$0xff] }
  0x69   :  { %3163 = vmatpush3.bf16.msra.mxu1 %v3298_v57  ;;  %3142 = vmatprep.subr.bf16.mxu0 %v3299_v58  ;;  %v1497_v57 = vld [vmem:[%s4257_s3 + $0x1c0] sm:$0xff]  ;;  %v1490_v58 = vld [vmem:[%s4257_s3 + $0x188] sm:$0xff] }
  0x6a   :  { %3164 = vmatprep.subr.bf16.mxu1 %v3300_v59  ;;  %v2911_v59 = vcombine.high %v1489_v56, %v1497_v57 }
  0x6c   :  { %3143 = vmatpush3.bf16.msra.mxu0 %v3301_v60  ;;  %v1498_v60 = vld [vmem:[%s4257_s3 + $0x1c8] sm:$0xff] }
  0x6d   :  { %3165 = vmatpush3.bf16.msra.mxu1 %v3302_v61  ;;  %3144 = vmatprep.subr.bf16.mxu0 %v3303_v62  ;;  %v2910_v61 = vcombine.low %v1489_v56, %v1497_v57  ;;  %v2912_v62 = vcombine.low %v1490_v58, %v1498_v60 }
  0x6e   :  { %3166 = vmatprep.subr.bf16.mxu1 %v3304_v63  ;;  %v2913_v63 = vcombine.high %v1490_v58, %v1498_v60 }
  0x70   :  { %3145 = vmatpush3.bf16.msra.mxu0 %v3305_v0  ;;  %v1473_v0 = vld [vmem:[%s4257_s3 + $0x100] sm:$0xff] }
  0x71   :  { %3167 = vmatpush3.bf16.msra.mxu1 %v3306_v1  ;;  %3146 = vmatprep.subr.bf16.mxu0 %v3307_v2  ;;  %v1481_v1 = vld [vmem:[%s4257_s3 + $0x140] sm:$0xff]  ;;  %v1474_v2 = vld [vmem:[%s4257_s3 + $0x108] sm:$0xff] }
  0x72   :  { %3168 = vmatprep.subr.bf16.mxu1 %v3308_v3  ;;  %v2895_v3 = vcombine.high %v1473_v0, %v1481_v1 }
  0x74   :  { %3147 = vmatpush3.bf16.msra.mxu0 %v3309_v4  ;;  %v1482_v4 = vld [vmem:[%s4257_s3 + $0x148] sm:$0xff] }
  0x75   :  { %3169 = vmatpush3.bf16.msra.mxu1 %v3310_v5  ;;  %3148 = vmatprep.subr.bf16.mxu0 %v3311_v6  ;;  %v2894_v5 = vcombine.low %v1473_v0, %v1481_v1  ;;  %v2896_v6 = vcombine.low %v1474_v2, %v1482_v4 }
  0x76   :  { %3170 = vmatprep.subr.bf16.mxu1 %v3312_v7  ;;  %v2897_v7 = vcombine.high %v1474_v2, %v1482_v4 }
  0x78   :  { %3149 = vmatpush3.bf16.msra.mxu0 %v3313_v8  ;;  %v1457_v8 = vld [vmem:[%s4257_s3 + $0x80] sm:$0xff] }
  0x79   :  { %3171 = vmatpush3.bf16.msra.mxu1 %v3314_v9  ;;  %3150 = vmatprep.subr.bf16.mxu0 %v3315_v10  ;;  %v1465_v9 = vld [vmem:[%s4257_s3 + $0xc0] sm:$0xff]  ;;  %v1458_v10 = vld [vmem:[%s4257_s3 + $0x88] sm:$0xff] }
  0x7a   :  { %3172 = vmatprep.subr.bf16.mxu1 %v3316_v11  ;;  %v2879_v11 = vcombine.high %v1457_v8, %v1465_v9 }
  0x7c   :  { %3151 = vmatpush3.bf16.msra.mxu0 %v3317_v12  ;;  %v1466_v12 = vld [vmem:[%s4257_s3 + $0xc8] sm:$0xff] }
  0x7d   :  { %3173 = vmatpush3.bf16.msra.mxu1 %v3318_v13  ;;  %3152 = vmatprep.subr.bf16.mxu0 %v3319_v14  ;;  %v2878_v13 = vcombine.low %v1457_v8, %v1465_v9  ;;  %v2880_v14 = vcombine.low %v1458_v10, %v1466_v12 }
  0x7e   :  { %3174 = vmatprep.subr.bf16.mxu1 %v3320_v15  ;;  %v2881_v15 = vcombine.high %v1458_v10, %v1466_v12 }
  0x80   :  { %3153 = vmatpush3.bf16.msra.mxu0 %v3321_v16  ;;  %v1441_v16 = vld [vmem:[%s4257_s3] sm:$0xff] }
  0x81   :  { %3175 = vmatpush3.bf16.msra.mxu1 %v3322_v17  ;;  %2293 = vmatprep.subr.bf16.mxu0 %v2975_v28  ;;  %v1449_v17 = vld [vmem:[%s4257_s3 + $0x40] sm:$0xff]  ;;  %v2979_v28 = vcombine.high %v3870_v24, %v3875_v25 }
  0x82   :  { %2334 = vmatprep.subr.bf16.mxu1 %v2977_v33  ;;  %v2863_v19 = vcombine.high %v1441_v16, %v1449_v17  ;;  %v2862_v21 = vcombine.low %v1441_v16, %v1449_v17  ;;  %v1547_v17 = vld [vmem:[%s4257_s3 + $0x350] sm:$0xff] }
  0x83   :  { %1391 = vmatmul.mubr.bf16.vlgmr.msra.gmra.mxu0 %v2730_v20  ;;  %v1450_v20 = vld [vmem:[%s4257_s3 + $0x48] sm:$0xff] }
  0x84   :  { %1431 = vmatmul.mubr.bf16.vlgmr.msra.gmra.mxu1 %v2732_v22  ;;  %2294 = vmatpush1.bf16.msra.mxu0 %v2974_v27  ;;  %v2864_v22 = vcombine.low %v1442_v18, %v1450_v20  ;;  %v2865_v23 = vcombine.high %v1442_v18, %v1450_v20  ;;  %v2978_v27 = vcombine.low %v3870_v24, %v3875_v25  ;;  %v1540_v18 = vld [vmem:[%s4257_s3 + $0x318] sm:$0xff] }
  0x85   :  { %2335 = vmatpush1.bf16.msra.mxu1 %v2976_v32  ;;  %2295 = vmatprep.subr.bf16.mxu0 %v2959_v34  ;;  %v2981_v32 = vcombine.high %v3880_v26, %v3889_v29  ;;  %v1508_v24 = vld [vmem:[%s4257_s3 + $0x218] sm:$0xff] }
  0x86   :  { %2336 = vmatprep.subr.bf16.mxu1 %v2961_v38  ;;  %2325 = vmatprep.mubr.bf16.mxu0 %v3327_v30  ;;  %v1516_v25 = vld [vmem:[%s4257_s3 + $0x258] sm:$0xff] }
  0x87   :  { %2366 = vmatprep.mubr.bf16.mxu1 %v3327_v30 }
  0x88   :  { %2296 = vmatpush1.bf16.msra.mxu0 %v2958_v42 }
  0x89   :  { %2337 = vmatpush1.bf16.msra.mxu1 %v2960_v43  ;;  %2297 = vmatprep.subr.bf16.mxu0 %v2943_v44 }
  0x8a   :  { %2338 = vmatprep.subr.bf16.mxu1 %v2945_v45 }
  0x8c   :  { %2298 = vmatpush1.bf16.msra.mxu0 %v2942_v50 }
  0x8d   :  { %2339 = vmatpush1.bf16.msra.mxu1 %v2944_v51  ;;  %2299 = vmatprep.subr.bf16.mxu0 %v2927_v52 }
  0x8e   :  { %2340 = vmatprep.subr.bf16.mxu1 %v2929_v53 }
  0x90   :  { %2300 = vmatpush1.bf16.msra.mxu0 %v2926_v54 }
  0x91   :  { %2341 = vmatpush1.bf16.msra.mxu1 %v2928_v55  ;;  %2301 = vmatprep.subr.bf16.mxu0 %v2911_v59 }
  0x92   :  { %2342 = vmatprep.subr.bf16.mxu1 %v2913_v63 }
  0x94   :  { %2302 = vmatpush1.bf16.msra.mxu0 %v2910_v61 }
  0x95   :  { %2343 = vmatpush1.bf16.msra.mxu1 %v2912_v62  ;;  %2303 = vmatprep.subr.bf16.mxu0 %v2895_v3 }
  0x96   :  { %2344 = vmatprep.subr.bf16.mxu1 %v2897_v7 }
  0x98   :  { %2304 = vmatpush1.bf16.msra.mxu0 %v2894_v5 }
  0x99   :  { %2345 = vmatpush1.bf16.msra.mxu1 %v2896_v6  ;;  %2305 = vmatprep.subr.bf16.mxu0 %v2879_v11 }
  0x9a   :  { %2346 = vmatprep.subr.bf16.mxu1 %v2881_v15  ;;  %v1539_v15 = vld [vmem:[%s4257_s3 + $0x310] sm:$0xff] }
  0x9c   :  { %2306 = vmatpush1.bf16.msra.mxu0 %v2878_v13 }
  0x9d   :  { %2347 = vmatpush1.bf16.msra.mxu1 %v2880_v14  ;;  %2307 = vmatprep.subr.bf16.mxu0 %v2863_v19  ;;  %v1548_v19 = vld [vmem:[%s4257_s3 + $0x358] sm:$0xff] }
  0x9e   :  { %2348 = vmatprep.subr.bf16.mxu1 %v2865_v23  ;;  %v2963_v23 = vcombine.high %v1539_v15, %v1547_v17 }
  0xa0   :  { %2308 = vmatpush1.bf16.msra.mxu0 %v2862_v21 }
  0xa1   :  { %2349 = vmatpush1.bf16.msra.mxu1 %v2864_v22  ;;  %2375 = vmatprep.subr.bf16.mxu0 %v2979_v28  ;;  %v2965_v28 = vcombine.high %v1540_v18, %v1548_v19 }
  0xa2   :  { %2416 = vmatprep.subr.bf16.mxu1 %v2981_v32  ;;  %v1523_v32 = vld [vmem:[%s4257_s3 + $0x290] sm:$0xff] }
  0xe3   :  { %v3022_v33 = vpop.f32.mrf.mxu0 }
  0xe4   :  { %v3044_v34 = vpop.f32.mrf.mxu1 }
  0xe5   :  { %v3023_v36 = vpop.f32.mrf.mxu0 }
  0xe6   :  { %v3045_v37 = vpop.f32.mrf.mxu1  ;;  %v3024_v38 = vadd.f32 %v3023_v36, %v3022_v33  ;;  %v1531_v33 = vld [vmem:[%s4257_s3 + $0x2d0] sm:$0xff]  ;;  %v2962_v36 = vcombine.low %v1539_v15, %v1547_v17 }
  0xe7   :  { %v3046_v39 = vadd.f32 %v3045_v37, %v3044_v34  ;;  %v3025_v40 = vpop.f32.mrf.mxu0  ;;  %v1524_v34 = vld [vmem:[%s4257_s3 + $0x298] sm:$0xff]  ;;  %v2964_v37 = vcombine.low %v1540_v18, %v1548_v19  ;;  %v2946_v26 = vcombine.low %v1523_v32, %v1531_v33  ;;  %v1541_v18 = vld [vmem:[%s4257_s3 + $0x320] sm:$0xff] }
  0xe8   :  { %v3047_v41 = vpop.f32.mrf.mxu1  ;;  %v1153_v42 = vadd.f32 %v3024_v38, %v2717_v35  ;;  %v1532_v35 = vld [vmem:[%s4257_s3 + $0x2d8] sm:$0xff]  ;;  %v2947_v38 = vcombine.high %v1523_v32, %v1531_v33  ;;  %v1507_v40 = vld [vmem:[%s4257_s3 + $0x210] sm:$0xff]  ;;  %v1549_v19 = vld [vmem:[%s4257_s3 + $0x360] sm:$0xff] }
  0xe9   :  { %v3026_v43 = vpop.f32.mrf.mxu0  ;;  %v1515_v41 = vld [vmem:[%s4257_s3 + $0x250] sm:$0xff]  ;;  %v2967_v32 = vcombine.high %v1541_v18, %v1549_v19 }
  0xea   :  { %v3048_v44 = vpop.f32.mrf.mxu1  ;;  %v1193_v45 = vadd.f32 %v3046_v39, %v1153_v42  ;;  %v2949_v39 = vcombine.high %v1524_v34, %v1532_v35  ;;  %v2931_v29 = vcombine.high %v1507_v40, %v1515_v41  ;;  %v1491_v42 = vld [vmem:[%s4257_s3 + $0x190] sm:$0xff] }
  0xeb   :  { %v1499_v43 = vld [vmem:[%s4257_s3 + $0x1d0] sm:$0xff]  ;;  %v1492_v44 = vld [vmem:[%s4257_s3 + $0x198] sm:$0xff] }
 0x103   :  { %v3066_v46 = vpop.f32.mrf.mxu0 }
 0x104   :  { %v3088_v47 = vpop.f32.mrf.mxu1 }
 0x105   :  { %v3067_v48 = vpop.f32.mrf.mxu0 }
 0x106   :  { %v3089_v49 = vpop.f32.mrf.mxu1  ;;  %v3068_v62 = vadd.f32 %v3067_v48, %v3066_v46  ;;  %v2930_v46 = vcombine.low %v1507_v40, %v1515_v41  ;;  %v2915_v48 = vcombine.high %v1491_v42, %v1499_v43 }
 0x107   :  { %v3069_v50 = vpop.f32.mrf.mxu0  ;;  %v3090_v0 = vadd.f32 %v3089_v49, %v3088_v47  ;;  %v2932_v47 = vcombine.low %v1508_v24, %v1516_v25 }
 0x108   :  { %v3091_v51 = vpop.f32.mrf.mxu1  ;;  %v1233_v63 = vadd.f32 %v3068_v62, %v1193_v45  ;;  %v1500_v45 = vld [vmem:[%s4257_s3 + $0x1d8] sm:$0xff]  ;;  %v1475_v50 = vld [vmem:[%s4257_s3 + $0x110] sm:$0xff] }
 0x109   :  { %v3070_v52 = vpop.f32.mrf.mxu0  ;;  %v2917_v49 = vcombine.high %v1492_v44, %v1500_v45  ;;  %v1483_v51 = vld [vmem:[%s4257_s3 + $0x150] sm:$0xff] }
 0x10a   :  { %v3092_v53 = vpop.f32.mrf.mxu1  ;;  %v1273_v2 = vadd.f32 %v3090_v0, %v1233_v63  ;;  %v1476_v52 = vld [vmem:[%s4257_s3 + $0x118] sm:$0xff]  ;;  %v2898_v62 = vcombine.low %v1475_v50, %v1483_v51 }
 0x10b   :  { %v1484_v53 = vld [vmem:[%s4257_s3 + $0x158] sm:$0xff] }
 0x10c   :  { %v2900_v63 = vcombine.low %v1476_v52, %v1484_v53 }
 0x123   :  { %v3110_v54 = vpop.f32.mrf.mxu0 }
 0x124   :  { %v3132_v55 = vpop.f32.mrf.mxu1 }
 0x125   :  { %v3111_v56 = vpop.f32.mrf.mxu0 }
 0x126   :  { %v3133_v57 = vpop.f32.mrf.mxu1  ;;  %v3112_v1 = vadd.f32 %v3111_v56, %v3110_v54  ;;  %v2914_v54 = vcombine.low %v1491_v42, %v1499_v43  ;;  %v2899_v56 = vcombine.high %v1475_v50, %v1483_v51 }
 0x127   :  { %v3113_v58 = vpop.f32.mrf.mxu0  ;;  %v3134_v4 = vadd.f32 %v3133_v57, %v3132_v55  ;;  %v2916_v55 = vcombine.low %v1492_v44, %v1500_v45  ;;  %v2901_v57 = vcombine.high %v1476_v52, %v1484_v53  ;;  %v1493_v44 = vld [vmem:[%s4257_s3 + $0x1a0] sm:$0xff] }
 0x128   :  { %v3135_v59 = vpop.f32.mrf.mxu1  ;;  %v1313_v3 = vadd.f32 %v3112_v1, %v1273_v2  ;;  %v1459_v58 = vld [vmem:[%s4257_s3 + $0x90] sm:$0xff]  ;;  %v1501_v45 = vld [vmem:[%s4257_s3 + $0x1e0] sm:$0xff] }
 0x129   :  { %v3114_v60 = vpop.f32.mrf.mxu0  ;;  %v1467_v59 = vld [vmem:[%s4257_s3 + $0xd0] sm:$0xff]  ;;  %v2919_v50 = vcombine.high %v1493_v44, %v1501_v45  ;;  %v1477_v52 = vld [vmem:[%s4257_s3 + $0x120] sm:$0xff] }
 0x12a   :  { %v3136_v61 = vpop.f32.mrf.mxu1  ;;  %v1353_v8 = vadd.f32 %v3134_v4, %v1313_v3  ;;  %v1460_v60 = vld [vmem:[%s4257_s3 + $0x98] sm:$0xff]  ;;  %v2883_v0 = vcombine.high %v1459_v58, %v1467_v59  ;;  %v1443_v2 = vld [vmem:[%s4257_s3 + $0x10] sm:$0xff]  ;;  %v1485_v53 = vld [vmem:[%s4257_s3 + $0x160] sm:$0xff] }
 0x12b   :  { %v1468_v61 = vld [vmem:[%s4257_s3 + $0xd8] sm:$0xff]  ;;  %v1451_v3 = vld [vmem:[%s4257_s3 + $0x50] sm:$0xff] }
 0x12c   :  { %v2885_v1 = vcombine.high %v1460_v60, %v1468_v61  ;;  %v1444_v4 = vld [vmem:[%s4257_s3 + $0x18] sm:$0xff] }
 0x143   :  { %v3154_v5 = vpop.f32.mrf.mxu0 }
 0x144   :  { %v3176_v6 = vpop.f32.mrf.mxu1 }
 0x145   :  { %v3155_v7 = vpop.f32.mrf.mxu0 }
 0x146   :  { %v3156_v9 = vadd.f32 %v3155_v7, %v3154_v5  ;;  %v3177_v10 = vpop.f32.mrf.mxu1  ;;  %v1452_v5 = vld [vmem:[%s4257_s3 + $0x58] sm:$0xff]  ;;  %v2884_v7 = vcombine.low %v1460_v60, %v1468_v61  ;;  %v1461_v60 = vld [vmem:[%s4257_s3 + $0xa0] sm:$0xff] }
 0x147   :  { %v3157_v11 = vpop.f32.mrf.mxu0  ;;  %v3178_v13 = vadd.f32 %v3177_v10, %v3176_v6  ;;  %v2882_v6 = vcombine.low %v1459_v58, %v1467_v59  ;;  %v1557_v10 = vld [vmem:[%s4257_s3 + $0x3a0] sm:$0xff]  ;;  %v2868_v15 = vcombine.low %v1444_v4, %v1452_v5  ;;  %v2903_v58 = vcombine.high %v1477_v52, %v1485_v53 }
 0x148   :  { %v1393_v12 = vadd.f32 %v3156_v9, %v1353_v8  ;;  %v3179_v14 = vpop.f32.mrf.mxu1  ;;  %v2867_v8 = vcombine.high %v1443_v2, %v1451_v3  ;;  %v2869_v9 = vcombine.high %v1444_v4, %v1452_v5  ;;  %v1565_v11 = vld [vmem:[%s4257_s3 + $0x3e0] sm:$0xff] }
 0x149   :  { %v3158_v16 = vpop.f32.mrf.mxu0  ;;  %v2866_v14 = vcombine.low %v1443_v2, %v1451_v3  ;;  %v1469_v61 = vld [vmem:[%s4257_s3 + $0xe0] sm:$0xff] }
 0x14a   :  { %v1433_v20 = vadd.f32 %v3178_v13, %v1393_v12  ;;  %v3180_v21 = vpop.f32.mrf.mxu1  ;;  %v1558_v12 = vld [vmem:[%s4257_s3 + $0x3a8] sm:$0xff]  ;;  %v2983_v16 = vcombine.high %v1557_v10, %v1565_v11  ;;  %v2887_v2 = vcombine.high %v1461_v60, %v1469_v61  ;;  %v1445_v4 = vld [vmem:[%s4257_s3 + $0x20] sm:$0xff] }
 0x14b   :  { %v1566_v13 = vld [vmem:[%s4257_s3 + $0x3e8] sm:$0xff]  ;;  %v1453_v5 = vld [vmem:[%s4257_s3 + $0x60] sm:$0xff] }
 0x14c   :  { %1438 = vst [vmem:[%s4259_s5] sm:$0xff] %v1433_v20  ;;  %v3915_v22 = vpack.c.bf16 %v1433_v20, %v1433_v20  ;;  %v2985_v17 = vcombine.high %v1558_v12, %v1566_v13  ;;  %v1542_v20 = vld [vmem:[%s4257_s3 + $0x328] sm:$0xff] }
 0x14d   :  { %v1550_v21 = vld [vmem:[%s4257_s3 + $0x368] sm:$0xff] }
 0x14e   :  { %2326 = vmatmul.mubr.bf16.vlgmr.msra.gmra.mxu0 %v3915_v22  ;;  %2367 = vmatmul.mubr.bf16.vlgmr.msra.gmra.mxu1 %v3915_v22  ;;  %v2969_v33 = vcombine.high %v1542_v20, %v1550_v21 }
 0x14f   :  { %2376 = vmatpush1.bf16.msra.mxu0 %v2978_v27  ;;  %2417 = vmatpush1.bf16.msra.mxu1 %v2980_v31  ;;  %v2948_v27 = vcombine.low %v1524_v34, %v1532_v35  ;;  %v2933_v31 = vcombine.high %v1508_v24, %v1516_v25  ;;  %v1525_v34 = vld [vmem:[%s4257_s3 + $0x2a0] sm:$0xff] }
 0x150   :  { %2377 = vmatprep.subr.bf16.mxu0 %v2963_v23  ;;  %2418 = vmatprep.subr.bf16.mxu1 %v2965_v28  ;;  %v2982_v23 = vcombine.low %v1557_v10, %v1565_v11  ;;  %v2984_v28 = vcombine.low %v1558_v12, %v1566_v13  ;;  %v1533_v35 = vld [vmem:[%s4257_s3 + $0x2e0] sm:$0xff]  ;;  %v2871_v10 = vcombine.high %v1445_v4, %v1453_v5  ;;  %v1559_v12 = vld [vmem:[%s4257_s3 + $0x3b0] sm:$0xff] }
 0x151   :  { %2407 = vmatprep.mubr.bf16.mxu0 %v3327_v30  ;;  %2448 = vmatprep.mubr.bf16.mxu1 %v3327_v30  ;;  %v2951_v40 = vcombine.high %v1525_v34, %v1533_v35  ;;  %v1509_v24 = vld [vmem:[%s4257_s3 + $0x220] sm:$0xff]  ;;  %v1567_v13 = vld [vmem:[%s4257_s3 + $0x3f0] sm:$0xff] }
 0x152   :  { %v1517_v25 = vld [vmem:[%s4257_s3 + $0x260] sm:$0xff] }
 0x153   :  { %2378 = vmatpush1.bf16.msra.mxu0 %v2962_v36  ;;  %2419 = vmatpush1.bf16.msra.mxu1 %v2964_v37  ;;  %v1526_v36 = vld [vmem:[%s4257_s3 + $0x2a8] sm:$0xff]  ;;  %v2935_v42 = vcombine.high %v1509_v24, %v1517_v25 }
 0x154   :  { %2379 = vmatprep.subr.bf16.mxu0 %v2947_v38  ;;  %2420 = vmatprep.subr.bf16.mxu1 %v2949_v39  ;;  %v1534_v37 = vld [vmem:[%s4257_s3 + $0x2e8] sm:$0xff]  ;;  %v2966_v38 = vcombine.low %v1541_v18, %v1549_v19  ;;  %v2968_v39 = vcombine.low %v1542_v20, %v1550_v21  ;;  %v2987_v18 = vcombine.high %v1559_v12, %v1567_v13  ;;  %v1543_v20 = vld [vmem:[%s4257_s3 + $0x330] sm:$0xff] }
 0x155   :  { %v2953_v41 = vcombine.high %v1526_v36, %v1534_v37  ;;  %v1551_v21 = vld [vmem:[%s4257_s3 + $0x370] sm:$0xff] }
 0x157   :  { %2380 = vmatpush1.bf16.msra.mxu0 %v2946_v26  ;;  %2421 = vmatpush1.bf16.msra.mxu1 %v2948_v27  ;;  %v1510_v26 = vld [vmem:[%s4257_s3 + $0x228] sm:$0xff] }
 0x158   :  { %2381 = vmatprep.subr.bf16.mxu0 %v2931_v29  ;;  %2422 = vmatprep.subr.bf16.mxu1 %v2933_v31  ;;  %v1518_v27 = vld [vmem:[%s4257_s3 + $0x268] sm:$0xff]  ;;  %v2950_v29 = vcombine.low %v1525_v34, %v1533_v35  ;;  %v2952_v31 = vcombine.low %v1526_v36, %v1534_v37  ;;  %v2971_v34 = vcombine.high %v1543_v20, %v1551_v21  ;;  %v1527_v36 = vld [vmem:[%s4257_s3 + $0x2b0] sm:$0xff] }
 0x159   :  { %v2937_v43 = vcombine.high %v1510_v26, %v1518_v27  ;;  %v1535_v37 = vld [vmem:[%s4257_s3 + $0x2f0] sm:$0xff] }
 0x15b   :  { %2382 = vmatpush1.bf16.msra.mxu0 %v2930_v46  ;;  %2423 = vmatpush1.bf16.msra.mxu1 %v2932_v47  ;;  %v1494_v46 = vld [vmem:[%s4257_s3 + $0x1a8] sm:$0xff] }
 0x15c   :  { %2383 = vmatprep.subr.bf16.mxu0 %v2915_v48  ;;  %2424 = vmatprep.subr.bf16.mxu1 %v2917_v49  ;;  %v1502_v47 = vld [vmem:[%s4257_s3 + $0x1e8] sm:$0xff]  ;;  %v2934_v48 = vcombine.low %v1509_v24, %v1517_v25  ;;  %v2936_v49 = vcombine.low %v1510_v26, %v1518_v27  ;;  %v2955_v24 = vcombine.high %v1527_v36, %v1535_v37  ;;  %v1511_v26 = vld [vmem:[%s4257_s3 + $0x230] sm:$0xff] }
 0x15d   :  { %v2921_v51 = vcombine.high %v1494_v46, %v1502_v47  ;;  %v1519_v27 = vld [vmem:[%s4257_s3 + $0x270] sm:$0xff] }
 0x15f   :  { %2384 = vmatpush1.bf16.msra.mxu0 %v2914_v54  ;;  %2425 = vmatpush1.bf16.msra.mxu1 %v2916_v55  ;;  %v1478_v54 = vld [vmem:[%s4257_s3 + $0x128] sm:$0xff] }
 0x160   :  { %2385 = vmatprep.subr.bf16.mxu0 %v2899_v56  ;;  %2426 = vmatprep.subr.bf16.mxu1 %v2901_v57  ;;  %v1486_v55 = vld [vmem:[%s4257_s3 + $0x168] sm:$0xff]  ;;  %v2918_v56 = vcombine.low %v1493_v44, %v1501_v45  ;;  %v2920_v57 = vcombine.low %v1494_v46, %v1502_v47  ;;  %v2939_v44 = vcombine.high %v1511_v26, %v1519_v27  ;;  %v1495_v46 = vld [vmem:[%s4257_s3 + $0x1b0] sm:$0xff] }
 0x161   :  { %v2905_v59 = vcombine.high %v1478_v54, %v1486_v55  ;;  %v1503_v47 = vld [vmem:[%s4257_s3 + $0x1f0] sm:$0xff] }
 0x163   :  { %2386 = vmatpush1.bf16.msra.mxu0 %v2898_v62  ;;  %2427 = vmatpush1.bf16.msra.mxu1 %v2900_v63  ;;  %v1462_v62 = vld [vmem:[%s4257_s3 + $0xa8] sm:$0xff] }
 0x164   :  { %2387 = vmatprep.subr.bf16.mxu0 %v2883_v0  ;;  %2428 = vmatprep.subr.bf16.mxu1 %v2885_v1  ;;  %v1470_v63 = vld [vmem:[%s4257_s3 + $0xe8] sm:$0xff]  ;;  %v2902_v0 = vcombine.low %v1477_v52, %v1485_v53  ;;  %v2904_v1 = vcombine.low %v1478_v54, %v1486_v55  ;;  %v1479_v53 = vld [vmem:[%s4257_s3 + $0x130] sm:$0xff]  ;;  %v1480_v55 = vld [vmem:[%s4257_s3 + $0x138] sm:$0xff] }
 0x165   :  { %v2889_v3 = vcombine.high %v1462_v62, %v1470_v63  ;;  %v1487_v54 = vld [vmem:[%s4257_s3 + $0x170] sm:$0xff] }
 0x167   :  { %2388 = vmatpush1.bf16.msra.mxu0 %v2882_v6  ;;  %2429 = vmatpush1.bf16.msra.mxu1 %v2884_v7  ;;  %v1446_v6 = vld [vmem:[%s4257_s3 + $0x28] sm:$0xff] }
 0x168   :  { %2389 = vmatprep.subr.bf16.mxu0 %v2867_v8  ;;  %2430 = vmatprep.subr.bf16.mxu1 %v2869_v9  ;;  %v1454_v7 = vld [vmem:[%s4257_s3 + $0x68] sm:$0xff]  ;;  %v2886_v8 = vcombine.low %v1461_v60, %v1469_v61  ;;  %v2888_v9 = vcombine.low %v1462_v62, %v1470_v63  ;;  %v1463_v61 = vld [vmem:[%s4257_s3 + $0xb0] sm:$0xff]  ;;  %v1464_v63 = vld [vmem:[%s4257_s3 + $0xb8] sm:$0xff] }
 0x169   :  { %v2873_v11 = vcombine.high %v1446_v6, %v1454_v7  ;;  %v1471_v62 = vld [vmem:[%s4257_s3 + $0xf0] sm:$0xff] }
 0x16b   :  { %2390 = vmatpush1.bf16.msra.mxu0 %v2866_v14  ;;  %2431 = vmatpush1.bf16.msra.mxu1 %v2868_v15  ;;  %v1560_v14 = vld [vmem:[%s4257_s3 + $0x3b8] sm:$0xff] }
 0x16c   :  { %2457 = vmatprep.subr.bf16.mxu0 %v2983_v16  ;;  %2498 = vmatprep.subr.bf16.mxu1 %v2985_v17  ;;  %v1568_v15 = vld [vmem:[%s4257_s3 + $0x3f8] sm:$0xff]  ;;  %v2870_v16 = vcombine.low %v1445_v4, %v1453_v5  ;;  %v2872_v17 = vcombine.low %v1446_v6, %v1454_v7  ;;  %v1447_v5 = vld [vmem:[%s4257_s3 + $0x30] sm:$0xff] }
 0x16d   :  { %v2989_v19 = vcombine.high %v1560_v14, %v1568_v15  ;;  %v1455_v6 = vld [vmem:[%s4257_s3 + $0x70] sm:$0xff]  ;;  %v1448_v7 = vld [vmem:[%s4257_s3 + $0x38] sm:$0xff] }
 0x16e   :  { %2408 = vmatmul.mubr.bf16.vlgmr.msra.gmra.mxu0 %v3915_v22  ;;  %2449 = vmatmul.mubr.bf16.vlgmr.msra.gmra.mxu1 %v3915_v22 }
 0x16f   :  { %2458 = vmatpush1.bf16.msra.mxu0 %v2982_v23  ;;  %2499 = vmatpush1.bf16.msra.mxu1 %v2984_v28  ;;  %v1544_v23 = vld [vmem:[%s4257_s3 + $0x338] sm:$0xff] }
 0x170   :  { %2459 = vmatprep.subr.bf16.mxu0 %v2967_v32  ;;  %2500 = vmatprep.subr.bf16.mxu1 %v2969_v33  ;;  %v1552_v28 = vld [vmem:[%s4257_s3 + $0x378] sm:$0xff]  ;;  %v2986_v32 = vcombine.low %v1559_v12, %v1567_v13  ;;  %v2988_v33 = vcombine.low %v1560_v14, %v1568_v15  ;;  %v2874_v13 = vcombine.low %v1447_v5, %v1455_v6  ;;  %v1573_v15 = vlaneseq }
 0x171   :  { %2489 = vmatprep.mubr.bf16.mxu0 %v3327_v30  ;;  %2530 = vmatprep.mubr.bf16.mxu1 %v3327_v30  ;;  %v2973_v35 = vcombine.high %v1544_v23, %v1552_v28 }
 0x173   :  { %2460 = vmatpush1.bf16.msra.mxu0 %v2966_v38  ;;  %2501 = vmatpush1.bf16.msra.mxu1 %v2968_v39  ;;  %v1528_v38 = vld [vmem:[%s4257_s3 + $0x2b8] sm:$0xff] }
 0x174   :  { %2461 = vmatprep.subr.bf16.mxu0 %v2951_v40  ;;  %2502 = vmatprep.subr.bf16.mxu1 %v2953_v41  ;;  %v1536_v39 = vld [vmem:[%s4257_s3 + $0x2f8] sm:$0xff]  ;;  %v2970_v40 = vcombine.low %v1543_v20, %v1551_v21  ;;  %v2972_v41 = vcombine.low %v1544_v23, %v1552_v28 }
 0x175   :  { %v2957_v25 = vcombine.high %v1528_v38, %v1536_v39 }
 0x177   :  { %2462 = vmatpush1.bf16.msra.mxu0 %v2950_v29  ;;  %2503 = vmatpush1.bf16.msra.mxu1 %v2952_v31  ;;  %v1512_v29 = vld [vmem:[%s4257_s3 + $0x238] sm:$0xff] }
 0x178   :  { %2463 = vmatprep.subr.bf16.mxu0 %v2935_v42  ;;  %2504 = vmatprep.subr.bf16.mxu1 %v2937_v43  ;;  %v1520_v31 = vld [vmem:[%s4257_s3 + $0x278] sm:$0xff]  ;;  %v2954_v42 = vcombine.low %v1527_v36, %v1535_v37  ;;  %v2956_v43 = vcombine.low %v1528_v38, %v1536_v39 }
 0x179   :  { %v2941_v45 = vcombine.high %v1512_v29, %v1520_v31 }
 0x17b   :  { %2464 = vmatpush1.bf16.msra.mxu0 %v2934_v48  ;;  %2505 = vmatpush1.bf16.msra.mxu1 %v2936_v49  ;;  %v1504_v48 = vld [vmem:[%s4257_s3 + $0x1f8] sm:$0xff]  ;;  %v2938_v49 = vcombine.low %v1511_v26, %v1519_v27 }
 0x17c   :  { %2465 = vmatprep.subr.bf16.mxu0 %v2919_v50  ;;  %2506 = vmatprep.subr.bf16.mxu1 %v2921_v51  ;;  %v2940_v50 = vcombine.low %v1512_v29, %v1520_v31  ;;  %v2923_v51 = vcombine.high %v1495_v46, %v1503_v47 }
 0x17f   :  { %2466 = vmatpush1.bf16.msra.mxu0 %v2918_v56  ;;  %2507 = vmatpush1.bf16.msra.mxu1 %v2920_v57  ;;  %v1488_v56 = vld [vmem:[%s4257_s3 + $0x178] sm:$0xff]  ;;  %v2922_v57 = vcombine.low %v1495_v46, %v1503_v47 }
 0x180   :  { %2467 = vmatprep.subr.bf16.mxu0 %v2903_v58  ;;  %2508 = vmatprep.subr.bf16.mxu1 %v2905_v59  ;;  %v2907_v59 = vcombine.high %v1479_v53, %v1487_v54  ;;  %v2909_v60 = vcombine.high %v1480_v55, %v1488_v56 }
 0x183   :  { %2468 = vmatpush1.bf16.msra.mxu0 %v2902_v0  ;;  %2509 = vmatpush1.bf16.msra.mxu1 %v2904_v1  ;;  %v1472_v0 = vld [vmem:[%s4257_s3 + $0xf8] sm:$0xff]  ;;  %v2906_v1 = vcombine.low %v1479_v53, %v1487_v54 }
 0x184   :  { %2469 = vmatprep.subr.bf16.mxu0 %v2887_v2  ;;  %2510 = vmatprep.subr.bf16.mxu1 %v2889_v3  ;;  %v2908_v2 = vcombine.low %v1480_v55, %v1488_v56  ;;  %v2891_v3 = vcombine.high %v1463_v61, %v1471_v62  ;;  %v2893_v4 = vcombine.high %v1464_v63, %v1472_v0 }
 0x187   :  { %2470 = vmatpush1.bf16.msra.mxu0 %v2886_v8  ;;  %2511 = vmatpush1.bf16.msra.mxu1 %v2888_v9  ;;  %v1456_v8 = vld [vmem:[%s4257_s3 + $0x78] sm:$0xff]  ;;  %v2890_v9 = vcombine.low %v1463_v61, %v1471_v62 }
 0x188   :  { %2471 = vmatprep.subr.bf16.mxu0 %v2871_v10  ;;  %2512 = vmatprep.subr.bf16.mxu1 %v2873_v11  ;;  %v2892_v10 = vcombine.low %v1464_v63, %v1472_v0  ;;  %v2875_v11 = vcombine.high %v1447_v5, %v1455_v6  ;;  %v2877_v12 = vcombine.high %v1448_v7, %v1456_v8 }
 0x189   :  { %v2876_v14 = vcombine.low %v1448_v7, %v1456_v8 }
 0x18b   :  { %2472 = vmatpush1.bf16.msra.mxu0 %v2870_v16  ;;  %2513 = vmatpush1.bf16.msra.mxu1 %v2872_v17  ;;  %v1574_v16 = vshrl.u32 %v1573_v15, 7 }
 0x18c   :  { %2539 = vmatprep.subr.bf16.mxu0 %v2987_v18  ;;  %2580 = vmatprep.subr.bf16.mxu1 %v2989_v19  ;;  %v1570_v18 = vld [vmem:[%s4260_s4 + $0x8] sm:$0xff] }
 0x18d   :  { %v1575_v17 = vsub.s32 0, %v1574_v16  ;;  %v1583_v20 = vsub.s32 2, %v1574_v16  ;;  %v1579_v21 = vsub.s32 1, %v1574_v16  ;;  %v1587_v23 = vsub.s32 3, %v1574_v16 }
 0x18e   :  { %2490 = vmatmul.mubr.bf16.vlgmr.msra.gmra.mxu0 %v3915_v22  ;;  %2531 = vmatmul.mubr.bf16.vlgmr.msra.gmra.mxu1 %v3915_v22  ;;  %v1595_v36 = vsub.s32 5, %v1574_v16  ;;  %v1603_v37 = vsub.s32 7, %v1574_v16 }
 0x18f   :  { %2540 = vmatpush1.bf16.msra.mxu0 %v2986_v32  ;;  %2581 = vmatpush1.bf16.msra.mxu1 %v2988_v33  ;;  %v4204_v19 = vrot.slane %v1570_v18, %v1575_v17  ;;  %v4206_v28 = vrot.slane %v1570_v18, %v1583_v20  ;;  %v4208_v32 = vrot.slane %v1570_v18, %v1579_v21 }
 0x190   :  { %2541 = vmatprep.subr.bf16.mxu0 %v2971_v34  ;;  %2582 = vmatprep.subr.bf16.mxu1 %v2973_v35  ;;  %v4210_v33 = vrot.slane %v1570_v18, %v1587_v23  ;;  %v1591_v34 = vsub.s32 4, %v1574_v16  ;;  %v1599_v35 = vsub.s32 6, %v1574_v16  ;;  %v4216_v39 = vrot.slane %v1570_v18, %v1595_v36 }
 0x191   :  { %2571 = vmatprep.mubr.bf16.mxu0 %v3327_v30  ;;  %2612 = vmatprep.mubr.bf16.mxu1 %v3327_v30  ;;  %v1496_v30 = vld [vmem:[%s4257_s3 + $0x1b8] sm:$0xff] }
 0x192   :  { %v2925_v52 = vcombine.high %v1496_v30, %v1504_v48  ;;  %v2924_v58 = vcombine.low %v1496_v30, %v1504_v48  ;;  %v4214_v38 = vrot.slane %v1570_v18, %v1599_v35 }
 0x193   :  { %2542 = vmatpush1.bf16.msra.mxu0 %v2970_v40  ;;  %2583 = vmatpush1.bf16.msra.mxu1 %v2972_v41  ;;  %v4218_v40 = vrot.slane %v1570_v18, %v1603_v37  ;;  %v1569_v41 = vld [vmem:[%s4260_s4] sm:$0xff] }
 0x194   :  { %2543 = vmatprep.subr.bf16.mxu0 %v2955_v24  ;;  %2584 = vmatprep.subr.bf16.mxu1 %v2957_v25  ;;  %v1576_v24 = vrot.slane %v1569_v41, %v1575_v17  ;;  %v1584_v25 = vrot.slane %v1569_v41, %v1583_v20  ;;  %v1580_v26 = vrot.slane %v1569_v41, %v1579_v21 }
 0x195   :  { %v1588_v27 = vrot.slane %v1569_v41, %v1587_v23 }
 0x197   :  { %2544 = vmatpush1.bf16.msra.mxu0 %v2954_v42  ;;  %2585 = vmatpush1.bf16.msra.mxu1 %v2956_v43 }
 0x198   :  { %2545 = vmatprep.subr.bf16.mxu0 %v2939_v44  ;;  %2586 = vmatprep.subr.bf16.mxu1 %v2941_v45 }
 0x19b   :  { %2546 = vmatpush1.bf16.msra.mxu0 %v2938_v49  ;;  %2587 = vmatpush1.bf16.msra.mxu1 %v2940_v50 }
 0x19c   :  { %2547 = vmatprep.subr.bf16.mxu0 %v2923_v51  ;;  %2588 = vmatprep.subr.bf16.mxu1 %v2925_v52 }
 0x19f   :  { %2548 = vmatpush1.bf16.msra.mxu0 %v2922_v57  ;;  %2589 = vmatpush1.bf16.msra.mxu1 %v2924_v58  ;;  %v1592_v57 = vrot.slane %v1569_v41, %v1591_v34  ;;  %v1600_v58 = vrot.slane %v1569_v41, %v1599_v35 }
 0x1a0   :  { %2549 = vmatprep.subr.bf16.mxu0 %v2907_v59  ;;  %2590 = vmatprep.subr.bf16.mxu1 %v2909_v60  ;;  %v1596_v59 = vrot.slane %v1569_v41, %v1595_v36  ;;  %v1604_v60 = vrot.slane %v1569_v41, %v1603_v37 }
 0x1a3   :  { %2550 = vmatpush1.bf16.msra.mxu0 %v2906_v1  ;;  %2591 = vmatpush1.bf16.msra.mxu1 %v2908_v2 }
 0x1a4   :  { %2551 = vmatprep.subr.bf16.mxu0 %v2891_v3  ;;  %2592 = vmatprep.subr.bf16.mxu1 %v2893_v4 }
 0x1a7   :  { %2552 = vmatpush1.bf16.msra.mxu0 %v2890_v9  ;;  %2593 = vmatpush1.bf16.msra.mxu1 %v2892_v10 }
 0x1a8   :  { %2553 = vmatprep.subr.bf16.mxu0 %v2875_v11  ;;  %2594 = vmatprep.subr.bf16.mxu1 %v2877_v12 }
 0x1ab   :  { %2554 = vmatpush1.bf16.msra.mxu0 %v2874_v13  ;;  %2595 = vmatpush1.bf16.msra.mxu1 %v2876_v14 }
 0x1ae   :  { %2572 = vmatmul.mubr.bf16.vlgmr.msra.gmra.mxu0 %v3915_v22  ;;  %2613 = vmatmul.mubr.bf16.vlgmr.msra.gmra.mxu1 %v3915_v22  ;;  %v4212_v22 = vrot.slane %v1570_v18, %v1591_v34 }
 0x20e   :  { %v2327_v29 = vpop.f32.mrf.mxu0  ;;  %v2368_v31 = vpop.f32.mrf.mxu1 }
 0x20f   :  { %v2328_v42 = vadd.f32 %v2327_v29, %v1576_v24  ;;  %v2369_v43 = vadd.f32 %v2368_v31, %v1584_v25 }
 0x210   :  { %v2329_v44 = vpop.f32.mrf.mxu0  ;;  %v2370_v45 = vpop.f32.mrf.mxu1 }
 0x211   :  { %v2330_v46 = vadd.f32 %v2329_v44, %v1580_v26  ;;  %v2371_v47 = vadd.f32 %v2370_v45, %v1588_v27  ;;  %v2621_v49 = vmax.f32 %v2328_v42, 0.0  ;;  %v2623_v50 = vmax.f32 %v2369_v43, 0.0 }
 0x212   :  { %v2331_v30 = vpop.f32.mrf.mxu0  ;;  %v2372_v48 = vpop.f32.mrf.mxu1 }
 0x213   :  { %v2622_v51 = vmax.f32 %v2330_v46, 0.0  ;;  %v2624_v52 = vmax.f32 %v2371_v47, 0.0 }
 0x214   :  { %v2332_v53 = vpop.f32.mrf.mxu0  ;;  %v2373_v54 = vpop.f32.mrf.mxu1 }
 0x215   :  { %v2998_v55 = vpack.c.bf16 %v2622_v51, %v2621_v49  ;;  %v2999_v56 = vpack.c.bf16 %v2624_v52, %v2623_v50 }
 0x217   :  { %2701 = vst [vmem:[%s4261_s6] sm:$0xff] %v2998_v55  ;;  %2702 = vst [vmem:[%s4261_s6 + $0x8] sm:$0xff] %v2999_v56 }
 0x22e   :  { %v2409_v61 = vpop.f32.mrf.mxu0  ;;  %v2450_v62 = vpop.f32.mrf.mxu1 }
 0x22f   :  { %v2410_v63 = vadd.f32 %v2409_v61, %v1592_v57  ;;  %v2451_v0 = vadd.f32 %v2450_v62, %v1600_v58 }
 0x230   :  { %v2411_v1 = vpop.f32.mrf.mxu0  ;;  %v2452_v2 = vpop.f32.mrf.mxu1 }
 0x231   :  { %v2412_v3 = vadd.f32 %v2411_v1, %v1596_v59  ;;  %v2453_v4 = vadd.f32 %v2452_v2, %v1604_v60  ;;  %v2625_v7 = vmax.f32 %v2410_v63, 0.0  ;;  %v2627_v8 = vmax.f32 %v2451_v0, 0.0 }
 0x232   :  { %v2413_v5 = vpop.f32.mrf.mxu0  ;;  %v2454_v6 = vpop.f32.mrf.mxu1 }
 0x233   :  { %v2626_v9 = vmax.f32 %v2412_v3, 0.0  ;;  %v2628_v10 = vmax.f32 %v2453_v4, 0.0 }
 0x234   :  { %v2414_v11 = vpop.f32.mrf.mxu0  ;;  %v2455_v12 = vpop.f32.mrf.mxu1 }
 0x235   :  { %v3000_v13 = vpack.c.bf16 %v2626_v9, %v2625_v7  ;;  %v3001_v14 = vpack.c.bf16 %v2628_v10, %v2627_v8 }
 0x237   :  { %2703 = vst [vmem:[%s4261_s6 + $0x10] sm:$0xff] %v3000_v13  ;;  %2704 = vst [vmem:[%s4261_s6 + $0x18] sm:$0xff] %v3001_v14 }
 0x24e   :  { %v2491_v15 = vpop.f32.mrf.mxu0  ;;  %v2532_v16 = vpop.f32.mrf.mxu1 }
 0x24f   :  { %v2492_v17 = vadd.f32 %v2491_v15, %v4204_v19  ;;  %v2533_v18 = vadd.f32 %v2532_v16, %v4206_v28 }
 0x250   :  { %v2493_v20 = vpop.f32.mrf.mxu0  ;;  %v2534_v21 = vpop.f32.mrf.mxu1 }
 0x251   :  { %v2494_v23 = vadd.f32 %v2493_v20, %v4208_v32  ;;  %v2535_v34 = vadd.f32 %v2534_v21, %v4210_v33  ;;  %v2629_v37 = vmax.f32 %v2492_v17, 0.0  ;;  %v2631_v41 = vmax.f32 %v2533_v18, 0.0 }
 0x252   :  { %v2495_v35 = vpop.f32.mrf.mxu0  ;;  %v2536_v36 = vpop.f32.mrf.mxu1 }
 0x253   :  { %v2630_v24 = vmax.f32 %v2494_v23, 0.0  ;;  %v2632_v25 = vmax.f32 %v2535_v34, 0.0 }
 0x254   :  { %v2496_v26 = vpop.f32.mrf.mxu0  ;;  %v2537_v27 = vpop.f32.mrf.mxu1 }
 0x255   :  { %v3002_v29 = vpack.c.bf16 %v2630_v24, %v2629_v37  ;;  %v3003_v31 = vpack.c.bf16 %v2632_v25, %v2631_v41 }
 0x257   :  { %2705 = vst [vmem:[%s4261_s6 + $0x20] sm:$0xff] %v3002_v29  ;;  %2706 = vst [vmem:[%s4261_s6 + $0x28] sm:$0xff] %v3003_v31 }
 0x26e   :  { %v2573_v19 = vpop.f32.mrf.mxu0  ;;  %v2614_v28 = vpop.f32.mrf.mxu1 }
 0x26f   :  { %v2574_v32 = vadd.f32 %v2573_v19, %v4212_v22  ;;  %v2615_v33 = vadd.f32 %v2614_v28, %v4214_v38 }
 0x270   :  { %v2575_v42 = vpop.f32.mrf.mxu0  ;;  %v2616_v43 = vpop.f32.mrf.mxu1 }
 0x271   :  { %v2576_v44 = vadd.f32 %v2575_v42, %v4216_v39  ;;  %v2617_v45 = vadd.f32 %v2616_v43, %v4218_v40  ;;  %v2633_v30 = vmax.f32 %v2574_v32, 0.0  ;;  %v2635_v48 = vmax.f32 %v2615_v33, 0.0 }
 0x272   :  { %v2577_v46 = vpop.f32.mrf.mxu0  ;;  %v2618_v47 = vpop.f32.mrf.mxu1 }
 0x273   :  { %v2634_v49 = vmax.f32 %v2576_v44, 0.0  ;;  %v2636_v50 = vmax.f32 %v2617_v45, 0.0 }
 0x274   :  { %v2578_v51 = vpop.f32.mrf.mxu0  ;;  %v2619_v52 = vpop.f32.mrf.mxu1 }
 0x275   :  { %v3004_v53 = vpack.c.bf16 %v2634_v49, %v2633_v30  ;;  %v3005_v54 = vpack.c.bf16 %v2636_v50, %v2635_v48 }
 0x277   :  { %2707 = vst [vmem:[%s4261_s6 + $0x30] sm:$0xff] %v3004_v53  ;;  %2708 = vst [vmem:[%s4261_s6 + $0x38] sm:$0xff] %v3005_v54 }

// kernel: conv_autoencoder_forward.11
= control target key start
LH: loop header
LB: loop body
LE: loop exit
PB: predicated region body
PF: predicated region fallthrough
CT: control target
= control target key end

     0   :  { %s1841_s12 = smov 0   ;;  %s2310_s0 = inlined_call_operand.vmem [shape: bf16[32,1152], index: 0, kind: input, shape index: {}]   ;;  %s2311_s1 = inlined_call_operand.vmem [shape: bf16[1152,256], index: 1, kind: input, shape index: {}]   ;;  %s2312_s2 = inlined_call_operand.vmem [shape: f32[1,256], index: 2, kind: input, shape index: {}]   ;;  %s2313_s3 = inlined_call_operand.vmem [shape: bf16[32,256], index: 3, kind: output, shape index: {}]  }
   0x1 LB: > { %s1403_s13 = sadd.s32 4294967295, %s1818_s12   ;;  %p1407_p0 = scmp.ge.s32.totalorder %s1818_s12, 1  ;;  %s1818_s12 = sphi %s1841_s12, %s13_s12  }
   0x2   : > { %p139_p1 = scmp.lt.s32.totalorder %s1818_s12, 3 }
   0x4   : > { %p140_p2 = pnand %p1407_p0, %p139_p1 }
   0x5   : > { %s1408_s22 = sshll.u32 (!%p140_p2), %s1403_s13, 1 }
   0x6   : > { %143 = sbr.rel (%p140_p2) target bundleno = 378 (0x17a), region = 32  ;;  %p166_p3 = scmp.lt.s32.totalorder (!%p140_p2), %s1408_s22, 3 }
   0xb   : > { %v1583_v0 = vld [vmem:[%s2311_s1 + $0x74] ss:$8 sps:$4 sm:$0xff]   ;;  %v1585_v1 = vld [vmem:[%s2311_s1 + $0x70] ss:$8 sps:$4 sm:$0xff]   ;;  %v1589_v4 = vld [vmem:[%s2311_s1 + $0x64] ss:$8 sps:$4 sm:$0xff]  }
   0xc   : > { %1112 = vmatprep.subr.bf16.mxu0 %v1583_v0  ;;  %v1586_v2 = vld [vmem:[%s2311_s1 + $0x174] ss:$8 sps:$4 sm:$0xff]   ;;  %v1588_v3 = vld [vmem:[%s2311_s1 + $0x170] ss:$8 sps:$4 sm:$0xff]   ;;  %v1591_v5 = vld [vmem:[%s2311_s1 + $0x60] ss:$8 sps:$4 sm:$0xff]  }
   0xd   : > { %1113 = vmatpush1.bf16.msra.mxu0 %v1585_v1  ;;  %1155 = vmatprep.subr.bf16.mxu1 %v1586_v2  ;;  %v1592_v6 = vld [vmem:[%s2311_s1 + $0x164] ss:$8 sps:$4 sm:$0xff]   ;;  %v1594_v7 = vld [vmem:[%s2311_s1 + $0x160] ss:$8 sps:$4 sm:$0xff]   ;;  %v1595_v8 = vld [vmem:[%s2311_s1 + $0x54] ss:$8 sps:$4 sm:$0xff]  }
   0xe   : > { %1156 = vmatpush1.bf16.msra.mxu1 %v1588_v3  ;;  %1114 = vmatprep.subr.bf16.mxu0 %v1589_v4  ;;  %v1597_v9 = vld [vmem:[%s2311_s1 + $0x50] ss:$8 sps:$4 sm:$0xff]   ;;  %v1598_v10 = vld [vmem:[%s2311_s1 + $0x154] ss:$8 sps:$4 sm:$0xff]   ;;  %v1601_v11 = vld [vmem:[%s2311_s1 + $0x44] ss:$8 sps:$4 sm:$0xff]  }
   0xf   : > { %1157 = vmatprep.subr.bf16.mxu1 %v1592_v6  ;;  %v1600_v12 = vld [vmem:[%s2311_s1 + $0x150] ss:$8 sps:$4 sm:$0xff]   ;;  %v1604_v13 = vld [vmem:[%s2311_s1 + $0x144] ss:$8 sps:$4 sm:$0xff]   ;;  %v1603_v14 = vld [vmem:[%s2311_s1 + $0x40] ss:$8 sps:$4 sm:$0xff]  }
  0x10   : > { %v1607_v15 = vld [vmem:[%s2311_s1 + $0x34] ss:$8 sps:$4 sm:$0xff]   ;;  %v1606_v16 = vld [vmem:[%s2311_s1 + $0x140] ss:$8 sps:$4 sm:$0xff]   ;;  %v1609_v18 = vld [vmem:[%s2311_s1 + $0x30] ss:$8 sps:$4 sm:$0xff]  }
  0x11   : > { %1115 = vmatpush1.bf16.msra.mxu0 %v1591_v5  ;;  %v1610_v17 = vld [vmem:[%s2311_s1 + $0x134] ss:$8 sps:$4 sm:$0xff]   ;;  %v1613_v19 = vld [vmem:[%s2311_s1 + $0x24] ss:$8 sps:$4 sm:$0xff]   ;;  %v1612_v20 = vld [vmem:[%s2311_s1 + $0x130] ss:$8 sps:$4 sm:$0xff]  }
  0x12   : > { %1116 = vmatprep.subr.bf16.mxu0 %v1595_v8  ;;  %1158 = vmatpush1.bf16.msra.mxu1 %v1594_v7  ;;  %v1616_v21 = vld [vmem:[%s2311_s1 + $0x124] ss:$8 sps:$4 sm:$0xff]   ;;  %v1615_v22 = vld [vmem:[%s2311_s1 + $0x20] ss:$8 sps:$4 sm:$0xff]   ;;  %v1619_v23 = vld [vmem:[%s2311_s1 + $0x14] ss:$8 sps:$4 sm:$0xff]  }
  0x13   : > { %1159 = vmatprep.subr.bf16.mxu1 %v1598_v10  ;;  %v1618_v24 = vld [vmem:[%s2311_s1 + $0x120] ss:$8 sps:$4 sm:$0xff]   ;;  %v1622_v25 = vld [vmem:[%s2311_s1 + $0x114] ss:$8 sps:$4 sm:$0xff]   ;;  %v1621_v26 = vld [vmem:[%s2311_s1 + $0x10] ss:$8 sps:$4 sm:$0xff]  }
  0x14   : > { %v1625_v27 = vld [vmem:[%s2311_s1 + $0x4] ss:$8 sps:$4 sm:$0xff]   ;;  %v1624_v28 = vld [vmem:[%s2311_s1 + $0x110] ss:$8 sps:$4 sm:$0xff]   ;;  %v1627_v30 = vld [vmem:[%s2311_s1] ss:$8 sps:$4 sm:$0xff]  }
  0x15   : > { %1117 = vmatpush1.bf16.msra.mxu0 %v1597_v9  ;;  %v1628_v29 = vld [vmem:[%s2311_s1 + $0x104] ss:$8 sps:$4 sm:$0xff]   ;;  %v1631_v31 = vld [vmem:[%s2311_s1 + $0xf4] ss:$8 sps:$4 sm:$0xff]   ;;  %v1630_v32 = vld [vmem:[%s2311_s1 + $0x100] ss:$8 sps:$4 sm:$0xff]  }
  0x16   : > { %1118 = vmatprep.subr.bf16.mxu0 %v1601_v11  ;;  %1160 = vmatpush1.bf16.msra.mxu1 %v1600_v12  ;;  %v1634_v33 = vld [vmem:[%s2311_s1 + $0x1f4] ss:$8 sps:$4 sm:$0xff]   ;;  %v1633_v34 = vld [vmem:[%s2311_s1 + $0xf0] ss:$8 sps:$4 sm:$0xff]   ;;  %v1637_v35 = vld [vmem:[%s2311_s1 + $0xe4] ss:$8 sps:$4 sm:$0xff]  }
  0x17   : > { %1161 = vmatprep.subr.bf16.mxu1 %v1604_v13  ;;  %s2315_s22 = smov (!%p166_p3, %s1408_s22), 3  ;;  %v1636_v36 = vld [vmem:[%s2311_s1 + $0x1f0] ss:$8 sps:$4 sm:$0xff]   ;;  %v1640_v37 = vld [vmem:[%s2311_s1 + $0x1e4] ss:$8 sps:$4 sm:$0xff]  }
  0x18   : > { %v1639_v38 = vld [vmem:[%s2311_s1 + $0xe0] ss:$8 sps:$4 sm:$0xff]   ;;  %v1643_v39 = vld [vmem:[%s2311_s1 + $0xd4] ss:$8 sps:$4 sm:$0xff]   ;;  %s1573_s19 = smul.u32 36, %s2315_s22 }
  0x19   : > { %1119 = vmatpush1.bf16.msra.mxu0 %v1603_v14  ;;  %v1642_v40 = vld [vmem:[%s2311_s1 + $0x1e0] ss:$8 sps:$4 sm:$0xff]   ;;  %v1646_v41 = vld [vmem:[%s2311_s1 + $0x1d4] ss:$8 sps:$4 sm:$0xff]   ;;  %v1645_v42 = vld [vmem:[%s2311_s1 + $0xd0] ss:$8 sps:$4 sm:$0xff]  }
  0x1a   : > { %1120 = vmatprep.subr.bf16.mxu0 %v1607_v15  ;;  %1162 = vmatpush1.bf16.msra.mxu1 %v1606_v16  ;;  %v1649_v43 = vld [vmem:[%s2311_s1 + $0xc4] ss:$8 sps:$4 sm:$0xff]   ;;  %s1989_s13 = scalar_lea.vmem %s2310_s0, %s1573_s19  ;;  %v1648_v44 = vld [vmem:[%s2311_s1 + $0x1d0] ss:$8 sps:$4 sm:$0xff]   ;;  %v1651_v46 = vld [vmem:[%s2311_s1 + $0xc0] ss:$8 sps:$4 sm:$0xff]  }
  0x1b   : > { %1163 = vmatprep.subr.bf16.mxu1 %v1610_v17  ;;  %v1652_v45 = vld [vmem:[%s2311_s1 + $0x1c4] ss:$8 sps:$4 sm:$0xff]   ;;  %v1655_v48 = vld [vmem:[%s2311_s1 + $0xb4] ss:$8 sps:$4 sm:$0xff]   ;;  %v1654_v49 = vld [vmem:[%s2311_s1 + $0x1c0] ss:$8 sps:$4 sm:$0xff]  }
  0x1c   : > { %v1680_v47 = vld [vmem:[%s1989_s13 + $0x4] ss:$36 sps:$4 sm:$0xff]   ;;  %v1658_v50 = vld [vmem:[%s2311_s1 + $0x1b4] ss:$8 sps:$4 sm:$0xff]   ;;  %v1687_v51 = vld [vmem:[%s1989_s13 + $0xc] ss:$36 sps:$4 sm:$0xff]  }
  0x1d   : > { %1121 = vmatpush1.bf16.msra.mxu0 %v1609_v18  ;;  %1144 = vmatprep.mubr.bf16.mxu0 %v1680_v47  ;;  %v1657_v52 = vld [vmem:[%s2311_s1 + $0xb0] ss:$8 sps:$4 sm:$0xff]   ;;  %v1661_v53 = vld [vmem:[%s2311_s1 + $0xa4] ss:$8 sps:$4 sm:$0xff]   ;;  %v1663_v56 = vld [vmem:[%s2311_s1 + $0xa0] ss:$8 sps:$4 sm:$0xff]  }
  0x1e   : > { %1122 = vmatprep.subr.bf16.mxu0 %v1613_v19  ;;  %1164 = vmatpush1.bf16.msra.mxu1 %v1612_v20  ;;  %v1660_v54 = vld [vmem:[%s2311_s1 + $0x1b0] ss:$8 sps:$4 sm:$0xff]   ;;  %v1664_v55 = vld [vmem:[%s2311_s1 + $0x1a4] ss:$8 sps:$4 sm:$0xff]   ;;  %v1667_v57 = vld [vmem:[%s2311_s1 + $0x94] ss:$8 sps:$4 sm:$0xff]  }
  0x1f   : > { %1165 = vmatprep.subr.bf16.mxu1 %v1616_v21  ;;  %1187 = vmatprep.mubr.bf16.mxu1 %v1687_v51  ;;  %v1666_v58 = vld [vmem:[%s2311_s1 + $0x1a0] ss:$8 sps:$4 sm:$0xff]   ;;  %v1670_v59 = vld [vmem:[%s2311_s1 + $0x194] ss:$8 sps:$4 sm:$0xff]   ;;  %v1669_v60 = vld [vmem:[%s2311_s1 + $0x90] ss:$8 sps:$4 sm:$0xff]  }
  0x20   : > { %v1673_v61 = vld [vmem:[%s2311_s1 + $0x84] ss:$8 sps:$4 sm:$0xff]   ;;  %v1672_v62 = vld [vmem:[%s2311_s1 + $0x190] ss:$8 sps:$4 sm:$0xff]   ;;  %v1675_v0 = vld [vmem:[%s2311_s1 + $0x80] ss:$8 sps:$4 sm:$0xff]  }
  0x21   : > { %1123 = vmatpush1.bf16.msra.mxu0 %v1615_v22  ;;  %v1676_v63 = vld [vmem:[%s2311_s1 + $0x184] ss:$8 sps:$4 sm:$0xff]   ;;  %v1684_v1 = vld [vmem:[%s2311_s1 + $0x274] ss:$8 sps:$4 sm:$0xff]   ;;  %v1681_v2 = vld [vmem:[%s2311_s1 + $0x180] ss:$8 sps:$4 sm:$0xff]  }
  0x22   : > { %1124 = vmatprep.subr.bf16.mxu0 %v1619_v23  ;;  %1166 = vmatpush1.bf16.msra.mxu1 %v1618_v24  ;;  %v1678_v3 = vld [vmem:[%s1989_s13] ss:$36 sps:$4 sm:$0xff]   ;;  %v1690_v4 = vld [vmem:[%s2311_s1 + $0x374] ss:$8 sps:$4 sm:$0xff]   ;;  %v1682_v5 = vld [vmem:[%s2311_s1 + $0x270] ss:$8 sps:$4 sm:$0xff]  }
  0x23   : > { %1167 = vmatprep.subr.bf16.mxu1 %v1622_v25  ;;  %v1685_v6 = vld [vmem:[%s1989_s13 + $0x8] ss:$36 sps:$4 sm:$0xff]   ;;  %v1688_v8 = vld [vmem:[%s2311_s1 + $0x370] ss:$8 sps:$4 sm:$0xff]   ;;  %v1699_v11 = vld [vmem:[%s2311_s1 + $0x254] ss:$8 sps:$4 sm:$0xff]  }
  0x24   : > { %v1693_v7 = vld [vmem:[%s2311_s1 + $0x264] ss:$8 sps:$4 sm:$0xff]   ;;  %v1691_v10 = vld [vmem:[%s2311_s1 + $0x260] ss:$8 sps:$4 sm:$0xff]   ;;  %v1702_v13 = vld [vmem:[%s2311_s1 + $0x354] ss:$8 sps:$4 sm:$0xff]  }
  0x25   : > { %1125 = vmatpush1.bf16.msra.mxu0 %v1621_v26  ;;  %v1696_v9 = vld [vmem:[%s2311_s1 + $0x364] ss:$8 sps:$4 sm:$0xff]   ;;  %v1694_v12 = vld [vmem:[%s2311_s1 + $0x360] ss:$8 sps:$4 sm:$0xff]   ;;  %v1697_v14 = vld [vmem:[%s2311_s1 + $0x250] ss:$8 sps:$4 sm:$0xff]  }
  0x26   : > { %1126 = vmatprep.subr.bf16.mxu0 %v1625_v27  ;;  %1168 = vmatpush1.bf16.msra.mxu1 %v1624_v28  ;;  %v1705_v15 = vld [vmem:[%s2311_s1 + $0x244] ss:$8 sps:$4 sm:$0xff]   ;;  %v1700_v16 = vld [vmem:[%s2311_s1 + $0x350] ss:$8 sps:$4 sm:$0xff]   ;;  %v1703_v18 = vld [vmem:[%s2311_s1 + $0x240] ss:$8 sps:$4 sm:$0xff]  }
  0x27   : > { %1169 = vmatprep.subr.bf16.mxu1 %v1628_v29  ;;  %v1708_v17 = vld [vmem:[%s2311_s1 + $0x344] ss:$8 sps:$4 sm:$0xff]   ;;  %v1711_v19 = vld [vmem:[%s2311_s1 + $0x234] ss:$8 sps:$4 sm:$0xff]   ;;  %v1706_v20 = vld [vmem:[%s2311_s1 + $0x340] ss:$8 sps:$4 sm:$0xff]  }
  0x28   : > { %v1714_v21 = vld [vmem:[%s2311_s1 + $0x334] ss:$8 sps:$4 sm:$0xff]   ;;  %v1709_v22 = vld [vmem:[%s2311_s1 + $0x230] ss:$8 sps:$4 sm:$0xff]   ;;  %v1717_v23 = vld [vmem:[%s2311_s1 + $0x224] ss:$8 sps:$4 sm:$0xff]  }
  0x29   : > { %1127 = vmatpush1.bf16.msra.mxu0 %v1627_v30  ;;  %v1712_v24 = vld [vmem:[%s2311_s1 + $0x330] ss:$8 sps:$4 sm:$0xff]   ;;  %v1720_v25 = vld [vmem:[%s2311_s1 + $0x324] ss:$8 sps:$4 sm:$0xff]   ;;  %v1715_v26 = vld [vmem:[%s2311_s1 + $0x220] ss:$8 sps:$4 sm:$0xff]  }
  0x2a   : > { %1128 = vmatprep.subr.bf16.mxu0 %v1631_v31  ;;  %1170 = vmatpush1.bf16.msra.mxu1 %v1630_v32  ;;  %v1723_v27 = vld [vmem:[%s2311_s1 + $0x214] ss:$8 sps:$4 sm:$0xff]   ;;  %v1718_v28 = vld [vmem:[%s2311_s1 + $0x320] ss:$8 sps:$4 sm:$0xff]   ;;  %v1721_v30 = vld [vmem:[%s2311_s1 + $0x210] ss:$8 sps:$4 sm:$0xff]  }
  0x2b   : > { %1171 = vmatprep.subr.bf16.mxu1 %v1634_v33  ;;  %v1726_v29 = vld [vmem:[%s2311_s1 + $0x314] ss:$8 sps:$4 sm:$0xff]   ;;  %v1724_v31 = vld [vmem:[%s2311_s1 + $0x310] ss:$8 sps:$4 sm:$0xff]   ;;  %v1729_v32 = vld [vmem:[%s2311_s1 + $0x204] ss:$8 sps:$4 sm:$0xff]  }
  0x2c   : > { %v1783_v33 = vld [vmem:[%s1989_s13 + $0x14] ss:$36 sps:$4 sm:$0xff]   ;;  %v1756_v51 = vld [vmem:[%s2311_s1 + $0x3c4] ss:$8 sps:$4 sm:$0xff]  }
  0x2d   : > { %1129 = vmatpush2.bf16.msra.mxu0 %v1633_v34  ;;  %v1732_v34 = vld [vmem:[%s2311_s1 + $0x304] ss:$8 sps:$4 sm:$0xff]   ;;  %v1750_v47 = vld [vmem:[%s2311_s1 + $0x3d4] ss:$8 sps:$4 sm:$0xff]  }
  0x2e   : > { %1130 = vmatprep.subr.bf16.mxu0 %v1637_v35  ;;  %1172 = vmatpush2.bf16.msra.mxu1 %v1636_v36  ;;  %v1727_v35 = vld [vmem:[%s2311_s1 + $0x200] ss:$8 sps:$4 sm:$0xff]  }
  0x2f   : > { %1173 = vmatprep.subr.bf16.mxu1 %v1640_v37  ;;  %v1789_v36 = vld [vmem:[%s1989_s13 + $0x1c] ss:$36 sps:$4 sm:$0xff]  }
  0x30   : > { %v1735_v37 = vld [vmem:[%s2311_s1 + $0x2f4] ss:$8 sps:$4 sm:$0xff]  }
  0x31   : > { %1131 = vmatpush2.bf16.msra.mxu0 %v1639_v38  ;;  %v1730_v38 = vld [vmem:[%s2311_s1 + $0x300] ss:$8 sps:$4 sm:$0xff]  }
  0x32   : > { %1132 = vmatprep.subr.bf16.mxu0 %v1643_v39  ;;  %1174 = vmatpush2.bf16.msra.mxu1 %v1642_v40  ;;  %v1738_v39 = vld [vmem:[%s2311_s1 + $0x3f4] ss:$8 sps:$4 sm:$0xff]   ;;  %v1733_v40 = vld [vmem:[%s2311_s1 + $0x2f0] ss:$8 sps:$4 sm:$0xff]  }
  0x33   : > { %1175 = vmatprep.subr.bf16.mxu1 %v1646_v41  ;;  %v1741_v41 = vld [vmem:[%s2311_s1 + $0x2e4] ss:$8 sps:$4 sm:$0xff]  }
  0x35   : > { %1133 = vmatpush2.bf16.msra.mxu0 %v1645_v42  ;;  %v1736_v42 = vld [vmem:[%s2311_s1 + $0x3f0] ss:$8 sps:$4 sm:$0xff]  }
  0x36   : > { %1134 = vmatprep.subr.bf16.mxu0 %v1649_v43  ;;  %1176 = vmatpush2.bf16.msra.mxu1 %v1648_v44  ;;  %v1744_v43 = vld [vmem:[%s2311_s1 + $0x3e4] ss:$8 sps:$4 sm:$0xff]   ;;  %v1739_v44 = vld [vmem:[%s2311_s1 + $0x2e0] ss:$8 sps:$4 sm:$0xff]  }
  0x37   : > { %1177 = vmatprep.subr.bf16.mxu1 %v1652_v45  ;;  %v1747_v45 = vld [vmem:[%s2311_s1 + $0x2d4] ss:$8 sps:$4 sm:$0xff]  }
  0x39   : > { %1135 = vmatpush2.bf16.msra.mxu0 %v1651_v46  ;;  %v1742_v46 = vld [vmem:[%s2311_s1 + $0x3e0] ss:$8 sps:$4 sm:$0xff]  }
  0x3a   : > { %1136 = vmatprep.subr.bf16.mxu0 %v1655_v48  ;;  %1178 = vmatpush2.bf16.msra.mxu1 %v1654_v49  ;;  %v1745_v48 = vld [vmem:[%s2311_s1 + $0x2d0] ss:$8 sps:$4 sm:$0xff]   ;;  %v1753_v49 = vld [vmem:[%s2311_s1 + $0x2c4] ss:$8 sps:$4 sm:$0xff]  }
  0x3b   : > { %1179 = vmatprep.subr.bf16.mxu1 %v1658_v50  ;;  %v1748_v50 = vld [vmem:[%s2311_s1 + $0x3d0] ss:$8 sps:$4 sm:$0xff]  }
  0x3d   : > { %1137 = vmatpush2.bf16.msra.mxu0 %v1657_v52  ;;  %v1751_v52 = vld [vmem:[%s2311_s1 + $0x2c0] ss:$8 sps:$4 sm:$0xff]  }
  0x3e   : > { %1138 = vmatprep.subr.bf16.mxu0 %v1661_v53  ;;  %1180 = vmatpush2.bf16.msra.mxu1 %v1660_v54  ;;  %v1759_v53 = vld [vmem:[%s2311_s1 + $0x2b4] ss:$8 sps:$4 sm:$0xff]   ;;  %v1754_v54 = vld [vmem:[%s2311_s1 + $0x3c0] ss:$8 sps:$4 sm:$0xff]  }
  0x3f   : > { %1181 = vmatprep.subr.bf16.mxu1 %v1664_v55  ;;  %v1762_v55 = vld [vmem:[%s2311_s1 + $0x3b4] ss:$8 sps:$4 sm:$0xff]  }
  0x41   : > { %1139 = vmatpush2.bf16.msra.mxu0 %v1663_v56  ;;  %v1757_v56 = vld [vmem:[%s2311_s1 + $0x2b0] ss:$8 sps:$4 sm:$0xff]  }
  0x42   : > { %1140 = vmatprep.subr.bf16.mxu0 %v1667_v57  ;;  %1182 = vmatpush2.bf16.msra.mxu1 %v1666_v58  ;;  %v1765_v57 = vld [vmem:[%s2311_s1 + $0x2a4] ss:$8 sps:$4 sm:$0xff]   ;;  %v1760_v58 = vld [vmem:[%s2311_s1 + $0x3b0] ss:$8 sps:$4 sm:$0xff]  }
  0x43   : > { %1183 = vmatprep.subr.bf16.mxu1 %v1670_v59  ;;  %v1768_v59 = vld [vmem:[%s2311_s1 + $0x3a4] ss:$8 sps:$4 sm:$0xff]  }
  0x45   : > { %1141 = vmatpush2.bf16.msra.mxu0 %v1669_v60  ;;  %v1763_v60 = vld [vmem:[%s2311_s1 + $0x2a0] ss:$8 sps:$4 sm:$0xff]  }
  0x46   : > { %1142 = vmatprep.subr.bf16.mxu0 %v1673_v61  ;;  %1184 = vmatpush2.bf16.msra.mxu1 %v1672_v62  ;;  %v1771_v61 = vld [vmem:[%s2311_s1 + $0x294] ss:$8 sps:$4 sm:$0xff]   ;;  %v1766_v62 = vld [vmem:[%s2311_s1 + $0x3a0] ss:$8 sps:$4 sm:$0xff]  }
  0x47   : > { %1185 = vmatprep.subr.bf16.mxu1 %v1676_v63  ;;  %v1774_v63 = vld [vmem:[%s2311_s1 + $0x394] ss:$8 sps:$4 sm:$0xff]  }
  0x49   : > { %1143 = vmatpush2.bf16.msra.mxu0 %v1675_v0  ;;  %v1769_v0 = vld [vmem:[%s2311_s1 + $0x290] ss:$8 sps:$4 sm:$0xff]  }
  0x4a   : > { %1198 = vmatprep.subr.bf16.mxu0 %v1684_v1  ;;  %1186 = vmatpush2.bf16.msra.mxu1 %v1681_v2  ;;  %v1777_v1 = vld [vmem:[%s2311_s1 + $0x284] ss:$8 sps:$4 sm:$0xff]   ;;  %v1772_v2 = vld [vmem:[%s2311_s1 + $0x390] ss:$8 sps:$4 sm:$0xff]  }
  0x4b   : > { %1241 = vmatprep.subr.bf16.mxu1 %v1690_v4  ;;  %v1775_v4 = vld [vmem:[%s2311_s1 + $0x280] ss:$8 sps:$4 sm:$0xff]  }
  0x4c   : > { %1145 = vmatmul.mubr.bf16.vlgmr.msra.gmra.mxu0 %v1678_v3  ;;  %v1780_v3 = vld [vmem:[%s2311_s1 + $0x384] ss:$8 sps:$4 sm:$0xff]  }
  0x4d   : > { %1199 = vmatpush1.bf16.msra.mxu0 %v1682_v5  ;;  %1188 = vmatmul.mubr.bf16.vlgmr.msra.gmra.mxu1 %v1685_v6  ;;  %v1786_v5 = vld [vmem:[%s2311_s1 + $0x474] ss:$8 sps:$4 sm:$0xff]   ;;  %v1778_v6 = vld [vmem:[%s2311_s1 + $0x380] ss:$8 sps:$4 sm:$0xff]  }
  0x4e   : > { %1200 = vmatprep.subr.bf16.mxu0 %v1693_v7  ;;  %1242 = vmatpush1.bf16.msra.mxu1 %v1688_v8  ;;  %v1781_v7 = vld [vmem:[%s1989_s13 + $0x10] ss:$36 sps:$4 sm:$0xff]  }
  0x4f   : > { %1243 = vmatprep.subr.bf16.mxu1 %v1696_v9  ;;  %1230 = vmatprep.mubr.bf16.mxu0 %v1783_v33  ;;  %v1784_v8 = vld [vmem:[%s2311_s1 + $0x470] ss:$8 sps:$4 sm:$0xff]  }
  0x50   : > { %1273 = vmatprep.mubr.bf16.mxu1 %v1789_v36  ;;  %v1787_v9 = vld [vmem:[%s1989_s13 + $0x18] ss:$36 sps:$4 sm:$0xff]  }
  0x51   : > { %1201 = vmatpush1.bf16.msra.mxu0 %v1691_v10  ;;  %v1792_v10 = vld [vmem:[%s2311_s1 + $0x464] ss:$8 sps:$4 sm:$0xff]  }
  0x52   : > { %1202 = vmatprep.subr.bf16.mxu0 %v1699_v11  ;;  %1244 = vmatpush1.bf16.msra.mxu1 %v1694_v12  ;;  %v1790_v11 = vld [vmem:[%s2311_s1 + $0x460] ss:$8 sps:$4 sm:$0xff]   ;;  %v1820_v12 = vmov 0  }
  0x53   : > { %1245 = vmatprep.subr.bf16.mxu1 %v1702_v13  ;;  %v1795_v13 = vld [vmem:[%s2311_s1 + $0x454] ss:$8 sps:$4 sm:$0xff]  }
  0x55   : > { %1203 = vmatpush1.bf16.msra.mxu0 %v1697_v14  ;;  %v1793_v14 = vld [vmem:[%s2311_s1 + $0x450] ss:$8 sps:$4 sm:$0xff]  }
  0x56   : > { %1204 = vmatprep.subr.bf16.mxu0 %v1705_v15  ;;  %1246 = vmatpush1.bf16.msra.mxu1 %v1700_v16  ;;  %v1798_v15 = vld [vmem:[%s2311_s1 + $0x444] ss:$8 sps:$4 sm:$0xff]   ;;  %v1796_v16 = vld [vmem:[%s2311_s1 + $0x440] ss:$8 sps:$4 sm:$0xff]  }
  0x57   : > { %1247 = vmatprep.subr.bf16.mxu1 %v1708_v17  ;;  %v1801_v17 = vld [vmem:[%s2311_s1 + $0x434] ss:$8 sps:$4 sm:$0xff]  }
  0x59   : > { %1205 = vmatpush1.bf16.msra.mxu0 %v1703_v18  ;;  %v1799_v18 = vld [vmem:[%s2311_s1 + $0x430] ss:$8 sps:$4 sm:$0xff]  }
  0x5a   : > { %1206 = vmatprep.subr.bf16.mxu0 %v1711_v19  ;;  %1248 = vmatpush1.bf16.msra.mxu1 %v1706_v20  ;;  %v1804_v19 = vld [vmem:[%s2311_s1 + $0x424] ss:$8 sps:$4 sm:$0xff]   ;;  %v1802_v20 = vld [vmem:[%s2311_s1 + $0x420] ss:$8 sps:$4 sm:$0xff]  }
  0x5b   : > { %1249 = vmatprep.subr.bf16.mxu1 %v1714_v21  ;;  %v1807_v21 = vld [vmem:[%s2311_s1 + $0x414] ss:$8 sps:$4 sm:$0xff]  }
  0x5d   : > { %1207 = vmatpush1.bf16.msra.mxu0 %v1709_v22  ;;  %v1805_v22 = vld [vmem:[%s2311_s1 + $0x410] ss:$8 sps:$4 sm:$0xff]  }
  0x5e   : > { %1208 = vmatprep.subr.bf16.mxu0 %v1717_v23  ;;  %1250 = vmatpush1.bf16.msra.mxu1 %v1712_v24  ;;  %v1810_v23 = vld [vmem:[%s2311_s1 + $0x404] ss:$8 sps:$4 sm:$0xff]   ;;  %v1808_v24 = vld [vmem:[%s2311_s1 + $0x400] ss:$8 sps:$4 sm:$0xff]  }
  0x5f   : > { %1251 = vmatprep.subr.bf16.mxu1 %v1720_v25  ;;  %v1811_v25 = vld [vmem:[%s1989_s13 + $0x20] ss:$36 sps:$4 sm:$0xff]   ;;  %s1570_s13 = sshll.u32 %s2315_s22, 3 }
  0x60   : > { %s177_s18 = scalar_lea.vmem %s2313_s3, %s1570_s13 }
  0x61   : > { %1209 = vmatpush1.bf16.msra.mxu0 %v1715_v26 }
  0x62   : > { %1210 = vmatprep.subr.bf16.mxu0 %v1723_v27  ;;  %1252 = vmatpush1.bf16.msra.mxu1 %v1718_v28  ;;  %v336_v27 = vlaneseq }
  0x63   : > { %1253 = vmatprep.subr.bf16.mxu1 %v1726_v29 }
  0x65   : > { %1211 = vmatpush1.bf16.msra.mxu0 %v1721_v30  ;;  %v337_v30 = vshrl.u32 %v336_v27, 7 }
  0x66   : > { %1212 = vmatprep.subr.bf16.mxu0 %v1729_v32  ;;  %1254 = vmatpush1.bf16.msra.mxu1 %v1724_v31 }
  0x67   : > { %1255 = vmatprep.subr.bf16.mxu1 %v1732_v34  ;;  %v338_v33 = vsub.s32 0, %v337_v30  ;;  %v334_v34 = vld [vmem:[%s2312_s2] sm:$0x3] }
  0x69   : > { %1213 = vmatpush1.bf16.msra.mxu0 %v1727_v35  ;;  %v342_v35 = vsub.s32 1, %v337_v30 }
  0x6a   : > { %1214 = vmatprep.subr.bf16.mxu0 %v1735_v37  ;;  %1256 = vmatpush1.bf16.msra.mxu1 %v1730_v38  ;;  %v339_v38 = vrot.slane %v334_v34, %v338_v33 }
  0x6b   : > { %1257 = vmatprep.subr.bf16.mxu1 %v1738_v39 }
  0x6d   : > { %1215 = vmatpush2.bf16.msra.mxu0 %v1733_v40  ;;  %v343_v40 = vrot.slane %v334_v34, %v342_v35 }
  0x6e   : > { %1216 = vmatprep.subr.bf16.mxu0 %v1741_v41  ;;  %1258 = vmatpush2.bf16.msra.mxu1 %v1736_v42 }
  0x6f   : > { %1259 = vmatprep.subr.bf16.mxu1 %v1744_v43 }
  0x71   : > { %1217 = vmatpush2.bf16.msra.mxu0 %v1739_v44 }
  0x72   : > { %1218 = vmatprep.subr.bf16.mxu0 %v1747_v45  ;;  %1260 = vmatpush2.bf16.msra.mxu1 %v1742_v46 }
  0x73   : > { %1261 = vmatprep.subr.bf16.mxu1 %v1750_v47 }
  0x75   : > { %1219 = vmatpush2.bf16.msra.mxu0 %v1745_v48 }
  0x76   : > { %1220 = vmatprep.subr.bf16.mxu0 %v1753_v49  ;;  %1262 = vmatpush2.bf16.msra.mxu1 %v1748_v50 }
  0x77   : > { %1263 = vmatprep.subr.bf16.mxu1 %v1756_v51 }
  0x79   : > { %1221 = vmatpush2.bf16.msra.mxu0 %v1751_v52 }
  0x7a   : > { %1222 = vmatprep.subr.bf16.mxu0 %v1759_v53  ;;  %1264 = vmatpush2.bf16.msra.mxu1 %v1754_v54 }
  0x7b   : > { %1265 = vmatprep.subr.bf16.mxu1 %v1762_v55 }
  0x7d   : > { %1223 = vmatpush2.bf16.msra.mxu0 %v1757_v56 }
  0x7e   : > { %1224 = vmatprep.subr.bf16.mxu0 %v1765_v57  ;;  %1266 = vmatpush2.bf16.msra.mxu1 %v1760_v58 }
  0x7f   : > { %1267 = vmatprep.subr.bf16.mxu1 %v1768_v59 }
  0x81   : > { %1225 = vmatpush2.bf16.msra.mxu0 %v1763_v60 }
  0x82   : > { %1226 = vmatprep.subr.bf16.mxu0 %v1771_v61  ;;  %1268 = vmatpush2.bf16.msra.mxu1 %v1766_v62 }
  0x83   : > { %1269 = vmatprep.subr.bf16.mxu1 %v1774_v63 }
  0x85   : > { %1227 = vmatpush2.bf16.msra.mxu0 %v1769_v0 }
  0x86   : > { %1228 = vmatprep.subr.bf16.mxu0 %v1777_v1  ;;  %1270 = vmatpush2.bf16.msra.mxu1 %v1772_v2 }
  0x87   : > { %1271 = vmatprep.subr.bf16.mxu1 %v1780_v3 }
  0x89   : > { %1229 = vmatpush2.bf16.msra.mxu0 %v1775_v4 }
  0x8a   : > { %1284 = vmatprep.subr.bf16.mxu0 %v1786_v5  ;;  %1272 = vmatpush2.bf16.msra.mxu1 %v1778_v6 }
  0x8c   : > { %1231 = vmatmul.mubr.bf16.vlgmr.msra.gmra.mxu0 %v1781_v7 }
  0x8d   : > { %1285 = vmatpush1.bf16.msra.mxu0 %v1784_v8  ;;  %1316 = vmatprep.mubr.bf16.mxu0 %v1820_v12 }
  0x8e   : > { %1274 = vmatmul.mubr.bf16.vlgmr.msra.gmra.mxu1 %v1787_v9  ;;  %1286 = vmatprep.subr.bf16.mxu0 %v1792_v10 }
  0x91   : > { %1287 = vmatpush1.bf16.msra.mxu0 %v1790_v11 }
  0x92   : > { %1288 = vmatprep.subr.bf16.mxu0 %v1795_v13 }
  0x95   : > { %1289 = vmatpush1.bf16.msra.mxu0 %v1793_v14 }
  0x96   : > { %1290 = vmatprep.subr.bf16.mxu0 %v1798_v15 }
  0x99   : > { %1291 = vmatpush1.bf16.msra.mxu0 %v1796_v16 }
  0x9a   : > { %1292 = vmatprep.subr.bf16.mxu0 %v1801_v17 }
  0x9d   : > { %1293 = vmatpush1.bf16.msra.mxu0 %v1799_v18 }
  0x9e   : > { %1294 = vmatprep.subr.bf16.mxu0 %v1804_v19 }
  0xa1   : > { %1295 = vmatpush1.bf16.msra.mxu0 %v1802_v20 }
  0xa2   : > { %1296 = vmatprep.subr.bf16.mxu0 %v1807_v21 }
  0xa5   : > { %1297 = vmatpush1.bf16.msra.mxu0 %v1805_v22 }
  0xa6   : > { %1298 = vmatprep.subr.bf16.mxu0 %v1810_v23 }
  0xa9   : > { %1299 = vmatpush1.bf16.msra.mxu0 %v1808_v24 }
  0xac   : > { %1317 = vmatmul.mubr.bf16.vlgmr.msra.gmra.mxu0 %v1811_v25 }
 0x10c   : > { %v1146_v26 = vpop.f32.mrf.mxu0 }
 0x10d   : > { %v1189_v29 = vpop.f32.mrf.mxu1  ;;  %v1147_v42 = vadd.f32 %v1146_v26, %v339_v38 }
 0x10e   : > { %v1148_v28 = vpop.f32.mrf.mxu0 }
 0x10f   : > { %v1191_v32 = vpop.f32.mrf.mxu1  ;;  %v1149_v45 = vadd.f32 %v1148_v28, %v343_v40  ;;  %v1190_v46 = vadd.f32 %v1189_v29, %v1147_v42 }
 0x110   : > { %v1150_v31 = vpop.f32.mrf.mxu0 }
 0x111   : > { %v1193_v37 = vpop.f32.mrf.mxu1  ;;  %v1151_v47 = vadd.f32 %v1150_v31, %v339_v38  ;;  %v1192_v50 = vadd.f32 %v1191_v32, %v1149_v45 }
 0x112   : > { %v1152_v36 = vpop.f32.mrf.mxu0 }
 0x113   : > { %v1195_v41 = vpop.f32.mrf.mxu1  ;;  %v1153_v51 = vadd.f32 %v1152_v36, %v343_v40  ;;  %v1194_v53 = vadd.f32 %v1193_v37, %v1151_v47 }
 0x115   : > { %v1196_v57 = vadd.f32 %v1195_v41, %v1153_v51 }
 0x14c   : > { %v1232_v39 = vpop.f32.mrf.mxu0 }
 0x14d   : > { %v1233_v52 = vadd.f32 %v1232_v39, %v1190_v46 }
 0x14e   : > { %v1234_v43 = vpop.f32.mrf.mxu0  ;;  %v1275_v44 = vpop.f32.mrf.mxu1 }
 0x14f   : > { %v1235_v54 = vadd.f32 %v1234_v43, %v1192_v50  ;;  %v1276_v58 = vadd.f32 %v1275_v44, %v1233_v52 }
 0x150   : > { %v1236_v48 = vpop.f32.mrf.mxu0  ;;  %v1277_v49 = vpop.f32.mrf.mxu1 }
 0x151   : > { %v1237_v59 = vadd.f32 %v1236_v48, %v1194_v53  ;;  %v1278_v61 = vadd.f32 %v1277_v49, %v1235_v54 }
 0x152   : > { %v1238_v55 = vpop.f32.mrf.mxu0  ;;  %v1279_v56 = vpop.f32.mrf.mxu1 }
 0x153   : > { %v1239_v62 = vadd.f32 %v1238_v55, %v1196_v57  ;;  %v1280_v2 = vadd.f32 %v1279_v56, %v1237_v59 }
 0x154   : > { %v1281_v0 = vpop.f32.mrf.mxu1 }
 0x155   : > { %v1282_v5 = vadd.f32 %v1281_v0, %v1239_v62 }
 0x16c   : > { %v1318_v60 = vpop.f32.mrf.mxu0 }
 0x16d   : > { %v1319_v63 = vadd.f32 %v1318_v60, %v1276_v58 }
 0x16e   : > { %v1320_v1 = vpop.f32.mrf.mxu0 }
 0x16f   : > { %v1321_v3 = vadd.f32 %v1320_v1, %v1278_v61  ;;  %v1327_v6 = vmax.f32 %v1319_v63, 0.0 }
 0x170   : > { %v1322_v4 = vpop.f32.mrf.mxu0 }
 0x171   : > { %v1328_v7 = vmax.f32 %v1321_v3, 0.0  ;;  %v1323_v8 = vadd.f32 %v1322_v4, %v1280_v2 }
 0x172   : > { %v1324_v9 = vpop.f32.mrf.mxu0 }
 0x173   : > { %v1571_v10 = vpack.c.bf16 %v1328_v7, %v1327_v6  ;;  %v1325_v11 = vadd.f32 %v1324_v9, %v1282_v5  ;;  %v1329_v12 = vmax.f32 %v1323_v8, 0.0 }
 0x175   : > { %1343 = vst [vmem:[%s177_s18] sm:$0xff] %v1571_v10  ;;  %v1330_v13 = vmax.f32 %v1325_v11, 0.0 }
 0x177   : > { %v1572_v14 = vpack.c.bf16 %v1330_v13, %v1329_v12 }
 0x179   : > { %1344 = vst [vmem:[%s177_s18 + $0x8] sm:$0xff] %v1572_v14 }
 0x17a PF: > { %s13_s12 = sadd.s32 1, %s1818_s12  }
 0x17b   : > { %p10_p4 = scmp.ge.s32.totalorder %s13_s12, 4  }
 0x17d   :  { %12 = sbr.rel (!%p10_p4) target bundleno = 1 (0x1), region = 62 }

// kernel: conv_autoencoder_forward.12
= control target key start
LH: loop header
LB: loop body
LE: loop exit
PB: predicated region body
PF: predicated region fallthrough
CT: control target
= control target key end

     0   :  { %s1233_s12 = smov 0   ;;  %s1389_s0 = inlined_call_operand.vmem [shape: bf16[128,576], index: 0, kind: input, shape index: {}]   ;;  %s1390_s1 = inlined_call_operand.vmem [shape: bf16[576,128], index: 1, kind: input, shape index: {}]   ;;  %s1391_s2 = inlined_call_operand.vmem [shape: f32[1,128], index: 2, kind: input, shape index: {}]   ;;  %s1392_s3 = inlined_call_operand.vmem [shape: bf16[128,128], index: 3, kind: output, shape index: {}]  }
   0x1 LB: > { %s909_s13 = sadd.s32 4294967295, %s1211_s12   ;;  %p913_p0 = scmp.ge.s32.totalorder %s1211_s12, 1  ;;  %s1211_s12 = sphi %s1233_s12, %s13_s12  }
   0x2   : > { %p139_p1 = scmp.lt.s32.totalorder %s1211_s12, 3 }
   0x4   : > { %p140_p2 = pnand %p913_p0, %p139_p1 }
   0x5   : > { %s914_s19 = sshll.u32 (!%p140_p2), %s909_s13, 3 }
   0x6   : > { %143 = sbr.rel (%p140_p2) target bundleno = 284 (0x11c), region = 32  ;;  %p165_p3 = scmp.lt.s32.totalorder (!%p140_p2), %s914_s19, 15 }
   0xb   : > { %v1141_v0 = vld [vmem:[%s1390_s1 + $0x78] sm:$0xff]   ;;  %v1145_v4 = vld [vmem:[%s1390_s1 + $0x70] sm:$0xff]   ;;  %v1149_v8 = vld [vmem:[%s1390_s1 + $0x68] sm:$0xff]   ;;  %s1394_s19 = smov (!%p165_p3, %s914_s19), 15  ;;  %vm597_vm0 = vcmask 523264  }
   0xc   : > { %v1142_v1 = vld [vmem:[%s1390_s1 + $0xf8] sm:$0xff]   ;;  %1020 = vmatprep.subr.bf16.mxu0 %v1141_v0  ;;  %v1146_v5 = vld [vmem:[%s1390_s1 + $0xf0] sm:$0xff]   ;;  %v1150_v9 = vld [vmem:[%s1390_s1 + $0xe8] sm:$0xff]   ;;  %s1132_s16 = smul.u32 20, %s1394_s19  ;;  %s917_s17 = sshll.u32 %s1394_s19, 2 }
   0xd   : > { %v1143_v2 = vld [vmem:[%s1390_s1 + $0x38] sm:$0xff]   ;;  %1060 = vmatprep.subr.bf16.mxu1 %v1142_v1  ;;  %v1147_v6 = vld [vmem:[%s1390_s1 + $0x30] sm:$0xff]   ;;  %v1151_v10 = vld [vmem:[%s1390_s1 + $0x28] sm:$0xff]   ;;  %s175_s21 = scalar_lea.vmem %s1392_s3, %s917_s17 }
   0xe   : > { %v1144_v3 = vld [vmem:[%s1390_s1 + $0xb8] sm:$0xff]   ;;  %1021 = vmatpush3.bf16.msra.mxu0 %v1143_v2  ;;  %v1148_v7 = vld [vmem:[%s1390_s1 + $0xb0] sm:$0xff]   ;;  %v1152_v11 = vld [vmem:[%s1390_s1 + $0xa8] sm:$0xff]   ;;  %s1339_s13 = scalar_lea.vmem %s1389_s0, %s1132_s16 }
   0xf   : > { %1061 = vmatpush3.bf16.msra.mxu1 %v1144_v3  ;;  %1022 = vmatprep.subr.bf16.mxu0 %v1145_v4  ;;  %v1153_v12 = vld [vmem:[%s1390_s1 + $0x60] sm:$0xff]   ;;  %v1157_v16 = vld [vmem:[%s1390_s1 + $0x58] sm:$0xff]   ;;  %v1161_v20 = vld [vmem:[%s1390_s1 + $0x50] sm:$0xff]  }
  0x10   : > { %1062 = vmatprep.subr.bf16.mxu1 %v1146_v5  ;;  %v1154_v13 = vld [vmem:[%s1390_s1 + $0xe0] sm:$0xff]   ;;  %v1158_v17 = vld [vmem:[%s1390_s1 + $0xd8] sm:$0xff]   ;;  %v1162_v21 = vld [vmem:[%s1390_s1 + $0xd0] sm:$0xff]  }
  0x11   : > { %v1155_v14 = vld [vmem:[%s1390_s1 + $0x20] sm:$0xff]   ;;  %v1159_v18 = vld [vmem:[%s1390_s1 + $0x18] sm:$0xff]   ;;  %v1163_v22 = vld [vmem:[%s1390_s1 + $0x10] sm:$0xff]  }
  0x12   : > { %1023 = vmatpush3.bf16.msra.mxu0 %v1147_v6  ;;  %v1156_v15 = vld [vmem:[%s1390_s1 + $0xa0] sm:$0xff]   ;;  %v1160_v19 = vld [vmem:[%s1390_s1 + $0x98] sm:$0xff]   ;;  %v1164_v23 = vld [vmem:[%s1390_s1 + $0x90] sm:$0xff]  }
  0x13   : > { %1063 = vmatpush3.bf16.msra.mxu1 %v1148_v7  ;;  %1024 = vmatprep.subr.bf16.mxu0 %v1149_v8  ;;  %v1165_v24 = vld [vmem:[%s1390_s1 + $0x48] sm:$0xff]   ;;  %v1169_v28 = vld [vmem:[%s1390_s1 + $0x40] sm:$0xff]   ;;  %v1179_v36 = vld [vmem:[%s1390_s1 + $0x118] sm:$0xff]  }
  0x14   : > { %1064 = vmatprep.subr.bf16.mxu1 %v1150_v9  ;;  %v1166_v25 = vld [vmem:[%s1390_s1 + $0xc8] sm:$0xff]   ;;  %v1170_v29 = vld [vmem:[%s1390_s1 + $0xc0] sm:$0xff]   ;;  %v1186_v39 = vld [vmem:[%s1390_s1 + $0x110] sm:$0xff]  }
  0x15   : > { %v1167_v26 = vld [vmem:[%s1390_s1 + $0x8] sm:$0xff]   ;;  %v1171_v30 = vld [vmem:[%s1390_s1] sm:$0xff]   ;;  %v1189_v43 = vld [vmem:[%s1339_s13 + $0x5c] ss:$20 sps:$4 sm:$0xff]  }
  0x16   : > { %1025 = vmatpush3.bf16.msra.mxu0 %v1151_v10  ;;  %v1168_v27 = vld [vmem:[%s1390_s1 + $0x88] sm:$0xff]   ;;  %v1172_v31 = vld [vmem:[%s1390_s1 + $0x80] sm:$0xff]   ;;  %v1194_v48 = vld [vmem:[%s1339_s13 + $0x7c] ss:$20 sps:$4 sm:$0xff]  }
  0x17   : > { %1065 = vmatpush3.bf16.msra.mxu1 %v1152_v11  ;;  %1026 = vmatprep.subr.bf16.mxu0 %v1153_v12  ;;  %v1173_v32 = vld [vmem:[%s1339_s13] ss:$20 sps:$4 sm:$0xff]   ;;  %v1175_v33 = vld [vmem:[%s1339_s13 + $0x4] ss:$20 sps:$4 sm:$0xff]   ;;  %v1176_v34 = vld [vmem:[%s1339_s13 + $0x8] ss:$20 sps:$4 sm:$0xff]  }
  0x18   : > { %1066 = vmatprep.subr.bf16.mxu1 %v1154_v13  ;;  %v1178_v35 = vld [vmem:[%s1339_s13 + $0xc] ss:$20 sps:$4 sm:$0xff]   ;;  %642 = vmatprep.mubr.bf16.mxu0 %v1175_v33  ;;  %v1182_v38 = vld [vmem:[%s1339_s13 + $0x34] ss:$20 sps:$4 sm:$0xff]   ;;  %v1185_v41 = vld [vmem:[%s1339_s13 + $0x30] ss:$20 sps:$4 sm:$0xff]  }
  0x19   : > { %707 = vmatprep.mubr.bf16.mxu1 %v1178_v35  ;;  %v1180_v37 = vld [vmem:[%s1339_s13 + $0x2c] ss:$20 sps:$4 sm:$0xff]   ;;  %v1184_v40 = vld [vmem:[%s1339_s13 + $0x28] ss:$20 sps:$4 sm:$0xff]   ;;  %v1191_v46 = vld [vmem:[%s1339_s13 + $0x50] ss:$20 sps:$4 sm:$0xff]  }
  0x1a   : > { %1027 = vmatpush3.bf16.msra.mxu0 %v1155_v14  ;;  %v1187_v42 = vld [vmem:[%s1339_s13 + $0x54] ss:$20 sps:$4 sm:$0xff]   ;;  %v1200_v45 = vld [vmem:[%s1390_s1 + $0x100] sm:$0xff]   ;;  %v1192_v47 = vld [vmem:[%s1339_s13 + $0x58] ss:$20 sps:$4 sm:$0xff]  }
  0x1b   : > { %1067 = vmatpush3.bf16.msra.mxu1 %v1156_v15  ;;  %1028 = vmatprep.subr.bf16.mxu0 %v1157_v16  ;;  %v1193_v44 = vld [vmem:[%s1390_s1 + $0x108] sm:$0xff]   ;;  %v1196_v49 = vld [vmem:[%s1339_s13 + $0x84] ss:$20 sps:$4 sm:$0xff]   ;;  %v1199_v51 = vld [vmem:[%s1339_s13 + $0x80] ss:$20 sps:$4 sm:$0xff]  }
  0x1c   : > { %1068 = vmatprep.subr.bf16.mxu1 %v1158_v17  ;;  %v1198_v50 = vld [vmem:[%s1339_s13 + $0x78] ss:$20 sps:$4 sm:$0xff]   ;;  %v1201_v52 = vld [vmem:[%s1339_s13 + $0x10] ss:$20 sps:$4 sm:$0xff]   ;;  %v1202_v53 = vld [vmem:[%s1339_s13 + $0x60] ss:$20 sps:$4 sm:$0xff]  }
  0x1d   : > { %v1203_v54 = vld [vmem:[%s1339_s13 + $0x38] ss:$20 sps:$4 sm:$0xff]   ;;  %v1204_v55 = vld [vmem:[%s1339_s13 + $0x88] ss:$20 sps:$4 sm:$0xff]  }
  0x1e   : > { %1029 = vmatpush3.bf16.msra.mxu0 %v1159_v18 }
  0x1f   : > { %1069 = vmatpush3.bf16.msra.mxu1 %v1160_v19  ;;  %1030 = vmatprep.subr.bf16.mxu0 %v1161_v20 }
  0x20   : > { %1070 = vmatprep.subr.bf16.mxu1 %v1162_v21  ;;  %v918_v21 = vld [vmem:[%s1391_s2] ss:$0 sm:$0xff] }
  0x22   : > { %1031 = vmatpush3.bf16.msra.mxu0 %v1163_v22 }
  0x23   : > { %1071 = vmatpush3.bf16.msra.mxu1 %v1164_v23  ;;  %1032 = vmatprep.subr.bf16.mxu0 %v1165_v24 }
  0x24   : > { %1072 = vmatprep.subr.bf16.mxu1 %v1166_v25 }
  0x26   : > { %1033 = vmatpush3.bf16.msra.mxu0 %v1167_v26 }
  0x27   : > { %1073 = vmatpush3.bf16.msra.mxu1 %v1168_v27  ;;  %1034 = vmatprep.subr.bf16.mxu0 %v1169_v28 }
  0x28   : > { %1074 = vmatprep.subr.bf16.mxu1 %v1170_v29 }
  0x2a   : > { %1035 = vmatpush3.bf16.msra.mxu0 %v1171_v30 }
  0x2b   : > { %1075 = vmatpush3.bf16.msra.mxu1 %v1172_v31  ;;  %1108 = vmatprep.subr.bf16.mxu0 %v1179_v36 }
  0x2c   : > { %1124 = vmatprep.subr.bf16.mxu1 %v1179_v36 }
  0x2d   : > { %643 = vmatmul.mubr.bf16.vlgmr.msra.gmra.mxu0 %v1173_v32 }
  0x2e   : > { %708 = vmatmul.mubr.bf16.vlgmr.msra.gmra.mxu1 %v1176_v34  ;;  %1109 = vmatpush3.bf16.msra.mxu0 %v1179_v36 }
  0x2f   : > { %1128 = vmatpush3.bf16.msra.mxu1 %v1179_v36  ;;  %650 = vmatprep.mubr.bf16.mxu0 %v1180_v37 }
  0x30   : > { %715 = vmatprep.mubr.bf16.mxu1 %v1182_v38  ;;  %1110 = vmatprep.subr.bf16.mxu0 %v1186_v39 }
  0x31   : > { %1125 = vmatprep.subr.bf16.mxu1 %v1186_v39 }
  0x32   : > { %1111 = vmatpush3.bf16.msra.mxu0 %v1186_v39 }
  0x33   : > { %1129 = vmatpush3.bf16.msra.mxu1 %v1186_v39  ;;  %1112 = vmatprep.subr.bf16.mxu0 %v1193_v44 }
  0x34   : > { %1126 = vmatprep.subr.bf16.mxu1 %v1193_v44 }
  0x35   : > { %651 = vmatmul.mubr.bf16.gmra.mxu0 %v1184_v40 }
  0x36   : > { %716 = vmatmul.mubr.bf16.gmra.mxu1 %v1185_v41  ;;  %658 = vmatprep.mubr.bf16.mxu0 %v1187_v42 }
  0x37   : > { %723 = vmatprep.mubr.bf16.mxu1 %v1189_v43  ;;  %1113 = vmatpush3.bf16.msra.mxu0 %v1193_v44 }
  0x38   : > { %1130 = vmatpush3.bf16.msra.mxu1 %v1193_v44  ;;  %1114 = vmatprep.subr.bf16.mxu0 %v1200_v45 }
  0x39   : > { %1127 = vmatprep.subr.bf16.mxu1 %v1200_v45 }
  0x3b   : > { %1115 = vmatpush3.bf16.msra.mxu0 %v1200_v45 }
  0x3c   : > { %1131 = vmatpush3.bf16.msra.mxu1 %v1200_v45 }
  0x3d   : > { %659 = vmatmul.mubr.bf16.gmra.mxu0 %v1191_v46 }
  0x3e   : > { %724 = vmatmul.mubr.bf16.gmra.mxu1 %v1192_v47  ;;  %666 = vmatprep.mubr.bf16.mxu0 %v1194_v48 }
  0x3f   : > { %731 = vmatprep.mubr.bf16.mxu1 %v1196_v49 }
  0x45   : > { %667 = vmatmul.mubr.bf16.gmra.mxu0 %v1198_v50 }
  0x46   : > { %732 = vmatmul.mubr.bf16.gmra.mxu1 %v1199_v51  ;;  %1116 = vmatprep.mubr.msk.bf16.mxu0 %vm597_vm0, %v1201_v52 }
  0x47   : > { %1120 = vmatprep.mubr.msk.bf16.mxu1 %vm597_vm0, %v1202_v53 }
  0x4d   : > { %1117 = vmatmul.mubr.msk.bf16.vlgmr.msra.gmra.mxu0 %vm597_vm0, %v1203_v54 }
  0x4e   : > { %1121 = vmatmul.mubr.msk.bf16.vlgmr.msra.gmra.mxu1 %vm597_vm0, %v1204_v55 }
  0xed   : > { %v1036_v56 = vpop.f32.mrf.mxu0 }
  0xee   : > { %v1076_v57 = vpop.f32.mrf.mxu1 }
  0xef   : > { %v1037_v58 = vpop.f32.mrf.mxu0 }
  0xf0   : > { %v1077_v59 = vpop.f32.mrf.mxu1  ;;  %v1038_v19 = vadd.f32 %v1037_v58, %v1036_v56 }
  0xf1   : > { %v1039_v60 = vpop.f32.mrf.mxu0  ;;  %v1078_v39 = vadd.f32 %v1077_v59, %v1076_v57 }
  0xf2   : > { %v1079_v61 = vpop.f32.mrf.mxu1  ;;  %v645_v31 = vadd.f32 %v1038_v19, %v918_v21 }
  0xf3   : > { %v1040_v62 = vpop.f32.mrf.mxu0 }
  0xf4   : > { %v1080_v63 = vpop.f32.mrf.mxu1  ;;  %v1041_v25 = vadd.f32 %v1040_v62, %v1039_v60  ;;  %v710_v51 = vadd.f32 %v1078_v39, %v645_v31 }
  0xf5   : > { %v1042_v0 = vpop.f32.mrf.mxu0  ;;  %v1081_v53 = vadd.f32 %v1080_v63, %v1079_v61 }
  0xf6   : > { %v1082_v1 = vpop.f32.mrf.mxu1  ;;  %v648_v40 = vadd.f32 %v1041_v25, %v918_v21 }
  0xf7   : > { %v1043_v2 = vpop.f32.mrf.mxu0 }
  0xf8   : > { %v1083_v3 = vpop.f32.mrf.mxu1  ;;  %v1044_v17 = vadd.f32 %v1043_v2, %v1042_v0 }
  0xf9   : > { %v1045_v4 = vpop.f32.mrf.mxu0  ;;  %v1084_v35 = vadd.f32 %v1083_v3, %v1082_v1  ;;  %v713_v3 = vadd.f32 %v1081_v53, %v648_v40 }
  0xfa   : > { %v1085_v5 = vpop.f32.mrf.mxu1  ;;  %v653_v28 = vadd.f32 %v1044_v17, %v918_v21 }
  0xfb   : > { %v1046_v6 = vpop.f32.mrf.mxu0 }
  0xfc   : > { %v1086_v7 = vpop.f32.mrf.mxu1  ;;  %v1047_v22 = vadd.f32 %v1046_v6, %v1045_v4  ;;  %v718_v47 = vadd.f32 %v1084_v35, %v653_v28 }
  0xfd   : > { %v1048_v8 = vpop.f32.mrf.mxu0  ;;  %v1087_v44 = vadd.f32 %v1086_v7, %v1085_v5 }
  0xfe   : > { %v1088_v9 = vpop.f32.mrf.mxu1  ;;  %v656_v36 = vadd.f32 %v1047_v22, %v918_v21 }
  0xff   : > { %v1049_v10 = vpop.f32.mrf.mxu0 }
 0x100   : > { %v1089_v11 = vpop.f32.mrf.mxu1  ;;  %v1050_v26 = vadd.f32 %v1049_v10, %v1048_v8  ;;  %v721_v56 = vadd.f32 %v1087_v44, %v656_v36 }
 0x101   : > { %v1051_v12 = vpop.f32.mrf.mxu0  ;;  %v1090_v49 = vadd.f32 %v1089_v11, %v1088_v9 }
 0x102   : > { %v1091_v13 = vpop.f32.mrf.mxu1  ;;  %v661_v41 = vadd.f32 %v1050_v26, %v918_v21 }
 0x103   : > { %v1052_v14 = vpop.f32.mrf.mxu0 }
 0x104   : > { %v1092_v15 = vpop.f32.mrf.mxu1  ;;  %v1053_v32 = vadd.f32 %v1052_v14, %v1051_v12  ;;  %v726_v60 = vadd.f32 %v1090_v49, %v661_v41 }
 0x105   : > { %v1054_v16 = vpop.f32.mrf.mxu0  ;;  %v1093_v57 = vadd.f32 %v1092_v15, %v1091_v13 }
 0x106   : > { %v1094_v18 = vpop.f32.mrf.mxu1  ;;  %v664_v50 = vadd.f32 %v1053_v32, %v918_v21 }
 0x107   : > { %v1055_v20 = vpop.f32.mrf.mxu0 }
 0x108   : > { %v1056_v23 = vadd.f32 %v1055_v20, %v1054_v16  ;;  %v1095_v24 = vpop.f32.mrf.mxu1  ;;  %v729_v7 = vadd.f32 %v1093_v57, %v664_v50 }
 0x109   : > { %v1057_v27 = vpop.f32.mrf.mxu0  ;;  %v1096_v33 = vadd.f32 %v1095_v24, %v1094_v18 }
 0x10a   : > { %v669_v29 = vadd.f32 %v1056_v23, %v918_v21  ;;  %v1097_v30 = vpop.f32.mrf.mxu1 }
 0x10b   : > { %v1058_v34 = vpop.f32.mrf.mxu0 }
 0x10c   : > { %v1059_v37 = vadd.f32 %v1058_v34, %v1057_v27  ;;  %v1098_v38 = vpop.f32.mrf.mxu1  ;;  %v734_v43 = vadd.f32 %v1096_v33, %v669_v29 }
 0x10d   : > { %v1118_v42 = vpop.f32.mrf.mxu0  ;;  %v1099_v46 = vadd.f32 %v1098_v38, %v1097_v30 }
 0x10e   : > { %v672_v45 = vadd.f32 %v1059_v37, %v918_v21  ;;  %v1122_v48 = vpop.f32.mrf.mxu1  ;;  %v783_v54 = vadd.f32 %v1118_v42, %v718_v47 }
 0x10f   : > { %v774_v52 = vpop.f32.mrf.mxu0  ;;  %v799_v59 = vadd.f32 %v1122_v48, %v734_v43 }
 0x110   : > { %v790_v55 = vpop.f32.mrf.mxu1  ;;  %v737_v58 = vadd.f32 %v1099_v46, %v672_v45  ;;  %v775_v0 = vadd.f32 %v774_v52, %v710_v51  ;;  %v807_v8 = vmax.f32 %v783_v54, 0.0 }
 0x111   : > { %v1119_v62 = vpop.f32.mrf.mxu0  ;;  %v791_v4 = vadd.f32 %v790_v55, %v726_v60  ;;  %v811_v10 = vmax.f32 %v799_v59, 0.0 }
 0x112   : > { %v786_v1 = vadd.f32 %v1119_v62, %v721_v56  ;;  %v1123_v2 = vpop.f32.mrf.mxu1  ;;  %v805_v13 = vmax.f32 %v775_v0, 0.0 }
 0x113   : > { %v802_v5 = vadd.f32 %v1123_v2, %v737_v58  ;;  %v777_v6 = vpop.f32.mrf.mxu0  ;;  %v809_v16 = vmax.f32 %v791_v4, 0.0 }
 0x114   : > { %v808_v9 = vmax.f32 %v786_v1, 0.0  ;;  %v778_v61 = vadd.f32 %v777_v6, %v713_v3  ;;  %v793_v63 = vpop.f32.mrf.mxu1 }
 0x115   : > { %v812_v11 = vmax.f32 %v802_v5, 0.0  ;;  %v794_v12 = vadd.f32 %v793_v63, %v729_v7 }
 0x116   : > { %v1005_v14 = vpack.c.bf16 %v808_v9, %v807_v8  ;;  %v806_v15 = vmax.f32 %v778_v61, 0.0 }
 0x117   : > { %v1015_v17 = vpack.c.bf16 %v812_v11, %v811_v10  ;;  %v810_v18 = vmax.f32 %v794_v12, 0.0 }
 0x118   : > { %1017 = vst [vmem:[%s175_s21 + $0x8] sm:$0xff] %v1005_v14   ;;  %v1000_v19 = vpack.c.bf16 %v806_v15, %v805_v13 }
 0x119   : > { %1019 = vst [vmem:[%s175_s21 + $0x18] sm:$0xff] %v1015_v17   ;;  %v1010_v20 = vpack.c.bf16 %v810_v18, %v809_v16 }
 0x11a   : > { %1001 = vst [vmem:[%s175_s21] sm:$0xff] %v1000_v19  }
 0x11b   : > { %1018 = vst [vmem:[%s175_s21 + $0x10] sm:$0xff] %v1010_v20  }
 0x11c PF: > { %s13_s12 = sadd.s32 1, %s1211_s12  }
 0x11d   : > { %p10_p4 = scmp.ge.s32.totalorder %s13_s12, 4  }
 0x11f   :  { %12 = sbr.rel (!%p10_p4) target bundleno = 1 (0x1), region = 62 }

// kernel: conv_autoencoder_forward.13
= control target key start
LH: loop header
LB: loop body
LE: loop exit
PB: predicated region body
PF: predicated region fallthrough
CT: control target
= control target key end

     0   :  { %s1488_s12 = smov 0   ;;  %s1768_s0 = inlined_call_operand.vmem [shape: bf16[512,288], index: 0, kind: input, shape index: {}]   ;;  %s1769_s1 = inlined_call_operand.vmem [shape: bf16[288,12], index: 1, kind: input, shape index: {}]   ;;  %s1770_s2 = inlined_call_operand.vmem [shape: f32[1,12], index: 2, kind: input, shape index: {}]   ;;  %s1771_s3 = inlined_call_operand.vmem [shape: f32[512,12], index: 3, kind: output, shape index: {}]  }
   0x1 LB: > { %s1093_s13 = sadd.s32 4294967295, %s1466_s12   ;;  %p1097_p0 = scmp.ge.s32.totalorder %s1466_s12, 1  ;;  %s1466_s12 = sphi %s1488_s12, %s13_s12  }
   0x2   : > { %p139_p1 = scmp.lt.s32.totalorder %s1466_s12, 3 }
   0x4   : > { %p140_p2 = pnand %p1097_p0, %p139_p1 }
   0x5   : > { %s1098_s16 = sshll.u32 (!%p140_p2), %s1093_s13, 5 }
   0x6   : > { %143 = sbr.rel (%p140_p2) target bundleno = 338 (0x152), region = 32  ;;  %p165_p3 = scmp.lt.s32.totalorder (!%p140_p2), %s1098_s16, 63 }
   0xb   : > { %v1378_v0 = vld [vmem:[%s1769_s1 + $0x78] sm:$0xff]   ;;  %v1380_v2 = vld [vmem:[%s1769_s1 + $0x70] sm:$0xff]   ;;  %v1382_v4 = vld [vmem:[%s1769_s1 + $0x68] sm:$0xff]   ;;  %s1773_s16 = smov (!%p165_p3, %s1098_s16), 63  ;;  %vm633_vm0 = vcmask 261120   ;;  %vm1004_vm1 = vcmask 97280  }
   0xc   : > { %v1379_v1 = vld [vmem:[%s1769_s1 + $0x38] sm:$0xff]   ;;  %1187 = vmatprep.subr.bf16.mxu0 %v1378_v0  ;;  %1353 = vmatprep.subr.bf16.mxu1 %v1378_v0  ;;  %v1381_v3 = vld [vmem:[%s1769_s1 + $0x30] sm:$0xff]   ;;  %v1383_v5 = vld [vmem:[%s1769_s1 + $0x28] sm:$0xff]   ;;  %s1369_s29 = smul.u32 12, %s1773_s16  ;;  %s1101_s30 = sshll.u32 %s1773_s16, 3 }
   0xd   : > { %1188 = vmatpush3.bf16.msra.mxu0 %v1379_v1  ;;  %1361 = vmatpush3.bf16.msra.mxu1 %v1379_v1  ;;  %v1384_v6 = vld [vmem:[%s1769_s1 + $0x60] sm:$0xff]   ;;  %v1386_v8 = vld [vmem:[%s1769_s1 + $0x58] sm:$0xff]   ;;  %v1388_v10 = vld [vmem:[%s1769_s1 + $0x50] sm:$0xff]   ;;  %s1652_s8 = scalar_lea.vmem %s1771_s3, %s1101_s30 }
   0xe   : > { %1189 = vmatprep.subr.bf16.mxu0 %v1380_v2  ;;  %1354 = vmatprep.subr.bf16.mxu1 %v1380_v2  ;;  %v1385_v7 = vld [vmem:[%s1769_s1 + $0x20] sm:$0xff]   ;;  %s1529_s9 = scalar_lea.vmem %s1768_s0, %s1369_s29  ;;  %v1387_v9 = vld [vmem:[%s1769_s1 + $0x18] sm:$0xff]   ;;  %v1389_v13 = vld [vmem:[%s1769_s1 + $0x10] sm:$0xff]  }
   0xf   : > { %v1396_v11 = vld [vmem:[%s1529_s9 + $0x4] ss:$12 sps:$4 sm:$0xff]   ;;  %v1390_v14 = vld [vmem:[%s1769_s1 + $0x48] sm:$0xff]   ;;  %v1407_v26 = vld [vmem:[%s1529_s9 + $0x34] ss:$12 sps:$4 sm:$0xff]  }
  0x10   : > { %v1399_v12 = vld [vmem:[%s1529_s9 + $0x124] ss:$12 sps:$4 sm:$0xff]   ;;  %714 = vmatprep.mubr.bf16.mxu0 %v1396_v11  ;;  %v1391_v15 = vld [vmem:[%s1769_s1 + $0x8] sm:$0xff]   ;;  %v1409_v27 = vld [vmem:[%s1529_s9 + $0x154] ss:$12 sps:$4 sm:$0xff]  }
  0x11   : > { %1190 = vmatpush3.bf16.msra.mxu0 %v1381_v3  ;;  %1362 = vmatpush3.bf16.msra.mxu1 %v1381_v3  ;;  %v1392_v16 = vld [vmem:[%s1769_s1 + $0x40] sm:$0xff]   ;;  %v1400_v18 = vld [vmem:[%s1769_s1 + $0x88] sm:$0xff]   ;;  %v1411_v28 = vld [vmem:[%s1529_s9 + $0x30] ss:$12 sps:$4 sm:$0xff]  }
  0x12   : > { %1191 = vmatprep.subr.bf16.mxu0 %v1382_v4  ;;  %1355 = vmatprep.subr.bf16.mxu1 %v1382_v4  ;;  %v1393_v17 = vld [vmem:[%s1769_s1] sm:$0xff]   ;;  %v1401_v21 = vld [vmem:[%s1529_s9 + $0x1c] ss:$12 sps:$4 sm:$0xff]   ;;  %v1414_v30 = vld [vmem:[%s1529_s9 + $0x4c] ss:$12 sps:$4 sm:$0xff]  }
  0x13   : > { %810 = vmatprep.mubr.bf16.mxu1 %v1399_v12  ;;  %v1394_v19 = vld [vmem:[%s1529_s9] ss:$12 sps:$4 sm:$0xff]   ;;  %v1403_v22 = vld [vmem:[%s1529_s9 + $0x13c] ss:$12 sps:$4 sm:$0xff]   ;;  %v1405_v24 = vld [vmem:[%s1529_s9 + $0x18] ss:$12 sps:$4 sm:$0xff]  }
  0x14   : > { %v1397_v20 = vld [vmem:[%s1529_s9 + $0x120] ss:$12 sps:$4 sm:$0xff]   ;;  %v1406_v25 = vld [vmem:[%s1529_s9 + $0x138] ss:$12 sps:$4 sm:$0xff]   ;;  %v1412_v29 = vld [vmem:[%s1529_s9 + $0x150] ss:$12 sps:$4 sm:$0xff]  }
  0x15   : > { %1192 = vmatpush3.bf16.msra.mxu0 %v1383_v5  ;;  %1363 = vmatpush3.bf16.msra.mxu1 %v1383_v5  ;;  %v1413_v23 = vld [vmem:[%s1769_s1 + $0x80] sm:$0xff]   ;;  %v1416_v31 = vld [vmem:[%s1529_s9 + $0x16c] ss:$12 sps:$4 sm:$0xff]   ;;  %v1418_v32 = vld [vmem:[%s1529_s9 + $0x48] ss:$12 sps:$4 sm:$0xff]  }
  0x16   : > { %1193 = vmatprep.subr.bf16.mxu0 %v1384_v6  ;;  %1356 = vmatprep.subr.bf16.mxu1 %v1384_v6  ;;  %v1419_v33 = vld [vmem:[%s1529_s9 + $0x168] ss:$12 sps:$4 sm:$0xff]   ;;  %v1420_v34 = vld [vmem:[%s1529_s9 + $0x64] ss:$12 sps:$4 sm:$0xff]   ;;  %v1423_v36 = vld [vmem:[%s1529_s9 + $0x60] ss:$12 sps:$4 sm:$0xff]  }
  0x17   : > { %v1422_v35 = vld [vmem:[%s1529_s9 + $0x8] ss:$12 sps:$4 sm:$0xff]   ;;  %v1424_v37 = vld [vmem:[%s1529_s9 + $0x20] ss:$12 sps:$4 sm:$0xff]   ;;  %v1427_v39 = vld [vmem:[%s1529_s9 + $0x38] ss:$12 sps:$4 sm:$0xff]  }
  0x18   : > { %v1425_v38 = vld [vmem:[%s1529_s9 + $0x7c] ss:$12 sps:$4 sm:$0xff]   ;;  %v1428_v40 = vld [vmem:[%s1529_s9 + $0x78] ss:$12 sps:$4 sm:$0xff]   ;;  %v1430_v42 = vld [vmem:[%s1529_s9 + $0x94] ss:$12 sps:$4 sm:$0xff]  }
  0x19   : > { %1194 = vmatpush3.bf16.msra.mxu0 %v1385_v7  ;;  %1364 = vmatpush3.bf16.msra.mxu1 %v1385_v7  ;;  %v1429_v41 = vld [vmem:[%s1529_s9 + $0x50] ss:$12 sps:$4 sm:$0xff]   ;;  %v1432_v43 = vld [vmem:[%s1529_s9 + $0x68] ss:$12 sps:$4 sm:$0xff]   ;;  %v1434_v45 = vld [vmem:[%s1529_s9 + $0x80] ss:$12 sps:$4 sm:$0xff]  }
  0x1a   : > { %1195 = vmatprep.subr.bf16.mxu0 %v1386_v8  ;;  %1357 = vmatprep.subr.bf16.mxu1 %v1386_v8  ;;  %v1433_v44 = vld [vmem:[%s1529_s9 + $0x90] ss:$12 sps:$4 sm:$0xff]   ;;  %v1435_v46 = vld [vmem:[%s1529_s9 + $0xac] ss:$12 sps:$4 sm:$0xff]   ;;  %v1438_v48 = vld [vmem:[%s1529_s9 + $0xa8] ss:$12 sps:$4 sm:$0xff]  }
  0x1b   : > { %v1437_v47 = vld [vmem:[%s1529_s9 + $0x98] ss:$12 sps:$4 sm:$0xff]   ;;  %v1439_v49 = vld [vmem:[%s1529_s9 + $0xb0] ss:$12 sps:$4 sm:$0xff]   ;;  %v1442_v51 = vld [vmem:[%s1529_s9 + $0xc8] ss:$12 sps:$4 sm:$0xff]  }
  0x1c   : > { %v1440_v50 = vld [vmem:[%s1529_s9 + $0xc4] ss:$12 sps:$4 sm:$0xff]   ;;  %v1443_v52 = vld [vmem:[%s1529_s9 + $0xc0] ss:$12 sps:$4 sm:$0xff]   ;;  %v1445_v54 = vld [vmem:[%s1529_s9 + $0xdc] ss:$12 sps:$4 sm:$0xff]  }
  0x1d   : > { %1196 = vmatpush3.bf16.msra.mxu0 %v1387_v9  ;;  %1365 = vmatpush3.bf16.msra.mxu1 %v1387_v9  ;;  %v1444_v53 = vld [vmem:[%s1529_s9 + $0xe0] ss:$12 sps:$4 sm:$0xff]   ;;  %v1447_v55 = vld [vmem:[%s1529_s9 + $0xf8] ss:$12 sps:$4 sm:$0xff]   ;;  %v1449_v57 = vld [vmem:[%s1529_s9 + $0x110] ss:$12 sps:$4 sm:$0xff]  }
  0x1e   : > { %1197 = vmatprep.subr.bf16.mxu0 %v1388_v10  ;;  %1358 = vmatprep.subr.bf16.mxu1 %v1388_v10  ;;  %v1448_v56 = vld [vmem:[%s1529_s9 + $0xd8] ss:$12 sps:$4 sm:$0xff]   ;;  %v1450_v58 = vld [vmem:[%s1529_s9 + $0xf4] ss:$12 sps:$4 sm:$0xff]   ;;  %v1453_v60 = vld [vmem:[%s1529_s9 + $0xf0] ss:$12 sps:$4 sm:$0xff]  }
  0x1f   : > { %v1452_v59 = vld [vmem:[%s1529_s9 + $0x128] ss:$12 sps:$4 sm:$0xff]   ;;  %v1454_v61 = vld [vmem:[%s1529_s9 + $0x140] ss:$12 sps:$4 sm:$0xff]   ;;  %v1457_v63 = vld [vmem:[%s1529_s9 + $0x158] ss:$12 sps:$4 sm:$0xff]  }
  0x20   : > { %v1455_v62 = vld [vmem:[%s1529_s9 + $0x10c] ss:$12 sps:$4 sm:$0xff]   ;;  %v1458_v0 = vld [vmem:[%s1529_s9 + $0x108] ss:$12 sps:$4 sm:$0xff]   ;;  %v1459_v1 = vld [vmem:[%s1529_s9 + $0x170] ss:$12 sps:$4 sm:$0xff]  }
  0x21   : > { %1198 = vmatpush3.bf16.msra.mxu0 %v1389_v13  ;;  %1366 = vmatpush3.bf16.msra.mxu1 %v1389_v13 }
  0x22   : > { %1199 = vmatprep.subr.bf16.mxu0 %v1390_v14  ;;  %1359 = vmatprep.subr.bf16.mxu1 %v1390_v14 }
  0x25   : > { %1200 = vmatpush3.bf16.msra.mxu0 %v1391_v15  ;;  %1367 = vmatpush3.bf16.msra.mxu1 %v1391_v15 }
  0x26   : > { %1201 = vmatprep.subr.bf16.mxu0 %v1392_v16  ;;  %1360 = vmatprep.subr.bf16.mxu1 %v1392_v16 }
  0x29   : > { %1202 = vmatpush3.bf16.msra.mxu0 %v1393_v17  ;;  %1368 = vmatpush3.bf16.msra.mxu1 %v1393_v17 }
  0x2a   : > { %1317 = vmatprep.subr.bf16.mxu1 %v1400_v18 }
  0x2c   : > { %715 = vmatmul.mubr.bf16.vlgmr.msra.gmra.mxu0 %v1394_v19  ;;  %811 = vmatmul.mubr.bf16.vlgmr.msra.gmra.mxu1 %v1397_v20 }
  0x2d   : > { %1318 = vmatpush3.bf16.msra.mxu1 %v1400_v18  ;;  %722 = vmatprep.mubr.bf16.mxu0 %v1401_v21 }
  0x2e   : > { %818 = vmatprep.mubr.bf16.mxu1 %v1403_v22  ;;  %1319 = vmatprep.subr.bf16.mxu1 %v1413_v23 }
  0x31   : > { %1320 = vmatpush3.bf16.msra.mxu1 %v1413_v23 }
  0x34   : > { %723 = vmatmul.mubr.bf16.gmra.mxu0 %v1405_v24  ;;  %819 = vmatmul.mubr.bf16.gmra.mxu1 %v1406_v25 }
  0x35   : > { %730 = vmatprep.mubr.bf16.mxu0 %v1407_v26  ;;  %826 = vmatprep.mubr.bf16.mxu1 %v1409_v27 }
  0x3c   : > { %731 = vmatmul.mubr.bf16.gmra.mxu0 %v1411_v28  ;;  %827 = vmatmul.mubr.bf16.gmra.mxu1 %v1412_v29 }
  0x3d   : > { %738 = vmatprep.mubr.bf16.mxu0 %v1414_v30  ;;  %834 = vmatprep.mubr.bf16.mxu1 %v1416_v31 }
  0x44   : > { %739 = vmatmul.mubr.bf16.gmra.mxu0 %v1418_v32  ;;  %835 = vmatmul.mubr.bf16.gmra.mxu1 %v1419_v33 }
  0x45   : > { %746 = vmatprep.mubr.bf16.mxu0 %v1420_v34  ;;  %1321 = vmatprep.mubr.msk.bf16.mxu1 %vm633_vm0, %v1422_v35 }
  0x4c   : > { %747 = vmatmul.mubr.bf16.gmra.mxu0 %v1423_v36  ;;  %1322 = vmatmul.mubr.msk.bf16.vlgmr.msra.gmra.mxu1 %vm633_vm0, %v1424_v37 }
  0x4d   : > { %754 = vmatprep.mubr.bf16.mxu0 %v1425_v38  ;;  %1325 = vmatprep.mubr.msk.bf16.mxu1 %vm633_vm0, %v1427_v39 }
  0x54   : > { %755 = vmatmul.mubr.bf16.gmra.mxu0 %v1428_v40  ;;  %1326 = vmatmul.mubr.msk.bf16.gmra.mxu1 %vm633_vm0, %v1429_v41 }
  0x55   : > { %762 = vmatprep.mubr.bf16.mxu0 %v1430_v42  ;;  %1329 = vmatprep.mubr.msk.bf16.mxu1 %vm633_vm0, %v1432_v43  ;;  %v1646_v42 = vld [vmem:[%s1770_s2] ss:$0 sm:$0xff] }
  0x5c   : > { %763 = vmatmul.mubr.bf16.gmra.mxu0 %v1433_v44  ;;  %1330 = vmatmul.mubr.msk.bf16.gmra.mxu1 %vm633_vm0, %v1434_v45 }
  0x5d   : > { %770 = vmatprep.mubr.bf16.mxu0 %v1435_v46  ;;  %1333 = vmatprep.mubr.msk.bf16.mxu1 %vm633_vm0, %v1437_v47 }
  0x64   : > { %771 = vmatmul.mubr.bf16.gmra.mxu0 %v1438_v48  ;;  %1334 = vmatmul.mubr.msk.bf16.gmra.mxu1 %vm633_vm0, %v1439_v49 }
  0x65   : > { %778 = vmatprep.mubr.bf16.mxu0 %v1440_v50  ;;  %1337 = vmatprep.mubr.msk.bf16.mxu1 %vm633_vm0, %v1442_v51 }
  0x6c   : > { %779 = vmatmul.mubr.bf16.gmra.mxu0 %v1443_v52  ;;  %1338 = vmatmul.mubr.msk.bf16.gmra.mxu1 %vm633_vm0, %v1444_v53 }
  0x6d   : > { %786 = vmatprep.mubr.bf16.mxu0 %v1445_v54  ;;  %1341 = vmatprep.mubr.msk.bf16.mxu1 %vm633_vm0, %v1447_v55 }
  0x74   : > { %787 = vmatmul.mubr.bf16.gmra.mxu0 %v1448_v56  ;;  %1342 = vmatmul.mubr.msk.bf16.gmra.mxu1 %vm633_vm0, %v1449_v57 }
  0x75   : > { %794 = vmatprep.mubr.bf16.mxu0 %v1450_v58  ;;  %1345 = vmatprep.mubr.msk.bf16.mxu1 %vm633_vm0, %v1452_v59 }
  0x7c   : > { %795 = vmatmul.mubr.bf16.gmra.mxu0 %v1453_v60  ;;  %1346 = vmatmul.mubr.msk.bf16.gmra.mxu1 %vm633_vm0, %v1454_v61 }
  0x7d   : > { %802 = vmatprep.mubr.bf16.mxu0 %v1455_v62  ;;  %1349 = vmatprep.mubr.msk.bf16.mxu1 %vm633_vm0, %v1457_v63 }
  0x84   : > { %803 = vmatmul.mubr.bf16.gmra.mxu0 %v1458_v0  ;;  %1350 = vmatmul.mubr.msk.bf16.gmra.mxu1 %vm633_vm0, %v1459_v1 }
  0xec   : > { %v1203_v2 = vpop.f32.mrf.mxu0  ;;  %v1275_v3 = vpop.f32.mrf.mxu1 }
  0xee   : > { %v1204_v4 = vpop.f32.mrf.mxu0  ;;  %v1276_v5 = vpop.f32.mrf.mxu1 }
  0xef   : > { %v1622_v6 = vadd.f32 %v1276_v5, %v1275_v3  ;;  %v1205_v39 = vadd.f32 %v1204_v4, %v1203_v2 }
  0xf0   : > { %v1206_v7 = vpop.f32.mrf.mxu0  ;;  %v1278_v8 = vpop.f32.mrf.mxu1 }
  0xf1   : > { %v717_v49 = vadd.f32 %v1205_v39, %v1646_v42 }
  0xf2   : > { %v1207_v9 = vpop.f32.mrf.mxu0  ;;  %v1279_v10 = vpop.f32.mrf.mxu1 }
  0xf3   : > { %v1624_v11 = vadd.f32 %v1279_v10, %v1278_v8  ;;  %v1208_v47 = vadd.f32 %v1207_v9, %v1206_v7 }
  0xf4   : > { %v1209_v12 = vpop.f32.mrf.mxu0  ;;  %v1281_v13 = vpop.f32.mrf.mxu1 }
  0xf5   : > { %v720_v59 = vadd.f32 %v1208_v47, %v1646_v42 }
  0xf6   : > { %v1210_v14 = vpop.f32.mrf.mxu0  ;;  %v1282_v15 = vpop.f32.mrf.mxu1 }
  0xf7   : > { %v1626_v16 = vadd.f32 %v1282_v15, %v1281_v13  ;;  %v1211_v36 = vadd.f32 %v1210_v14, %v1209_v12 }
  0xf8   : > { %v1212_v17 = vpop.f32.mrf.mxu0  ;;  %v1284_v18 = vpop.f32.mrf.mxu1 }
  0xf9   : > { %v725_v44 = vadd.f32 %v1211_v36, %v1646_v42 }
  0xfa   : > { %v1213_v19 = vpop.f32.mrf.mxu0  ;;  %v1285_v20 = vpop.f32.mrf.mxu1 }
  0xfb   : > { %v1628_v21 = vadd.f32 %v1285_v20, %v1284_v18  ;;  %v1214_v43 = vadd.f32 %v1213_v19, %v1212_v17 }
  0xfc   : > { %v1215_v22 = vpop.f32.mrf.mxu0  ;;  %v1287_v23 = vpop.f32.mrf.mxu1 }
  0xfd   : > { %v728_v54 = vadd.f32 %v1214_v43, %v1646_v42 }
  0xfe   : > { %v1216_v24 = vpop.f32.mrf.mxu0  ;;  %v1288_v25 = vpop.f32.mrf.mxu1 }
  0xff   : > { %v1630_v26 = vadd.f32 %v1288_v25, %v1287_v23  ;;  %v1217_v57 = vadd.f32 %v1216_v24, %v1215_v22 }
 0x100   : > { %v1218_v27 = vpop.f32.mrf.mxu0  ;;  %v1290_v28 = vpop.f32.mrf.mxu1 }
 0x101   : > { %v733_v5 = vadd.f32 %v1217_v57, %v1646_v42 }
 0x102   : > { %v1219_v29 = vpop.f32.mrf.mxu0  ;;  %v1291_v30 = vpop.f32.mrf.mxu1 }
 0x103   : > { %v1632_v31 = vadd.f32 %v1291_v30, %v1290_v28  ;;  %v1220_v3 = vadd.f32 %v1219_v29, %v1218_v27 }
 0x104   : > { %v1221_v32 = vpop.f32.mrf.mxu0  ;;  %v1634_v33 = vpop.f32.mrf.mxu1 }
 0x105   : > { %v736_v18 = vadd.f32 %v1220_v3, %v1646_v42 }
 0x106   : > { %v1222_v34 = vpop.f32.mrf.mxu0  ;;  %v1636_v35 = vpop.f32.mrf.mxu1 }
 0x107   : > { %v1223_v52 = vadd.f32 %v1222_v34, %v1221_v32 }
 0x108   : > { %v1224_v37 = vpop.f32.mrf.mxu0  ;;  %v1638_v38 = vpop.f32.mrf.mxu1 }
 0x109   : > { %v741_v0 = vadd.f32 %v1223_v52, %v1646_v42 }
 0x10a   : > { %v1225_v40 = vpop.f32.mrf.mxu0  ;;  %v1641_v41 = vpop.f32.mrf.mxu1 }
 0x10b   : > { %v1226_v62 = vadd.f32 %v1225_v40, %v1224_v37 }
 0x10c   : > { %v1227_v45 = vpop.f32.mrf.mxu0  ;;  %v1323_v46 = vpop.f32.mrf.mxu1 }
 0x10d   : > { %v886_v48 = vadd.f32 %v1323_v46, %v725_v44  ;;  %v744_v12 = vadd.f32 %v1226_v62, %v1646_v42 }
 0x10e   : > { %v1228_v50 = vpop.f32.mrf.mxu0  ;;  %v877_v51 = vpop.f32.mrf.mxu1 }
 0x10f   : > { %1007 = vst.msk [vmem:[%s1652_s8 + $0x10] sm:$0xff] %vm1004_vm1, %v886_v48  ;;  %v878_v53 = vadd.f32 %v877_v51, %v717_v49  ;;  %v1229_v15 = vadd.f32 %v1228_v50, %v1227_v45 }
 0x110   : > { %v1230_v55 = vpop.f32.mrf.mxu0  ;;  %v1324_v56 = vpop.f32.mrf.mxu1 }
 0x111   : > { %1005 = vst.msk [vmem:[%s1652_s8] sm:$0xff] %vm1004_vm1, %v878_v53  ;;  %v889_v58 = vadd.f32 %v1324_v56, %v728_v54  ;;  %v749_v30 = vadd.f32 %v1229_v15, %v1646_v42 }
 0x112   : > { %v1231_v60 = vpop.f32.mrf.mxu0  ;;  %v880_v61 = vpop.f32.mrf.mxu1 }
 0x113   : > { %1008 = vst.msk [vmem:[%s1652_s8 + $0x18] sm:$0xff] %vm1004_vm1, %v889_v58  ;;  %v881_v63 = vadd.f32 %v880_v61, %v720_v59  ;;  %v1232_v28 = vadd.f32 %v1231_v60, %v1230_v55 }
 0x114   : > { %v1233_v1 = vpop.f32.mrf.mxu0  ;;  %v1327_v2 = vpop.f32.mrf.mxu1 }
 0x115   : > { %1006 = vst.msk [vmem:[%s1652_s8 + $0x8] sm:$0xff] %vm1004_vm1, %v881_v63  ;;  %v902_v4 = vadd.f32 %v1327_v2, %v741_v0  ;;  %v752_v45 = vadd.f32 %v1232_v28, %v1646_v42 }
 0x116   : > { %v1234_v7 = vpop.f32.mrf.mxu0  ;;  %v893_v8 = vpop.f32.mrf.mxu1 }
 0x117   : > { %1011 = vst.msk [vmem:[%s1652_s8 + $0x30] sm:$0xff] %vm1004_vm1, %v902_v4  ;;  %v1235_v9 = vadd.f32 %v1234_v7, %v1233_v1  ;;  %v894_v10 = vadd.f32 %v893_v8, %v733_v5 }
 0x118   : > { %v1236_v13 = vpop.f32.mrf.mxu0  ;;  %v1328_v14 = vpop.f32.mrf.mxu1 }
 0x119   : > { %1009 = vst.msk [vmem:[%s1652_s8 + $0x20] sm:$0xff] %vm1004_vm1, %v894_v10  ;;  %v905_v17 = vadd.f32 %v1328_v14, %v744_v12  ;;  %v757_v24 = vadd.f32 %v1235_v9, %v1646_v42 }
 0x11a   : > { %v1237_v19 = vpop.f32.mrf.mxu0  ;;  %v896_v20 = vpop.f32.mrf.mxu1 }
 0x11b   : > { %1012 = vst.msk [vmem:[%s1652_s8 + $0x38] sm:$0xff] %vm1004_vm1, %v905_v17  ;;  %v1238_v22 = vadd.f32 %v1237_v19, %v1236_v13  ;;  %v897_v23 = vadd.f32 %v896_v20, %v736_v18 }
 0x11c   : > { %v1239_v25 = vpop.f32.mrf.mxu0  ;;  %v1331_v27 = vpop.f32.mrf.mxu1 }
 0x11d   : > { %1010 = vst.msk [vmem:[%s1652_s8 + $0x28] sm:$0xff] %vm1004_vm1, %v897_v23  ;;  %v918_v29 = vadd.f32 %v1331_v27, %v757_v24  ;;  %v760_v37 = vadd.f32 %v1238_v22, %v1646_v42 }
 0x11e   : > { %v1240_v32 = vpop.f32.mrf.mxu0  ;;  %v909_v34 = vpop.f32.mrf.mxu1 }
 0x11f   : > { %1015 = vst.msk [vmem:[%s1652_s8 + $0x50] sm:$0xff] %vm1004_vm1, %v918_v29  ;;  %v910_v36 = vadd.f32 %v909_v34, %v749_v30  ;;  %v1241_v43 = vadd.f32 %v1240_v32, %v1239_v25 }
 0x120   : > { %v1242_v39 = vpop.f32.mrf.mxu0  ;;  %v1332_v40 = vpop.f32.mrf.mxu1 }
 0x121   : > { %1013 = vst.msk [vmem:[%s1652_s8 + $0x40] sm:$0xff] %vm1004_vm1, %v910_v36  ;;  %v921_v44 = vadd.f32 %v1332_v40, %v760_v37  ;;  %v765_v52 = vadd.f32 %v1241_v43, %v1646_v42 }
 0x122   : > { %v1243_v46 = vpop.f32.mrf.mxu0  ;;  %v912_v47 = vpop.f32.mrf.mxu1 }
 0x123   : > { %1016 = vst.msk [vmem:[%s1652_s8 + $0x58] sm:$0xff] %vm1004_vm1, %v921_v44  ;;  %v913_v48 = vadd.f32 %v912_v47, %v752_v45  ;;  %v1244_v51 = vadd.f32 %v1243_v46, %v1242_v39  ;;  %v821_v39 = vadd.f32 %v1626_v16, %v1646_v42  ;;  %v813_v46 = vadd.f32 %v1622_v6, %v1646_v42 }
 0x124   : > { %v1245_v49 = vpop.f32.mrf.mxu0  ;;  %v1335_v50 = vpop.f32.mrf.mxu1  ;;  %v1295_v47 = vadd.f32 %v1636_v35, %v1634_v33  ;;  %v816_v35 = vadd.f32 %v1624_v11, %v1646_v42 }
 0x125   : > { %1014 = vst.msk [vmem:[%s1652_s8 + $0x48] sm:$0xff] %vm1004_vm1, %v913_v48  ;;  %v768_v60 = vadd.f32 %v1244_v51, %v1646_v42 }
 0x126   : > { %v1246_v53 = vpop.f32.mrf.mxu0  ;;  %v925_v54 = vpop.f32.mrf.mxu1 }
 0x127   : > { %v1247_v55 = vadd.f32 %v1246_v53, %v1245_v49  ;;  %v926_v56 = vadd.f32 %v925_v54, %v765_v52  ;;  %v824_v52 = vadd.f32 %v1628_v21, %v1646_v42  ;;  %v1298_v21 = vadd.f32 %v1641_v41, %v1638_v38 }
 0x128   : > { %v1248_v57 = vpop.f32.mrf.mxu0  ;;  %v1336_v58 = vpop.f32.mrf.mxu1 }
 0x129   : > { %v773_v59 = vadd.f32 %v1247_v55, %v1646_v42  ;;  %1017 = vst.msk [vmem:[%s1652_s8 + $0x60] sm:$0xff] %vm1004_vm1, %v926_v56 }
 0x12a   : > { %v1249_v61 = vpop.f32.mrf.mxu0  ;;  %v928_v62 = vpop.f32.mrf.mxu1 }
 0x12b   : > { %v934_v63 = vadd.f32 %v1335_v50, %v773_v59  ;;  %v1250_v0 = vadd.f32 %v1249_v61, %v1248_v57  ;;  %v929_v1 = vadd.f32 %v928_v62, %v768_v60  ;;  %v837_v57 = vadd.f32 %v1295_v47, %v1646_v42 }
 0x12c   : > { %v1251_v2 = vpop.f32.mrf.mxu0  ;;  %v1339_v3 = vpop.f32.mrf.mxu1 }
 0x12d   : > { %1019 = vst.msk [vmem:[%s1652_s8 + $0x70] sm:$0xff] %vm1004_vm1, %v934_v63  ;;  %v776_v4 = vadd.f32 %v1250_v0, %v1646_v42  ;;  %1018 = vst.msk [vmem:[%s1652_s8 + $0x68] sm:$0xff] %vm1004_vm1, %v929_v1  ;;  %v829_v0 = vadd.f32 %v1630_v26, %v1646_v42 }
 0x12e   : > { %v1252_v5 = vpop.f32.mrf.mxu0  ;;  %v941_v7 = vpop.f32.mrf.mxu1 }
 0x12f   : > { %v937_v8 = vadd.f32 %v1336_v58, %v776_v4  ;;  %v1253_v9 = vadd.f32 %v1252_v5, %v1251_v2  ;;  %v840_v4 = vadd.f32 %v1298_v21, %v1646_v42 }
 0x130   : > { %v1254_v10 = vpop.f32.mrf.mxu0  ;;  %v1340_v12 = vpop.f32.mrf.mxu1 }
 0x131   : > { %1020 = vst.msk [vmem:[%s1652_s8 + $0x78] sm:$0xff] %vm1004_vm1, %v937_v8  ;;  %v781_v13 = vadd.f32 %v1253_v9, %v1646_v42  ;;  %v832_v9 = vadd.f32 %v1632_v31, %v1646_v42 }
 0x132   : > { %v1255_v14 = vpop.f32.mrf.mxu0  ;;  %v944_v15 = vpop.f32.mrf.mxu1 }
 0x133   : > { %v942_v17 = vadd.f32 %v941_v7, %v781_v13  ;;  %v1256_v18 = vadd.f32 %v1255_v14, %v1254_v10 }
 0x134   : > { %v1257_v19 = vpop.f32.mrf.mxu0  ;;  %v1702_v20 = vpop.f32.mrf.mxu1 }
 0x135   : > { %1021 = vst.msk [vmem:[%s1652_s8 + $0x80] sm:$0xff] %vm1004_vm1, %v942_v17  ;;  %v784_v22 = vadd.f32 %v1256_v18, %v1646_v42 }
 0x136   : > { %v1258_v23 = vpop.f32.mrf.mxu0  ;;  %v957_v24 = vpop.f32.mrf.mxu1 }
 0x137   : > { %v945_v25 = vadd.f32 %v944_v15, %v784_v22  ;;  %v1259_v27 = vadd.f32 %v1258_v23, %v1257_v19 }
 0x138   : > { %v1260_v28 = vpop.f32.mrf.mxu0  ;;  %v1707_v29 = vpop.f32.mrf.mxu1 }
 0x139   : > { %1022 = vst.msk [vmem:[%s1652_s8 + $0x88] sm:$0xff] %vm1004_vm1, %v945_v25  ;;  %v789_v30 = vadd.f32 %v1259_v27, %v1646_v42 }
 0x13a   : > { %v1261_v32 = vpop.f32.mrf.mxu0  ;;  %v960_v34 = vpop.f32.mrf.mxu1 }
 0x13b   : > { %v950_v36 = vadd.f32 %v1339_v3, %v789_v30  ;;  %v1262_v37 = vadd.f32 %v1261_v32, %v1260_v28 }
 0x13c   : > { %v1263_v40 = vpop.f32.mrf.mxu0  ;;  %v1347_v43 = vpop.f32.mrf.mxu1 }
 0x13d   : > { %1023 = vst.msk [vmem:[%s1652_s8 + $0x90] sm:$0xff] %vm1004_vm1, %v950_v36  ;;  %v792_v44 = vadd.f32 %v1262_v37, %v1646_v42  ;;  %v982_v45 = vadd.f32 %v1347_v43, %v821_v39 }
 0x13e   : > { %v1264_v48 = vpop.f32.mrf.mxu0  ;;  %v973_v49 = vpop.f32.mrf.mxu1 }
 0x13f   : > { %v953_v50 = vadd.f32 %v1340_v12, %v792_v44  ;;  %1031 = vst.msk [vmem:[%s1652_s8 + $0xd0] sm:$0xff] %vm1004_vm1, %v982_v45  ;;  %v1265_v16 = vadd.f32 %v1264_v48, %v1263_v40  ;;  %v974_v51 = vadd.f32 %v973_v49, %v813_v46 }
 0x140   : > { %v1266_v53 = vpop.f32.mrf.mxu0  ;;  %v1348_v54 = vpop.f32.mrf.mxu1 }
 0x141   : > { %1024 = vst.msk [vmem:[%s1652_s8 + $0x98] sm:$0xff] %vm1004_vm1, %v953_v50  ;;  %v797_v6 = vadd.f32 %v1265_v16, %v1646_v42  ;;  %1029 = vst.msk [vmem:[%s1652_s8 + $0xc0] sm:$0xff] %vm1004_vm1, %v974_v51  ;;  %v985_v33 = vadd.f32 %v1348_v54, %v824_v52 }
 0x142   : > { %v1267_v55 = vpop.f32.mrf.mxu0  ;;  %v976_v56 = vpop.f32.mrf.mxu1 }
 0x143   : > { %v958_v58 = vadd.f32 %v957_v24, %v797_v6  ;;  %1032 = vst.msk [vmem:[%s1652_s8 + $0xd8] sm:$0xff] %vm1004_vm1, %v985_v33  ;;  %v1268_v59 = vadd.f32 %v1267_v55, %v1266_v53  ;;  %v977_v60 = vadd.f32 %v976_v56, %v816_v35 }
 0x144   : > { %v1269_v61 = vpop.f32.mrf.mxu0  ;;  %v1351_v62 = vpop.f32.mrf.mxu1 }
 0x145   : > { %1025 = vst.msk [vmem:[%s1652_s8 + $0xa0] sm:$0xff] %vm1004_vm1, %v958_v58  ;;  %v800_v11 = vadd.f32 %v1268_v59, %v1646_v42  ;;  %1030 = vst.msk [vmem:[%s1652_s8 + $0xc8] sm:$0xff] %vm1004_vm1, %v977_v60  ;;  %v998_v63 = vadd.f32 %v1351_v62, %v837_v57 }
 0x146   : > { %v1270_v38 = vpop.f32.mrf.mxu0  ;;  %v989_v41 = vpop.f32.mrf.mxu1 }
 0x147   : > { %v961_v1 = vadd.f32 %v960_v34, %v800_v11  ;;  %1035 = vst.msk [vmem:[%s1652_s8 + $0xf0] sm:$0xff] %vm1004_vm1, %v998_v63  ;;  %v1271_v2 = vadd.f32 %v1270_v38, %v1269_v61  ;;  %v990_v3 = vadd.f32 %v989_v41, %v829_v0 }
 0x148   : > { %v1272_v5 = vpop.f32.mrf.mxu0  ;;  %v1352_v7 = vpop.f32.mrf.mxu1 }
 0x149   : > { %1026 = vst.msk [vmem:[%s1652_s8 + $0xa8] sm:$0xff] %vm1004_vm1, %v961_v1  ;;  %v805_v8 = vadd.f32 %v1271_v2, %v1646_v42  ;;  %1033 = vst.msk [vmem:[%s1652_s8 + $0xe0] sm:$0xff] %vm1004_vm1, %v990_v3  ;;  %v1001_v26 = vadd.f32 %v1352_v7, %v840_v4 }
 0x14a   : > { %v1273_v10 = vpop.f32.mrf.mxu0  ;;  %v992_v12 = vpop.f32.mrf.mxu1 }
 0x14b   : > { %v966_v13 = vadd.f32 %v1702_v20, %v805_v8  ;;  %1036 = vst.msk [vmem:[%s1652_s8 + $0xf8] sm:$0xff] %vm1004_vm1, %v1001_v26  ;;  %v1274_v14 = vadd.f32 %v1273_v10, %v1272_v5  ;;  %v993_v15 = vadd.f32 %v992_v12, %v832_v9 }
 0x14d   : > { %1027 = vst.msk [vmem:[%s1652_s8 + $0xb0] sm:$0xff] %vm1004_vm1, %v966_v13  ;;  %v808_v17 = vadd.f32 %v1274_v14, %v1646_v42  ;;  %1034 = vst.msk [vmem:[%s1652_s8 + $0xe8] sm:$0xff] %vm1004_vm1, %v993_v15 }
 0x14f   : > { %v969_v18 = vadd.f32 %v1707_v29, %v808_v17 }
 0x151   : > { %1028 = vst.msk [vmem:[%s1652_s8 + $0xb8] sm:$0xff] %vm1004_vm1, %v969_v18 }
 0x152 PF: > { %s13_s12 = sadd.s32 1, %s1466_s12  }
 0x153   : > { %p10_p4 = scmp.ge.s32.totalorder %s13_s12, 4  }
 0x155   :  { %12 = sbr.rel (!%p10_p4) target bundleno = 1 (0x1), region = 62 }

</bundles_post_ra>
